<compile_context>
chip_gen: v6e
topology: v6e:2x2x1
jax: 0.10.0
libtpu: 0.0.40
codegen_flags: <defaults>
</compile_context>

<pallas_src>
import functools

import jax
import jax.numpy as jnp
from jax import lax
from jax.experimental import pallas as pl
from jax.experimental.pallas import tpu as pltpu


# ---------------------------------------------------------------------------
# Fused Pallas kernel: n_layers x BiLSTM + FC
# ---------------------------------------------------------------------------
def make_bilstm_fc_kernel(n_layers, hid_dim):
    H = hid_dim
    H2 = 2 * H          # per-timestep hidden width (both directions)
    G = 8 * H           # fused gate width (4 gates x 2 directions) = 256

    def kernel(*refs):
        x_ref = refs[0]
        layer_refs = refs[1:1 + 3 * n_layers]
        fcw_ref, fcb_ref, o_ref, gx_scr, hid_scr = refs[1 + 3 * n_layers:]
        T, B = x_ref.shape[0], x_ref.shape[1]

        # Lane masks: hoisted once, reused by every layer / timestep.
        lane_g = lax.broadcasted_iota(jnp.int32, (B, G), 1)
        fwd_mask = (lane_g % H2) < H                      # fwd-direction lanes
        g_mask = (lane_g >= 2 * H2) & (lane_g < 3 * H2)   # tanh ("g") gate lanes
        lane_h = lax.broadcasted_iota(jnp.int32, (B, H2), 1)
        hfwd_mask = lane_h < H                            # fwd half of hidden

        def run_layer(x_all, wih_ref, whh_ref, b_ref):
            din = x_all.shape[-1]
            # Hoisted input projection: ONE bf16 MXU matmul covering every
            # timestep and both directions, f32 accumulate + f32 bias.
            gx = jnp.dot(x_all.reshape(T * B, din).astype(jnp.bfloat16),
                         wih_ref[...], preferred_element_type=jnp.float32)
            gx = (gx + b_ref[...]).reshape(T, B, G)
            # Pre-align directions once per layer (bulk, off the recurrence
            # critical path): fwd lanes keep time t, bwd lanes take T-1-t, so
            # the inner loop reads a single gx_scr[t].
            for t in range(T):
                gx_scr[t] = jnp.where(fwd_mask, gx[t], gx[T - 1 - t])

            whh = whh_ref[...]                            # hoisted (2H, 8H) bf16
            h = jnp.zeros((B, H2), jnp.float32)
            c = jnp.zeros((B, H2), jnp.float32)
            for t in range(T):                            # static unroll (T=8)
                gates = gx_scr[t] + jnp.dot(h.astype(jnp.bfloat16), whh,
                                            preferred_element_type=jnp.float32)
                # Single full-vreg tanh; sigmoid derived as 0.5*tanh(x/2)+0.5
                # (the 0.5 pre-scale of the i/f/o columns is folded into the
                # weights), halving the per-step EUP pushes.
                tg = jnp.tanh(gates)
                act = jnp.where(g_mask, tg, 0.5 * tg + 0.5)
                i_g = act[:, 0 * H2:1 * H2]
                f_g = act[:, 1 * H2:2 * H2]
                g_g = act[:, 2 * H2:3 * H2]
                o_g = act[:, 3 * H2:4 * H2]
                c = f_g * c + i_g * g_g
                h = o_g * jnp.tanh(c)
                hid_scr[t] = h                            # one full-width store
            # Layer-boundary fix-up (bulk, off the critical chain): time-reverse
            # the bwd half so hid_scr is time-aligned for the next layer / FC.
            hid_all = hid_scr[...]
            for t in range(T):
                hid_scr[t] = jnp.where(hfwd_mask, hid_all[t], hid_all[T - 1 - t])

        run_layer(x_ref[...], *layer_refs[0:3])
        for l in range(1, n_layers):
            # TODO(synk): PyTorch applies inter-layer dropout only in training
            # mode; this is eval()-mode forward (no dropout).
            run_layer(hid_scr[...], *layer_refs[3 * l:3 * l + 3])

        # Fused FC on the VMEM-resident hidden states (bf16 MXU), lane-dense
        # padded output (o_pad = 128).
        flat = hid_scr[...].reshape(T * B, H2).astype(jnp.bfloat16)
        logits = jnp.dot(flat, fcw_ref[...],
                         preferred_element_type=jnp.float32) + fcb_ref[...]
        o_ref[...] = logits.reshape(T, B, o_ref.shape[-1])

    return kernel


# ---------------------------------------------------------------------------
# Weight preparation: PyTorch (i,f,g,o)-per-direction -> fused kernel layout
# ---------------------------------------------------------------------------
def _gate_cols(w, g, H):
    return w[:, g * H:(g + 1) * H]


def _prepare_fused_layer(layer, H):
    """Build fused [i_f,i_b,f_f,f_b,g_f,g_b,o_f,o_b] weight layout (bf16).

    NOTE: weights here are stored as (in_dim, 4H).  Real PyTorch checkpoints
    store weight_ih_l{k} / weight_hh_l{k} as (4H, in_dim) -- importing them
    requires a transpose (gate order i,f,g,o matches).

    The i/f/o gate columns are pre-scaled by 0.5 so the kernel can compute
    sigmoid(x) as 0.5*(1 + tanh(x/2)) with a single tanh on the whole slab.
    """
    wih_f, wih_b = layer["w_ih_fwd"], layer["w_ih_bwd"]
    whh_f, whh_b = layer["w_hh_fwd"], layer["w_hh_bwd"]
    b_f, b_b = layer["b_fwd"], layer["b_bwd"]

    wih = jnp.concatenate(
        [jnp.concatenate([_gate_cols(wih_f, g, H), _gate_cols(wih_b, g, H)],
                         axis=1) for g in range(4)], axis=1)          # (Din, 8H)

    zero = jnp.zeros((H, H), jnp.float32)
    blocks = []
    for g in range(4):
        top = jnp.concatenate([_gate_cols(whh_f, g, H), zero], axis=1)   # (H, 2H)
        bot = jnp.concatenate([zero, _gate_cols(whh_b, g, H)], axis=1)   # (H, 2H)
        blocks.append(jnp.concatenate([top, bot], axis=0))               # (2H, 2H)
    whh = jnp.concatenate(blocks, axis=1)                                # (2H, 8H)

    b = jnp.concatenate(
        [jnp.concatenate([b_f[:, g * H:(g + 1) * H],
                          b_b[:, g * H:(g + 1) * H]], axis=1)
         for g in range(4)], axis=1)                                     # (1, 8H)

    # Fold the sigmoid-via-tanh 0.5 pre-scale into i (g=0), f (g=1), o (g=3).
    gate_scale = jnp.concatenate(
        [jnp.full((1, 2 * H), 1.0 if g == 2 else 0.5, jnp.float32)
         for g in range(4)], axis=1)                                     # (1, 8H)
    wih = (wih * gate_scale).astype(jnp.bfloat16)
    whh = (whh * gate_scale).astype(jnp.bfloat16)
    b = b * gate_scale                                                   # f32
    return wih, whh, b


# ---------------------------------------------------------------------------
# Parameters + forward
# ---------------------------------------------------------------------------
def init_params(key, word_size, d_model, hid_dim, n_layers, output_size):
    keys = iter(jax.random.split(key, 4 + 8 * n_layers + 2))
    emb = 0.1 * jax.random.normal(next(keys), (word_size, d_model), jnp.float32)
    emb = emb.at[0].set(0.0)  # padding_idx=0 -> zero row

    bound = 1.0 / float(hid_dim) ** 0.5
    lstm_layers = []
    for l in range(n_layers):
        in_dim = d_model if l == 0 else 2 * hid_dim
        layer = {}
        for direc in ("fwd", "bwd"):
            w_ih = jax.random.uniform(next(keys), (in_dim, 4 * hid_dim),
                                      jnp.float32, -bound, bound)
            w_hh = jax.random.uniform(next(keys), (hid_dim, 4 * hid_dim),
                                      jnp.float32, -bound, bound)
            b_ih = jax.random.uniform(next(keys), (4 * hid_dim,),
                                      jnp.float32, -bound, bound)
            b_hh = jax.random.uniform(next(keys), (4 * hid_dim,),
                                      jnp.float32, -bound, bound)
            layer[f"w_ih_{direc}"] = w_ih
            layer[f"w_hh_{direc}"] = w_hh
            layer[f"b_{direc}"] = (b_ih + b_hh)[None, :]
        lstm_layers.append(layer)

    fc_bound = 1.0 / float(2 * hid_dim) ** 0.5
    fc_w = jax.random.uniform(next(keys), (2 * hid_dim, output_size),
                              jnp.float32, -fc_bound, fc_bound)
    fc_b = jax.random.uniform(next(keys), (1, output_size),
                              jnp.float32, -fc_bound, fc_bound)
    return {"embedding": emb, "lstm": lstm_layers, "fc_w": fc_w, "fc_b": fc_b}


def bilstm_crf_forward(params, x_ids, *, hid_dim, output_size, o_pad=128):
    """Equivalent of bilstm_crf.forward(x): emissions before the CRF."""
    B, T = x_ids.shape
    H = hid_dim
    n_layers = len(params["lstm"])

    # Pad batch to a sublane multiple (>=8). Padded rows use token id 0 whose
    # embedding row is zero; LSTM rows are independent so real rows unaffected.
    # For throughput at scale, pack/pad Bp toward the MXU row count (128/256)
    # instead of 8 -- the recurrence latency is nearly flat in Bp up to that.
    Bp = max(8, ((B + 7) // 8) * 8)
    x_pad = jnp.zeros((Bp, T), jnp.int32).at[:B, :].set(x_ids)

    emb = jnp.take(params["embedding"], x_pad, axis=0)        # (Bp, T, D) glue
    x_tbd = jnp.transpose(emb, (1, 0, 2))                     # (T, Bp, D) f32

    fused = []
    for layer in params["lstm"]:
        fused.extend(_prepare_fused_layer(layer, H))

    # Lane-dense FC output: pad output_size to 128 columns (zeros), slice back.
    fc_w = jnp.zeros((2 * H, o_pad), jnp.float32).at[:, :output_size].set(
        params["fc_w"]).astype(jnp.bfloat16)
    fc_b = jnp.zeros((1, o_pad), jnp.float32).at[:, :output_size].set(
        params["fc_b"])

    kernel = make_bilstm_fc_kernel(n_layers, H)
    n_in = 1 + 3 * n_layers + 2
    out_tbo = pl.pallas_call(
        kernel,
        out_shape=jax.ShapeDtypeStruct((T, Bp, o_pad), jnp.float32),
        in_specs=[pl.BlockSpec(memory_space=pltpu.MemorySpace.VMEM)] * n_in,
        out_specs=pl.BlockSpec(memory_space=pltpu.MemorySpace.VMEM),
        scratch_shapes=[
            pltpu.VMEM((T, Bp, 8 * H), jnp.float32),   # direction-aligned gx
            pltpu.VMEM((T, Bp, 2 * H), jnp.float32),   # bidirectional hidden
        ],
        # Tiny at these toy sizes (<1 MiB); limit also fits v7x's 64 MiB VMEM.
        compiler_params=pltpu.CompilerParams(vmem_limit_bytes=32 * 1024 * 1024),
    )(x_tbd, *fused, fc_w, fc_b)

    out = jnp.transpose(out_tbo, (1, 0, 2))                   # (Bp, T, o_pad)
    return out[:B, :, :output_size]                           # (B, T, output)


# ---------------------------------------------------------------------------
# Pure-JAX reference (for correctness check)
# ---------------------------------------------------------------------------
def _lstm_dir_ref(x_tbd, w_ih, w_hh, b_row):
    _, B, _ = x_tbd.shape
    H = w_hh.shape[0]

    def step(carry, x_t):
        h, c = carry
        gates = x_t @ w_ih + h @ w_hh + b_row
        i = jax.nn.sigmoid(gates[:, 0 * H:1 * H])
        f = jax.nn.sigmoid(gates[:, 1 * H:2 * H])
        g = jnp.tanh(gates[:, 2 * H:3 * H])
        o = jax.nn.sigmoid(gates[:, 3 * H:4 * H])
        c = f * c + i * g
        h = o * jnp.tanh(c)
        return (h, c), h

    init = (jnp.zeros((B, H), jnp.float32), jnp.zeros((B, H), jnp.float32))
    _, hs = lax.scan(step, init, x_tbd)
    return hs


def forward_ref(params, x_ids):
    emb = jnp.take(params["embedding"], x_ids, axis=0)
    out = jnp.transpose(emb, (1, 0, 2))
    for layer in params["lstm"]:
        hf = _lstm_dir_ref(out, layer["w_ih_fwd"], layer["w_hh_fwd"],
                           layer["b_fwd"])
        hb = _lstm_dir_ref(out[::-1], layer["w_ih_bwd"], layer["w_hh_bwd"],
                           layer["b_bwd"])[::-1]
        out = jnp.concatenate([hf, hb], axis=-1)
    T, B, H2 = out.shape
    flat = jnp.transpose(out, (1, 0, 2)).reshape(B * T, H2)
    logits = flat @ params["fc_w"] + params["fc_b"]
    return logits.reshape(B, T, -1)


if __name__ == "__main__":
    parameter = dict(word_size=50, d_model=32, hid_dim=32,
                     n_layers=2, dropout=0.1, output_size=8)
    B, T = 2, 8

    key = jax.random.PRNGKey(0)
    k_x, k_p = jax.random.split(key)
    x_ids = jax.random.randint(k_x, (B, T), 0, parameter["word_size"],
                               dtype=jnp.int32)
    params = init_params(k_p, parameter["word_size"], parameter["d_model"],
                         parameter["hid_dim"], parameter["n_layers"],
                         parameter["output_size"])

    fwd = jax.jit(functools.partial(bilstm_crf_forward, params,
                                    hid_dim=parameter["hid_dim"],
                                    output_size=parameter["output_size"]))
    out = jax.block_until_ready(fwd(x_ids))
    assert out.shape == (B, T, parameter["output_size"])
    assert out.dtype == jnp.float32

    ref = forward_ref(params, x_ids)
    # Tolerance accounts for bf16 MXU weight/operand quantization vs. the
    # all-f32 reference (still far tighter than any layout/ordering bug).
    assert jnp.allclose(out, ref, atol=2e-2, rtol=2e-2), (
        float(jnp.max(jnp.abs(out - ref))))
    print("KERNEL_OK")
</pallas_src>

<mosaic_0001>
module attributes {stable_mosaic.version = 11 : i64} {
  func.func @kernel(%arg0: memref<8x8x32xf32, #tpu.memory_space<vmem>>, %arg1: memref<32x256xbf16, #tpu.memory_space<vmem>>, %arg2: memref<64x256xbf16, #tpu.memory_space<vmem>>, %arg3: memref<1x256xf32, #tpu.memory_space<vmem>>, %arg4: memref<64x256xbf16, #tpu.memory_space<vmem>>, %arg5: memref<64x256xbf16, #tpu.memory_space<vmem>>, %arg6: memref<1x256xf32, #tpu.memory_space<vmem>>, %arg7: memref<64x128xbf16, #tpu.memory_space<vmem>>, %arg8: memref<1x128xf32, #tpu.memory_space<vmem>>, %arg9: memref<8x8x128xf32, #tpu.memory_space<vmem>>, %arg10: memref<8x8x256xf32, #tpu.memory_space<vmem>>, %arg11: memref<8x8x64xf32, #tpu.memory_space<vmem>>) attributes {dimension_semantics = [], scalar_prefetch = 0 : i64, scratch_operands = 2 : i64, tpu.core_type = #tpu.core_type<tc>} {
    %0 = tpu.iota {dimensions = array<i32: 1>} : vector<8x256xi32>
    %c64_i32 = arith.constant 64 : i32
    %c0_i32 = arith.constant 0 : i32
    %1 = arith.cmpi eq, %c64_i32, %c0_i32 : i32
    %c1_i32 = arith.constant 1 : i32
    %2 = arith.select %1, %c1_i32, %c64_i32 : i32
    %3 = vector.broadcast %2 : i32 to vector<8x256xi32>
    %4 = arith.remsi %0, %3 : vector<8x256xi32>
    %c0_i32_0 = arith.constant 0 : i32
    %5 = vector.broadcast %c0_i32_0 : i32 to vector<8x256xi32>
    %6 = arith.cmpi ne, %4, %5 : vector<8x256xi32>
    %c0_i32_1 = arith.constant 0 : i32
    %7 = vector.broadcast %c0_i32_1 : i32 to vector<8x256xi32>
    %8 = arith.cmpi slt, %4, %7 : vector<8x256xi32>
    %c0_i32_2 = arith.constant 0 : i32
    %9 = arith.cmpi slt, %2, %c0_i32_2 : i32
    %10 = vector.broadcast %9 : i1 to vector<8x256xi1>
    %11 = vector.broadcast %10 : vector<8x256xi1> to vector<8x256xi1>
    %12 = arith.xori %8, %11 : vector<8x256xi1>
    %13 = arith.andi %12, %6 : vector<8x256xi1>
    %14 = vector.broadcast %2 : i32 to vector<8x256xi32>
    %15 = arith.addi %4, %14 : vector<8x256xi32>
    %16 = arith.select %13, %15, %4 : vector<8x256xi1>, vector<8x256xi32>
    %c32_i32 = arith.constant 32 : i32
    %17 = vector.broadcast %c32_i32 : i32 to vector<8x256xi32>
    %18 = arith.cmpi slt, %16, %17 : vector<8x256xi32>
    %c128_i32 = arith.constant 128 : i32
    %19 = vector.broadcast %c128_i32 : i32 to vector<8x256xi32>
    %20 = arith.cmpi sge, %0, %19 : vector<8x256xi32>
    %c192_i32 = arith.constant 192 : i32
    %21 = vector.broadcast %c192_i32 : i32 to vector<8x256xi32>
    %22 = arith.cmpi slt, %0, %21 : vector<8x256xi32>
    %23 = arith.andi %20, %22 : vector<8x256xi1>
    %24 = tpu.iota {dimensions = array<i32: 1>} : vector<8x64xi32>
    %c32_i32_3 = arith.constant 32 : i32
    %25 = vector.broadcast %c32_i32_3 : i32 to vector<8x64xi32>
    %26 = arith.cmpi slt, %24, %25 : vector<8x64xi32>
    %c0 = arith.constant 0 : index
    %c0_4 = arith.constant 0 : index
    %c0_5 = arith.constant 0 : index
    %27 = vector.load %arg0[%c0, %c0_4, %c0_5] : memref<8x8x32xf32, #tpu.memory_space<vmem>>, vector<8x8x32xf32>
    %28 = vector.shape_cast %27 : vector<8x8x32xf32> to vector<64x32xf32>
    %29 = arith.truncf %28 : vector<64x32xf32> to vector<64x32xbf16>
    %c0_6 = arith.constant 0 : index
    %c0_7 = arith.constant 0 : index
    %30 = vector.load %arg1[%c0_6, %c0_7] : memref<32x256xbf16, #tpu.memory_space<vmem>>, vector<32x256xbf16>
    %cst = arith.constant dense<0.000000e+00> : vector<64x256xf32>
    %31 = tpu.matmul %29, %30, %cst {dimension_numbers = #tpu.dot_dimension_numbers<[1], [0], [0], [1], [0, 0, 1, 1], [], []>} : vector<64x32xbf16>, vector<32x256xbf16>, vector<64x256xf32> -> vector<64x256xf32>
    %c0_8 = arith.constant 0 : index
    %c0_9 = arith.constant 0 : index
    %32 = vector.load %arg3[%c0_8, %c0_9] : memref<1x256xf32, #tpu.memory_space<vmem>>, vector<1x256xf32>
    %33 = vector.broadcast %32 : vector<1x256xf32> to vector<64x256xf32>
    %34 = arith.addf %31, %33 : vector<64x256xf32>
    %35 = vector.shape_cast %34 : vector<64x256xf32> to vector<8x8x256xf32>
    %36 = vector.extract_strided_slice %35 {offsets = [0, 0, 0], sizes = [1, 8, 256], strides = [1, 1, 1]} : vector<8x8x256xf32> to vector<1x8x256xf32>
    %37 = vector.shape_cast %36 : vector<1x8x256xf32> to vector<8x256xf32>
    %38 = vector.extract_strided_slice %35 {offsets = [7, 0, 0], sizes = [1, 8, 256], strides = [1, 1, 1]} : vector<8x8x256xf32> to vector<1x8x256xf32>
    %39 = vector.shape_cast %38 : vector<1x8x256xf32> to vector<8x256xf32>
    %40 = arith.select %18, %37, %39 : vector<8x256xi1>, vector<8x256xf32>
    %c0_10 = arith.constant 0 : index
    %c0_11 = arith.constant 0 : index
    %c0_12 = arith.constant 0 : index
    %41 = vector.load %arg10[%c0_10, %c0_11, %c0_12] : memref<8x8x256xf32, #tpu.memory_space<vmem>>, vector<1x8x256xf32>
    %42 = vector.shape_cast %41 : vector<1x8x256xf32> to vector<8x256xf32>
    %43 = vector.shape_cast %40 : vector<8x256xf32> to vector<1x8x256xf32>
    tpu.vector_store %arg10[%c0_10, %c0_11, %c0_12], %43 {strides = array<i32>} : memref<8x8x256xf32, #tpu.memory_space<vmem>>, vector<1x8x256xf32>,
    %44 = vector.extract_strided_slice %35 {offsets = [1, 0, 0], sizes = [1, 8, 256], strides = [1, 1, 1]} : vector<8x8x256xf32> to vector<1x8x256xf32>
    %45 = vector.shape_cast %44 : vector<1x8x256xf32> to vector<8x256xf32>
    %46 = vector.extract_strided_slice %35 {offsets = [6, 0, 0], sizes = [1, 8, 256], strides = [1, 1, 1]} : vector<8x8x256xf32> to vector<1x8x256xf32>
    %47 = vector.shape_cast %46 : vector<1x8x256xf32> to vector<8x256xf32>
    %48 = arith.select %18, %45, %47 : vector<8x256xi1>, vector<8x256xf32>
    %c1 = arith.constant 1 : index
    %c0_13 = arith.constant 0 : index
    %c0_14 = arith.constant 0 : index
    %49 = vector.load %arg10[%c1, %c0_13, %c0_14] : memref<8x8x256xf32, #tpu.memory_space<vmem>>, vector<1x8x256xf32>
    %50 = vector.shape_cast %49 : vector<1x8x256xf32> to vector<8x256xf32>
    %51 = vector.shape_cast %48 : vector<8x256xf32> to vector<1x8x256xf32>
    tpu.vector_store %arg10[%c1, %c0_13, %c0_14], %51 {strides = array<i32>} : memref<8x8x256xf32, #tpu.memory_space<vmem>>, vector<1x8x256xf32>,
    %52 = vector.extract_strided_slice %35 {offsets = [2, 0, 0], sizes = [1, 8, 256], strides = [1, 1, 1]} : vector<8x8x256xf32> to vector<1x8x256xf32>
    %53 = vector.shape_cast %52 : vector<1x8x256xf32> to vector<8x256xf32>
    %54 = vector.extract_strided_slice %35 {offsets = [5, 0, 0], sizes = [1, 8, 256], strides = [1, 1, 1]} : vector<8x8x256xf32> to vector<1x8x256xf32>
    %55 = vector.shape_cast %54 : vector<1x8x256xf32> to vector<8x256xf32>
    %56 = arith.select %18, %53, %55 : vector<8x256xi1>, vector<8x256xf32>
    %c2 = arith.constant 2 : index
    %c0_15 = arith.constant 0 : index
    %c0_16 = arith.constant 0 : index
    %57 = vector.load %arg10[%c2, %c0_15, %c0_16] : memref<8x8x256xf32, #tpu.memory_space<vmem>>, vector<1x8x256xf32>
    %58 = vector.shape_cast %57 : vector<1x8x256xf32> to vector<8x256xf32>
    %59 = vector.shape_cast %56 : vector<8x256xf32> to vector<1x8x256xf32>
    tpu.vector_store %arg10[%c2, %c0_15, %c0_16], %59 {strides = array<i32>} : memref<8x8x256xf32, #tpu.memory_space<vmem>>, vector<1x8x256xf32>,
    %60 = vector.extract_strided_slice %35 {offsets = [3, 0, 0], sizes = [1, 8, 256], strides = [1, 1, 1]} : vector<8x8x256xf32> to vector<1x8x256xf32>
    %61 = vector.shape_cast %60 : vector<1x8x256xf32> to vector<8x256xf32>
    %62 = vector.extract_strided_slice %35 {offsets = [4, 0, 0], sizes = [1, 8, 256], strides = [1, 1, 1]} : vector<8x8x256xf32> to vector<1x8x256xf32>
    %63 = vector.shape_cast %62 : vector<1x8x256xf32> to vector<8x256xf32>
    %64 = arith.select %18, %61, %63 : vector<8x256xi1>, vector<8x256xf32>
    %c3 = arith.constant 3 : index
    %c0_17 = arith.constant 0 : index
    %c0_18 = arith.constant 0 : index
    %65 = vector.load %arg10[%c3, %c0_17, %c0_18] : memref<8x8x256xf32, #tpu.memory_space<vmem>>, vector<1x8x256xf32>
    %66 = vector.shape_cast %65 : vector<1x8x256xf32> to vector<8x256xf32>
    %67 = vector.shape_cast %64 : vector<8x256xf32> to vector<1x8x256xf32>
    tpu.vector_store %arg10[%c3, %c0_17, %c0_18], %67 {strides = array<i32>} : memref<8x8x256xf32, #tpu.memory_space<vmem>>, vector<1x8x256xf32>,
    %68 = vector.extract_strided_slice %35 {offsets = [4, 0, 0], sizes = [1, 8, 256], strides = [1, 1, 1]} : vector<8x8x256xf32> to vector<1x8x256xf32>
    %69 = vector.shape_cast %68 : vector<1x8x256xf32> to vector<8x256xf32>
    %70 = vector.extract_strided_slice %35 {offsets = [3, 0, 0], sizes = [1, 8, 256], strides = [1, 1, 1]} : vector<8x8x256xf32> to vector<1x8x256xf32>
    %71 = vector.shape_cast %70 : vector<1x8x256xf32> to vector<8x256xf32>
    %72 = arith.select %18, %69, %71 : vector<8x256xi1>, vector<8x256xf32>
    %c4 = arith.constant 4 : index
    %c0_19 = arith.constant 0 : index
    %c0_20 = arith.constant 0 : index
    %73 = vector.load %arg10[%c4, %c0_19, %c0_20] : memref<8x8x256xf32, #tpu.memory_space<vmem>>, vector<1x8x256xf32>
    %74 = vector.shape_cast %73 : vector<1x8x256xf32> to vector<8x256xf32>
    %75 = vector.shape_cast %72 : vector<8x256xf32> to vector<1x8x256xf32>
    tpu.vector_store %arg10[%c4, %c0_19, %c0_20], %75 {strides = array<i32>} : memref<8x8x256xf32, #tpu.memory_space<vmem>>, vector<1x8x256xf32>,
    %76 = vector.extract_strided_slice %35 {offsets = [5, 0, 0], sizes = [1, 8, 256], strides = [1, 1, 1]} : vector<8x8x256xf32> to vector<1x8x256xf32>
    %77 = vector.shape_cast %76 : vector<1x8x256xf32> to vector<8x256xf32>
    %78 = vector.extract_strided_slice %35 {offsets = [2, 0, 0], sizes = [1, 8, 256], strides = [1, 1, 1]} : vector<8x8x256xf32> to vector<1x8x256xf32>
    %79 = vector.shape_cast %78 : vector<1x8x256xf32> to vector<8x256xf32>
    %80 = arith.select %18, %77, %79 : vector<8x256xi1>, vector<8x256xf32>
    %c5 = arith.constant 5 : index
    %c0_21 = arith.constant 0 : index
    %c0_22 = arith.constant 0 : index
    %81 = vector.load %arg10[%c5, %c0_21, %c0_22] : memref<8x8x256xf32, #tpu.memory_space<vmem>>, vector<1x8x256xf32>
    %82 = vector.shape_cast %81 : vector<1x8x256xf32> to vector<8x256xf32>
    %83 = vector.shape_cast %80 : vector<8x256xf32> to vector<1x8x256xf32>
    tpu.vector_store %arg10[%c5, %c0_21, %c0_22], %83 {strides = array<i32>} : memref<8x8x256xf32, #tpu.memory_space<vmem>>, vector<1x8x256xf32>,
    %84 = vector.extract_strided_slice %35 {offsets = [6, 0, 0], sizes = [1, 8, 256], strides = [1, 1, 1]} : vector<8x8x256xf32> to vector<1x8x256xf32>
    %85 = vector.shape_cast %84 : vector<1x8x256xf32> to vector<8x256xf32>
    %86 = vector.extract_strided_slice %35 {offsets = [1, 0, 0], sizes = [1, 8, 256], strides = [1, 1, 1]} : vector<8x8x256xf32> to vector<1x8x256xf32>
    %87 = vector.shape_cast %86 : vector<1x8x256xf32> to vector<8x256xf32>
    %88 = arith.select %18, %85, %87 : vector<8x256xi1>, vector<8x256xf32>
    %c6 = arith.constant 6 : index
    %c0_23 = arith.constant 0 : index
    %c0_24 = arith.constant 0 : index
    %89 = vector.load %arg10[%c6, %c0_23, %c0_24] : memref<8x8x256xf32, #tpu.memory_space<vmem>>, vector<1x8x256xf32>
    %90 = vector.shape_cast %89 : vector<1x8x256xf32> to vector<8x256xf32>
    %91 = vector.shape_cast %88 : vector<8x256xf32> to vector<1x8x256xf32>
    tpu.vector_store %arg10[%c6, %c0_23, %c0_24], %91 {strides = array<i32>} : memref<8x8x256xf32, #tpu.memory_space<vmem>>, vector<1x8x256xf32>,
    %92 = vector.extract_strided_slice %35 {offsets = [7, 0, 0], sizes = [1, 8, 256], strides = [1, 1, 1]} : vector<8x8x256xf32> to vector<1x8x256xf32>
    %93 = vector.shape_cast %92 : vector<1x8x256xf32> to vector<8x256xf32>
    %94 = vector.extract_strided_slice %35 {offsets = [0, 0, 0], sizes = [1, 8, 256], strides = [1, 1, 1]} : vector<8x8x256xf32> to vector<1x8x256xf32>
    %95 = vector.shape_cast %94 : vector<1x8x256xf32> to vector<8x256xf32>
    %96 = arith.select %18, %93, %95 : vector<8x256xi1>, vector<8x256xf32>
    %c7 = arith.constant 7 : index
    %c0_25 = arith.constant 0 : index
    %c0_26 = arith.constant 0 : index
    %97 = vector.load %arg10[%c7, %c0_25, %c0_26] : memref<8x8x256xf32, #tpu.memory_space<vmem>>, vector<1x8x256xf32>
    %98 = vector.shape_cast %97 : vector<1x8x256xf32> to vector<8x256xf32>
    %99 = vector.shape_cast %96 : vector<8x256xf32> to vector<1x8x256xf32>
    tpu.vector_store %arg10[%c7, %c0_25, %c0_26], %99 {strides = array<i32>} : memref<8x8x256xf32, #tpu.memory_space<vmem>>, vector<1x8x256xf32>,
    %c0_27 = arith.constant 0 : index
    %c0_28 = arith.constant 0 : index
    %100 = vector.load %arg2[%c0_27, %c0_28] : memref<64x256xbf16, #tpu.memory_space<vmem>>, vector<64x256xbf16>
    %cst_29 = arith.constant 0.000000e+00 : f32
    %101 = vector.broadcast %cst_29 : f32 to vector<8x64xf32>
    %cst_30 = arith.constant 0.000000e+00 : f32
    %102 = vector.broadcast %cst_30 : f32 to vector<8x64xf32>
    %c0_31 = arith.constant 0 : index
    %c0_32 = arith.constant 0 : index
    %c0_33 = arith.constant 0 : index
    %103 = vector.load %arg10[%c0_31, %c0_32, %c0_33] : memref<8x8x256xf32, #tpu.memory_space<vmem>>, vector<1x8x256xf32>
    %104 = vector.shape_cast %103 : vector<1x8x256xf32> to vector<8x256xf32>
    %105 = arith.truncf %101 : vector<8x64xf32> to vector<8x64xbf16>
    %cst_34 = arith.constant dense<0.000000e+00> : vector<8x256xf32>
    %106 = tpu.matmul %105, %100, %cst_34 {dimension_numbers = #tpu.dot_dimension_numbers<[1], [0], [0], [1], [0, 0, 1, 1], [], []>} : vector<8x64xbf16>, vector<64x256xbf16>, vector<8x256xf32> -> vector<8x256xf32>
    %107 = arith.addf %104, %106 : vector<8x256xf32>
    %108 = math.tanh %107 : vector<8x256xf32>
    %cst_35 = arith.constant 5.000000e-01 : f32
    %109 = vector.broadcast %cst_35 : f32 to vector<8x256xf32>
    %110 = arith.mulf %109, %108 : vector<8x256xf32>
    %cst_36 = arith.constant 5.000000e-01 : f32
    %111 = vector.broadcast %cst_36 : f32 to vector<8x256xf32>
    %112 = arith.addf %110, %111 : vector<8x256xf32>
    %113 = arith.select %23, %108, %112 : vector<8x256xi1>, vector<8x256xf32>
    %114 = vector.extract_strided_slice %113 {offsets = [0, 0], sizes = [8, 64], strides = [1, 1]} : vector<8x256xf32> to vector<8x64xf32>
    %115 = vector.extract_strided_slice %113 {offsets = [0, 64], sizes = [8, 64], strides = [1, 1]} : vector<8x256xf32> to vector<8x64xf32>
    %116 = vector.extract_strided_slice %113 {offsets = [0, 128], sizes = [8, 64], strides = [1, 1]} : vector<8x256xf32> to vector<8x64xf32>
    %117 = vector.extract_strided_slice %113 {offsets = [0, 192], sizes = [8, 64], strides = [1, 1]} : vector<8x256xf32> to vector<8x64xf32>
    %118 = arith.mulf %115, %102 : vector<8x64xf32>
    %119 = arith.mulf %114, %116 : vector<8x64xf32>
    %120 = arith.addf %118, %119 : vector<8x64xf32>
    %121 = math.tanh %120 : vector<8x64xf32>
    %122 = arith.mulf %117, %121 : vector<8x64xf32>
    %c0_37 = arith.constant 0 : index
    %c0_38 = arith.constant 0 : index
    %c0_39 = arith.constant 0 : index
    %123 = vector.load %arg11[%c0_37, %c0_38, %c0_39] : memref<8x8x64xf32, #tpu.memory_space<vmem>>, vector<1x8x64xf32>
    %124 = vector.shape_cast %123 : vector<1x8x64xf32> to vector<8x64xf32>
    %125 = vector.shape_cast %122 : vector<8x64xf32> to vector<1x8x64xf32>
    tpu.vector_store %arg11[%c0_37, %c0_38, %c0_39], %125 {strides = array<i32>} : memref<8x8x64xf32, #tpu.memory_space<vmem>>, vector<1x8x64xf32>,
    %c1_40 = arith.constant 1 : index
    %c0_41 = arith.constant 0 : index
    %c0_42 = arith.constant 0 : index
    %126 = vector.load %arg10[%c1_40, %c0_41, %c0_42] : memref<8x8x256xf32, #tpu.memory_space<vmem>>, vector<1x8x256xf32>
    %127 = vector.shape_cast %126 : vector<1x8x256xf32> to vector<8x256xf32>
    %128 = arith.truncf %122 : vector<8x64xf32> to vector<8x64xbf16>
    %cst_43 = arith.constant dense<0.000000e+00> : vector<8x256xf32>
    %129 = tpu.matmul %128, %100, %cst_43 {dimension_numbers = #tpu.dot_dimension_numbers<[1], [0], [0], [1], [0, 0, 1, 1], [], []>} : vector<8x64xbf16>, vector<64x256xbf16>, vector<8x256xf32> -> vector<8x256xf32>
    %130 = arith.addf %127, %129 : vector<8x256xf32>
    %131 = math.tanh %130 : vector<8x256xf32>
    %cst_44 = arith.constant 5.000000e-01 : f32
    %132 = vector.broadcast %cst_44 : f32 to vector<8x256xf32>
    %133 = arith.mulf %132, %131 : vector<8x256xf32>
    %cst_45 = arith.constant 5.000000e-01 : f32
    %134 = vector.broadcast %cst_45 : f32 to vector<8x256xf32>
    %135 = arith.addf %133, %134 : vector<8x256xf32>
    %136 = arith.select %23, %131, %135 : vector<8x256xi1>, vector<8x256xf32>
    %137 = vector.extract_strided_slice %136 {offsets = [0, 0], sizes = [8, 64], strides = [1, 1]} : vector<8x256xf32> to vector<8x64xf32>
    %138 = vector.extract_strided_slice %136 {offsets = [0, 64], sizes = [8, 64], strides = [1, 1]} : vector<8x256xf32> to vector<8x64xf32>
    %139 = vector.extract_strided_slice %136 {offsets = [0, 128], sizes = [8, 64], strides = [1, 1]} : vector<8x256xf32> to vector<8x64xf32>
    %140 = vector.extract_strided_slice %136 {offsets = [0, 192], sizes = [8, 64], strides = [1, 1]} : vector<8x256xf32> to vector<8x64xf32>
    %141 = arith.mulf %138, %120 : vector<8x64xf32>
    %142 = arith.mulf %137, %139 : vector<8x64xf32>
    %143 = arith.addf %141, %142 : vector<8x64xf32>
    %144 = math.tanh %143 : vector<8x64xf32>
    %145 = arith.mulf %140, %144 : vector<8x64xf32>
    %c1_46 = arith.constant 1 : index
    %c0_47 = arith.constant 0 : index
    %c0_48 = arith.constant 0 : index
    %146 = vector.load %arg11[%c1_46, %c0_47, %c0_48] : memref<8x8x64xf32, #tpu.memory_space<vmem>>, vector<1x8x64xf32>
    %147 = vector.shape_cast %146 : vector<1x8x64xf32> to vector<8x64xf32>
    %148 = vector.shape_cast %145 : vector<8x64xf32> to vector<1x8x64xf32>
    tpu.vector_store %arg11[%c1_46, %c0_47, %c0_48], %148 {strides = array<i32>} : memref<8x8x64xf32, #tpu.memory_space<vmem>>, vector<1x8x64xf32>,
    %c2_49 = arith.constant 2 : index
    %c0_50 = arith.constant 0 : index
    %c0_51 = arith.constant 0 : index
    %149 = vector.load %arg10[%c2_49, %c0_50, %c0_51] : memref<8x8x256xf32, #tpu.memory_space<vmem>>, vector<1x8x256xf32>
    %150 = vector.shape_cast %149 : vector<1x8x256xf32> to vector<8x256xf32>
    %151 = arith.truncf %145 : vector<8x64xf32> to vector<8x64xbf16>
    %cst_52 = arith.constant dense<0.000000e+00> : vector<8x256xf32>
    %152 = tpu.matmul %151, %100, %cst_52 {dimension_numbers = #tpu.dot_dimension_numbers<[1], [0], [0], [1], [0, 0, 1, 1], [], []>} : vector<8x64xbf16>, vector<64x256xbf16>, vector<8x256xf32> -> vector<8x256xf32>
    %153 = arith.addf %150, %152 : vector<8x256xf32>
    %154 = math.tanh %153 : vector<8x256xf32>
    %cst_53 = arith.constant 5.000000e-01 : f32
    %155 = vector.broadcast %cst_53 : f32 to vector<8x256xf32>
    %156 = arith.mulf %155, %154 : vector<8x256xf32>
    %cst_54 = arith.constant 5.000000e-01 : f32
    %157 = vector.broadcast %cst_54 : f32 to vector<8x256xf32>
    %158 = arith.addf %156, %157 : vector<8x256xf32>
    %159 = arith.select %23, %154, %158 : vector<8x256xi1>, vector<8x256xf32>
    %160 = vector.extract_strided_slice %159 {offsets = [0, 0], sizes = [8, 64], strides = [1, 1]} : vector<8x256xf32> to vector<8x64xf32>
    %161 = vector.extract_strided_slice %159 {offsets = [0, 64], sizes = [8, 64], strides = [1, 1]} : vector<8x256xf32> to vector<8x64xf32>
    %162 = vector.extract_strided_slice %159 {offsets = [0, 128], sizes = [8, 64], strides = [1, 1]} : vector<8x256xf32> to vector<8x64xf32>
    %163 = vector.extract_strided_slice %159 {offsets = [0, 192], sizes = [8, 64], strides = [1, 1]} : vector<8x256xf32> to vector<8x64xf32>
    %164 = arith.mulf %161, %143 : vector<8x64xf32>
    %165 = arith.mulf %160, %162 : vector<8x64xf32>
    %166 = arith.addf %164, %165 : vector<8x64xf32>
    %167 = math.tanh %166 : vector<8x64xf32>
    %168 = arith.mulf %163, %167 : vector<8x64xf32>
    %c2_55 = arith.constant 2 : index
    %c0_56 = arith.constant 0 : index
    %c0_57 = arith.constant 0 : index
    %169 = vector.load %arg11[%c2_55, %c0_56, %c0_57] : memref<8x8x64xf32, #tpu.memory_space<vmem>>, vector<1x8x64xf32>
    %170 = vector.shape_cast %169 : vector<1x8x64xf32> to vector<8x64xf32>
    %171 = vector.shape_cast %168 : vector<8x64xf32> to vector<1x8x64xf32>
    tpu.vector_store %arg11[%c2_55, %c0_56, %c0_57], %171 {strides = array<i32>} : memref<8x8x64xf32, #tpu.memory_space<vmem>>, vector<1x8x64xf32>,
    %c3_58 = arith.constant 3 : index
    %c0_59 = arith.constant 0 : index
    %c0_60 = arith.constant 0 : index
    %172 = vector.load %arg10[%c3_58, %c0_59, %c0_60] : memref<8x8x256xf32, #tpu.memory_space<vmem>>, vector<1x8x256xf32>
    %173 = vector.shape_cast %172 : vector<1x8x256xf32> to vector<8x256xf32>
    %174 = arith.truncf %168 : vector<8x64xf32> to vector<8x64xbf16>
    %cst_61 = arith.constant dense<0.000000e+00> : vector<8x256xf32>
    %175 = tpu.matmul %174, %100, %cst_61 {dimension_numbers = #tpu.dot_dimension_numbers<[1], [0], [0], [1], [0, 0, 1, 1], [], []>} : vector<8x64xbf16>, vector<64x256xbf16>, vector<8x256xf32> -> vector<8x256xf32>
    %176 = arith.addf %173, %175 : vector<8x256xf32>
    %177 = math.tanh %176 : vector<8x256xf32>
    %cst_62 = arith.constant 5.000000e-01 : f32
    %178 = vector.broadcast %cst_62 : f32 to vector<8x256xf32>
    %179 = arith.mulf %178, %177 : vector<8x256xf32>
    %cst_63 = arith.constant 5.000000e-01 : f32
    %180 = vector.broadcast %cst_63 : f32 to vector<8x256xf32>
    %181 = arith.addf %179, %180 : vector<8x256xf32>
    %182 = arith.select %23, %177, %181 : vector<8x256xi1>, vector<8x256xf32>
    %183 = vector.extract_strided_slice %182 {offsets = [0, 0], sizes = [8, 64], strides = [1, 1]} : vector<8x256xf32> to vector<8x64xf32>
    %184 = vector.extract_strided_slice %182 {offsets = [0, 64], sizes = [8, 64], strides = [1, 1]} : vector<8x256xf32> to vector<8x64xf32>
    %185 = vector.extract_strided_slice %182 {offsets = [0, 128], sizes = [8, 64], strides = [1, 1]} : vector<8x256xf32> to vector<8x64xf32>
    %186 = vector.extract_strided_slice %182 {offsets = [0, 192], sizes = [8, 64], strides = [1, 1]} : vector<8x256xf32> to vector<8x64xf32>
    %187 = arith.mulf %184, %166 : vector<8x64xf32>
    %188 = arith.mulf %183, %185 : vector<8x64xf32>
    %189 = arith.addf %187, %188 : vector<8x64xf32>
    %190 = math.tanh %189 : vector<8x64xf32>
    %191 = arith.mulf %186, %190 : vector<8x64xf32>
    %c3_64 = arith.constant 3 : index
    %c0_65 = arith.constant 0 : index
    %c0_66 = arith.constant 0 : index
    %192 = vector.load %arg11[%c3_64, %c0_65, %c0_66] : memref<8x8x64xf32, #tpu.memory_space<vmem>>, vector<1x8x64xf32>
    %193 = vector.shape_cast %192 : vector<1x8x64xf32> to vector<8x64xf32>
    %194 = vector.shape_cast %191 : vector<8x64xf32> to vector<1x8x64xf32>
    tpu.vector_store %arg11[%c3_64, %c0_65, %c0_66], %194 {strides = array<i32>} : memref<8x8x64xf32, #tpu.memory_space<vmem>>, vector<1x8x64xf32>,
    %c4_67 = arith.constant 4 : index
    %c0_68 = arith.constant 0 : index
    %c0_69 = arith.constant 0 : index
    %195 = vector.load %arg10[%c4_67, %c0_68, %c0_69] : memref<8x8x256xf32, #tpu.memory_space<vmem>>, vector<1x8x256xf32>
    %196 = vector.shape_cast %195 : vector<1x8x256xf32> to vector<8x256xf32>
    %197 = arith.truncf %191 : vector<8x64xf32> to vector<8x64xbf16>
    %cst_70 = arith.constant dense<0.000000e+00> : vector<8x256xf32>
    %198 = tpu.matmul %197, %100, %cst_70 {dimension_numbers = #tpu.dot_dimension_numbers<[1], [0], [0], [1], [0, 0, 1, 1], [], []>} : vector<8x64xbf16>, vector<64x256xbf16>, vector<8x256xf32> -> vector<8x256xf32>
    %199 = arith.addf %196, %198 : vector<8x256xf32>
    %200 = math.tanh %199 : vector<8x256xf32>
    %cst_71 = arith.constant 5.000000e-01 : f32
    %201 = vector.broadcast %cst_71 : f32 to vector<8x256xf32>
    %202 = arith.mulf %201, %200 : vector<8x256xf32>
    %cst_72 = arith.constant 5.000000e-01 : f32
    %203 = vector.broadcast %cst_72 : f32 to vector<8x256xf32>
    %204 = arith.addf %202, %203 : vector<8x256xf32>
    %205 = arith.select %23, %200, %204 : vector<8x256xi1>, vector<8x256xf32>
    %206 = vector.extract_strided_slice %205 {offsets = [0, 0], sizes = [8, 64], strides = [1, 1]} : vector<8x256xf32> to vector<8x64xf32>
    %207 = vector.extract_strided_slice %205 {offsets = [0, 64], sizes = [8, 64], strides = [1, 1]} : vector<8x256xf32> to vector<8x64xf32>
    %208 = vector.extract_strided_slice %205 {offsets = [0, 128], sizes = [8, 64], strides = [1, 1]} : vector<8x256xf32> to vector<8x64xf32>
    %209 = vector.extract_strided_slice %205 {offsets = [0, 192], sizes = [8, 64], strides = [1, 1]} : vector<8x256xf32> to vector<8x64xf32>
    %210 = arith.mulf %207, %189 : vector<8x64xf32>
    %211 = arith.mulf %206, %208 : vector<8x64xf32>
    %212 = arith.addf %210, %211 : vector<8x64xf32>
    %213 = math.tanh %212 : vector<8x64xf32>
    %214 = arith.mulf %209, %213 : vector<8x64xf32>
    %c4_73 = arith.constant 4 : index
    %c0_74 = arith.constant 0 : index
    %c0_75 = arith.constant 0 : index
    %215 = vector.load %arg11[%c4_73, %c0_74, %c0_75] : memref<8x8x64xf32, #tpu.memory_space<vmem>>, vector<1x8x64xf32>
    %216 = vector.shape_cast %215 : vector<1x8x64xf32> to vector<8x64xf32>
    %217 = vector.shape_cast %214 : vector<8x64xf32> to vector<1x8x64xf32>
    tpu.vector_store %arg11[%c4_73, %c0_74, %c0_75], %217 {strides = array<i32>} : memref<8x8x64xf32, #tpu.memory_space<vmem>>, vector<1x8x64xf32>,
    %c5_76 = arith.constant 5 : index
    %c0_77 = arith.constant 0 : index
    %c0_78 = arith.constant 0 : index
    %218 = vector.load %arg10[%c5_76, %c0_77, %c0_78] : memref<8x8x256xf32, #tpu.memory_space<vmem>>, vector<1x8x256xf32>
    %219 = vector.shape_cast %218 : vector<1x8x256xf32> to vector<8x256xf32>
    %220 = arith.truncf %214 : vector<8x64xf32> to vector<8x64xbf16>
    %cst_79 = arith.constant dense<0.000000e+00> : vector<8x256xf32>
    %221 = tpu.matmul %220, %100, %cst_79 {dimension_numbers = #tpu.dot_dimension_numbers<[1], [0], [0], [1], [0, 0, 1, 1], [], []>} : vector<8x64xbf16>, vector<64x256xbf16>, vector<8x256xf32> -> vector<8x256xf32>
    %222 = arith.addf %219, %221 : vector<8x256xf32>
    %223 = math.tanh %222 : vector<8x256xf32>
    %cst_80 = arith.constant 5.000000e-01 : f32
    %224 = vector.broadcast %cst_80 : f32 to vector<8x256xf32>
    %225 = arith.mulf %224, %223 : vector<8x256xf32>
    %cst_81 = arith.constant 5.000000e-01 : f32
    %226 = vector.broadcast %cst_81 : f32 to vector<8x256xf32>
    %227 = arith.addf %225, %226 : vector<8x256xf32>
    %228 = arith.select %23, %223, %227 : vector<8x256xi1>, vector<8x256xf32>
    %229 = vector.extract_strided_slice %228 {offsets = [0, 0], sizes = [8, 64], strides = [1, 1]} : vector<8x256xf32> to vector<8x64xf32>
    %230 = vector.extract_strided_slice %228 {offsets = [0, 64], sizes = [8, 64], strides = [1, 1]} : vector<8x256xf32> to vector<8x64xf32>
    %231 = vector.extract_strided_slice %228 {offsets = [0, 128], sizes = [8, 64], strides = [1, 1]} : vector<8x256xf32> to vector<8x64xf32>
    %232 = vector.extract_strided_slice %228 {offsets = [0, 192], sizes = [8, 64], strides = [1, 1]} : vector<8x256xf32> to vector<8x64xf32>
    %233 = arith.mulf %230, %212 : vector<8x64xf32>
    %234 = arith.mulf %229, %231 : vector<8x64xf32>
    %235 = arith.addf %233, %234 : vector<8x64xf32>
    %236 = math.tanh %235 : vector<8x64xf32>
    %237 = arith.mulf %232, %236 : vector<8x64xf32>
    %c5_82 = arith.constant 5 : index
    %c0_83 = arith.constant 0 : index
    %c0_84 = arith.constant 0 : index
    %238 = vector.load %arg11[%c5_82, %c0_83, %c0_84] : memref<8x8x64xf32, #tpu.memory_space<vmem>>, vector<1x8x64xf32>
    %239 = vector.shape_cast %238 : vector<1x8x64xf32> to vector<8x64xf32>
    %240 = vector.shape_cast %237 : vector<8x64xf32> to vector<1x8x64xf32>
    tpu.vector_store %arg11[%c5_82, %c0_83, %c0_84], %240 {strides = array<i32>} : memref<8x8x64xf32, #tpu.memory_space<vmem>>, vector<1x8x64xf32>,
    %c6_85 = arith.constant 6 : index
    %c0_86 = arith.constant 0 : index
    %c0_87 = arith.constant 0 : index
    %241 = vector.load %arg10[%c6_85, %c0_86, %c0_87] : memref<8x8x256xf32, #tpu.memory_space<vmem>>, vector<1x8x256xf32>
    %242 = vector.shape_cast %241 : vector<1x8x256xf32> to vector<8x256xf32>
    %243 = arith.truncf %237 : vector<8x64xf32> to vector<8x64xbf16>
    %cst_88 = arith.constant dense<0.000000e+00> : vector<8x256xf32>
    %244 = tpu.matmul %243, %100, %cst_88 {dimension_numbers = #tpu.dot_dimension_numbers<[1], [0], [0], [1], [0, 0, 1, 1], [], []>} : vector<8x64xbf16>, vector<64x256xbf16>, vector<8x256xf32> -> vector<8x256xf32>
    %245 = arith.addf %242, %244 : vector<8x256xf32>
    %246 = math.tanh %245 : vector<8x256xf32>
    %cst_89 = arith.constant 5.000000e-01 : f32
    %247 = vector.broadcast %cst_89 : f32 to vector<8x256xf32>
    %248 = arith.mulf %247, %246 : vector<8x256xf32>
    %cst_90 = arith.constant 5.000000e-01 : f32
    %249 = vector.broadcast %cst_90 : f32 to vector<8x256xf32>
    %250 = arith.addf %248, %249 : vector<8x256xf32>
    %251 = arith.select %23, %246, %250 : vector<8x256xi1>, vector<8x256xf32>
    %252 = vector.extract_strided_slice %251 {offsets = [0, 0], sizes = [8, 64], strides = [1, 1]} : vector<8x256xf32> to vector<8x64xf32>
    %253 = vector.extract_strided_slice %251 {offsets = [0, 64], sizes = [8, 64], strides = [1, 1]} : vector<8x256xf32> to vector<8x64xf32>
    %254 = vector.extract_strided_slice %251 {offsets = [0, 128], sizes = [8, 64], strides = [1, 1]} : vector<8x256xf32> to vector<8x64xf32>
    %255 = vector.extract_strided_slice %251 {offsets = [0, 192], sizes = [8, 64], strides = [1, 1]} : vector<8x256xf32> to vector<8x64xf32>
    %256 = arith.mulf %253, %235 : vector<8x64xf32>
    %257 = arith.mulf %252, %254 : vector<8x64xf32>
    %258 = arith.addf %256, %257 : vector<8x64xf32>
    %259 = math.tanh %258 : vector<8x64xf32>
    %260 = arith.mulf %255, %259 : vector<8x64xf32>
    %c6_91 = arith.constant 6 : index
    %c0_92 = arith.constant 0 : index
    %c0_93 = arith.constant 0 : index
    %261 = vector.load %arg11[%c6_91, %c0_92, %c0_93] : memref<8x8x64xf32, #tpu.memory_space<vmem>>, vector<1x8x64xf32>
    %262 = vector.shape_cast %261 : vector<1x8x64xf32> to vector<8x64xf32>
    %263 = vector.shape_cast %260 : vector<8x64xf32> to vector<1x8x64xf32>
    tpu.vector_store %arg11[%c6_91, %c0_92, %c0_93], %263 {strides = array<i32>} : memref<8x8x64xf32, #tpu.memory_space<vmem>>, vector<1x8x64xf32>,
    %c7_94 = arith.constant 7 : index
    %c0_95 = arith.constant 0 : index
    %c0_96 = arith.constant 0 : index
    %264 = vector.load %arg10[%c7_94, %c0_95, %c0_96] : memref<8x8x256xf32, #tpu.memory_space<vmem>>, vector<1x8x256xf32>
    %265 = vector.shape_cast %264 : vector<1x8x256xf32> to vector<8x256xf32>
    %266 = arith.truncf %260 : vector<8x64xf32> to vector<8x64xbf16>
    %cst_97 = arith.constant dense<0.000000e+00> : vector<8x256xf32>
    %267 = tpu.matmul %266, %100, %cst_97 {dimension_numbers = #tpu.dot_dimension_numbers<[1], [0], [0], [1], [0, 0, 1, 1], [], []>} : vector<8x64xbf16>, vector<64x256xbf16>, vector<8x256xf32> -> vector<8x256xf32>
    %268 = arith.addf %265, %267 : vector<8x256xf32>
    %269 = math.tanh %268 : vector<8x256xf32>
    %cst_98 = arith.constant 5.000000e-01 : f32
    %270 = vector.broadcast %cst_98 : f32 to vector<8x256xf32>
    %271 = arith.mulf %270, %269 : vector<8x256xf32>
    %cst_99 = arith.constant 5.000000e-01 : f32
    %272 = vector.broadcast %cst_99 : f32 to vector<8x256xf32>
    %273 = arith.addf %271, %272 : vector<8x256xf32>
    %274 = arith.select %23, %269, %273 : vector<8x256xi1>, vector<8x256xf32>
    %275 = vector.extract_strided_slice %274 {offsets = [0, 0], sizes = [8, 64], strides = [1, 1]} : vector<8x256xf32> to vector<8x64xf32>
    %276 = vector.extract_strided_slice %274 {offsets = [0, 64], sizes = [8, 64], strides = [1, 1]} : vector<8x256xf32> to vector<8x64xf32>
    %277 = vector.extract_strided_slice %274 {offsets = [0, 128], sizes = [8, 64], strides = [1, 1]} : vector<8x256xf32> to vector<8x64xf32>
    %278 = vector.extract_strided_slice %274 {offsets = [0, 192], sizes = [8, 64], strides = [1, 1]} : vector<8x256xf32> to vector<8x64xf32>
    %279 = arith.mulf %276, %258 : vector<8x64xf32>
    %280 = arith.mulf %275, %277 : vector<8x64xf32>
    %281 = arith.addf %279, %280 : vector<8x64xf32>
    %282 = math.tanh %281 : vector<8x64xf32>
    %283 = arith.mulf %278, %282 : vector<8x64xf32>
    %c7_100 = arith.constant 7 : index
    %c0_101 = arith.constant 0 : index
    %c0_102 = arith.constant 0 : index
    %284 = vector.load %arg11[%c7_100, %c0_101, %c0_102] : memref<8x8x64xf32, #tpu.memory_space<vmem>>, vector<1x8x64xf32>
    %285 = vector.shape_cast %284 : vector<1x8x64xf32> to vector<8x64xf32>
    %286 = vector.shape_cast %283 : vector<8x64xf32> to vector<1x8x64xf32>
    tpu.vector_store %arg11[%c7_100, %c0_101, %c0_102], %286 {strides = array<i32>} : memref<8x8x64xf32, #tpu.memory_space<vmem>>, vector<1x8x64xf32>,
    %c0_103 = arith.constant 0 : index
    %c0_104 = arith.constant 0 : index
    %c0_105 = arith.constant 0 : index
    %287 = vector.load %arg11[%c0_103, %c0_104, %c0_105] : memref<8x8x64xf32, #tpu.memory_space<vmem>>, vector<8x8x64xf32>
    %288 = vector.extract_strided_slice %287 {offsets = [0, 0, 0], sizes = [1, 8, 64], strides = [1, 1, 1]} : vector<8x8x64xf32> to vector<1x8x64xf32>
    %289 = vector.shape_cast %288 : vector<1x8x64xf32> to vector<8x64xf32>
    %290 = vector.extract_strided_slice %287 {offsets = [7, 0, 0], sizes = [1, 8, 64], strides = [1, 1, 1]} : vector<8x8x64xf32> to vector<1x8x64xf32>
    %291 = vector.shape_cast %290 : vector<1x8x64xf32> to vector<8x64xf32>
    %292 = arith.select %26, %289, %291 : vector<8x64xi1>, vector<8x64xf32>
    %c0_106 = arith.constant 0 : index
    %c0_107 = arith.constant 0 : index
    %c0_108 = arith.constant 0 : index
    %293 = vector.load %arg11[%c0_106, %c0_107, %c0_108] : memref<8x8x64xf32, #tpu.memory_space<vmem>>, vector<1x8x64xf32>
    %294 = vector.shape_cast %293 : vector<1x8x64xf32> to vector<8x64xf32>
    %295 = vector.shape_cast %292 : vector<8x64xf32> to vector<1x8x64xf32>
    tpu.vector_store %arg11[%c0_106, %c0_107, %c0_108], %295 {strides = array<i32>} : memref<8x8x64xf32, #tpu.memory_space<vmem>>, vector<1x8x64xf32>,
    %296 = vector.extract_strided_slice %287 {offsets = [1, 0, 0], sizes = [1, 8, 64], strides = [1, 1, 1]} : vector<8x8x64xf32> to vector<1x8x64xf32>
    %297 = vector.shape_cast %296 : vector<1x8x64xf32> to vector<8x64xf32>
    %298 = vector.extract_strided_slice %287 {offsets = [6, 0, 0], sizes = [1, 8, 64], strides = [1, 1, 1]} : vector<8x8x64xf32> to vector<1x8x64xf32>
    %299 = vector.shape_cast %298 : vector<1x8x64xf32> to vector<8x64xf32>
    %300 = arith.select %26, %297, %299 : vector<8x64xi1>, vector<8x64xf32>
    %c1_109 = arith.constant 1 : index
    %c0_110 = arith.constant 0 : index
    %c0_111 = arith.constant 0 : index
    %301 = vector.load %arg11[%c1_109, %c0_110, %c0_111] : memref<8x8x64xf32, #tpu.memory_space<vmem>>, vector<1x8x64xf32>
    %302 = vector.shape_cast %301 : vector<1x8x64xf32> to vector<8x64xf32>
    %303 = vector.shape_cast %300 : vector<8x64xf32> to vector<1x8x64xf32>
    tpu.vector_store %arg11[%c1_109, %c0_110, %c0_111], %303 {strides = array<i32>} : memref<8x8x64xf32, #tpu.memory_space<vmem>>, vector<1x8x64xf32>,
    %304 = vector.extract_strided_slice %287 {offsets = [2, 0, 0], sizes = [1, 8, 64], strides = [1, 1, 1]} : vector<8x8x64xf32> to vector<1x8x64xf32>
    %305 = vector.shape_cast %304 : vector<1x8x64xf32> to vector<8x64xf32>
    %306 = vector.extract_strided_slice %287 {offsets = [5, 0, 0], sizes = [1, 8, 64], strides = [1, 1, 1]} : vector<8x8x64xf32> to vector<1x8x64xf32>
    %307 = vector.shape_cast %306 : vector<1x8x64xf32> to vector<8x64xf32>
    %308 = arith.select %26, %305, %307 : vector<8x64xi1>, vector<8x64xf32>
    %c2_112 = arith.constant 2 : index
    %c0_113 = arith.constant 0 : index
    %c0_114 = arith.constant 0 : index
    %309 = vector.load %arg11[%c2_112, %c0_113, %c0_114] : memref<8x8x64xf32, #tpu.memory_space<vmem>>, vector<1x8x64xf32>
    %310 = vector.shape_cast %309 : vector<1x8x64xf32> to vector<8x64xf32>
    %311 = vector.shape_cast %308 : vector<8x64xf32> to vector<1x8x64xf32>
    tpu.vector_store %arg11[%c2_112, %c0_113, %c0_114], %311 {strides = array<i32>} : memref<8x8x64xf32, #tpu.memory_space<vmem>>, vector<1x8x64xf32>,
    %312 = vector.extract_strided_slice %287 {offsets = [3, 0, 0], sizes = [1, 8, 64], strides = [1, 1, 1]} : vector<8x8x64xf32> to vector<1x8x64xf32>
    %313 = vector.shape_cast %312 : vector<1x8x64xf32> to vector<8x64xf32>
    %314 = vector.extract_strided_slice %287 {offsets = [4, 0, 0], sizes = [1, 8, 64], strides = [1, 1, 1]} : vector<8x8x64xf32> to vector<1x8x64xf32>
    %315 = vector.shape_cast %314 : vector<1x8x64xf32> to vector<8x64xf32>
    %316 = arith.select %26, %313, %315 : vector<8x64xi1>, vector<8x64xf32>
    %c3_115 = arith.constant 3 : index
    %c0_116 = arith.constant 0 : index
    %c0_117 = arith.constant 0 : index
    %317 = vector.load %arg11[%c3_115, %c0_116, %c0_117] : memref<8x8x64xf32, #tpu.memory_space<vmem>>, vector<1x8x64xf32>
    %318 = vector.shape_cast %317 : vector<1x8x64xf32> to vector<8x64xf32>
    %319 = vector.shape_cast %316 : vector<8x64xf32> to vector<1x8x64xf32>
    tpu.vector_store %arg11[%c3_115, %c0_116, %c0_117], %319 {strides = array<i32>} : memref<8x8x64xf32, #tpu.memory_space<vmem>>, vector<1x8x64xf32>,
    %320 = vector.extract_strided_slice %287 {offsets = [4, 0, 0], sizes = [1, 8, 64], strides = [1, 1, 1]} : vector<8x8x64xf32> to vector<1x8x64xf32>
    %321 = vector.shape_cast %320 : vector<1x8x64xf32> to vector<8x64xf32>
    %322 = vector.extract_strided_slice %287 {offsets = [3, 0, 0], sizes = [1, 8, 64], strides = [1, 1, 1]} : vector<8x8x64xf32> to vector<1x8x64xf32>
    %323 = vector.shape_cast %322 : vector<1x8x64xf32> to vector<8x64xf32>
    %324 = arith.select %26, %321, %323 : vector<8x64xi1>, vector<8x64xf32>
    %c4_118 = arith.constant 4 : index
    %c0_119 = arith.constant 0 : index
    %c0_120 = arith.constant 0 : index
    %325 = vector.load %arg11[%c4_118, %c0_119, %c0_120] : memref<8x8x64xf32, #tpu.memory_space<vmem>>, vector<1x8x64xf32>
    %326 = vector.shape_cast %325 : vector<1x8x64xf32> to vector<8x64xf32>
    %327 = vector.shape_cast %324 : vector<8x64xf32> to vector<1x8x64xf32>
    tpu.vector_store %arg11[%c4_118, %c0_119, %c0_120], %327 {strides = array<i32>} : memref<8x8x64xf32, #tpu.memory_space<vmem>>, vector<1x8x64xf32>,
    %328 = vector.extract_strided_slice %287 {offsets = [5, 0, 0], sizes = [1, 8, 64], strides = [1, 1, 1]} : vector<8x8x64xf32> to vector<1x8x64xf32>
    %329 = vector.shape_cast %328 : vector<1x8x64xf32> to vector<8x64xf32>
    %330 = vector.extract_strided_slice %287 {offsets = [2, 0, 0], sizes = [1, 8, 64], strides = [1, 1, 1]} : vector<8x8x64xf32> to vector<1x8x64xf32>
    %331 = vector.shape_cast %330 : vector<1x8x64xf32> to vector<8x64xf32>
    %332 = arith.select %26, %329, %331 : vector<8x64xi1>, vector<8x64xf32>
    %c5_121 = arith.constant 5 : index
    %c0_122 = arith.constant 0 : index
    %c0_123 = arith.constant 0 : index
    %333 = vector.load %arg11[%c5_121, %c0_122, %c0_123] : memref<8x8x64xf32, #tpu.memory_space<vmem>>, vector<1x8x64xf32>
    %334 = vector.shape_cast %333 : vector<1x8x64xf32> to vector<8x64xf32>
    %335 = vector.shape_cast %332 : vector<8x64xf32> to vector<1x8x64xf32>
    tpu.vector_store %arg11[%c5_121, %c0_122, %c0_123], %335 {strides = array<i32>} : memref<8x8x64xf32, #tpu.memory_space<vmem>>, vector<1x8x64xf32>,
    %336 = vector.extract_strided_slice %287 {offsets = [6, 0, 0], sizes = [1, 8, 64], strides = [1, 1, 1]} : vector<8x8x64xf32> to vector<1x8x64xf32>
    %337 = vector.shape_cast %336 : vector<1x8x64xf32> to vector<8x64xf32>
    %338 = vector.extract_strided_slice %287 {offsets = [1, 0, 0], sizes = [1, 8, 64], strides = [1, 1, 1]} : vector<8x8x64xf32> to vector<1x8x64xf32>
    %339 = vector.shape_cast %338 : vector<1x8x64xf32> to vector<8x64xf32>
    %340 = arith.select %26, %337, %339 : vector<8x64xi1>, vector<8x64xf32>
    %c6_124 = arith.constant 6 : index
    %c0_125 = arith.constant 0 : index
    %c0_126 = arith.constant 0 : index
    %341 = vector.load %arg11[%c6_124, %c0_125, %c0_126] : memref<8x8x64xf32, #tpu.memory_space<vmem>>, vector<1x8x64xf32>
    %342 = vector.shape_cast %341 : vector<1x8x64xf32> to vector<8x64xf32>
    %343 = vector.shape_cast %340 : vector<8x64xf32> to vector<1x8x64xf32>
    tpu.vector_store %arg11[%c6_124, %c0_125, %c0_126], %343 {strides = array<i32>} : memref<8x8x64xf32, #tpu.memory_space<vmem>>, vector<1x8x64xf32>,
    %344 = vector.extract_strided_slice %287 {offsets = [7, 0, 0], sizes = [1, 8, 64], strides = [1, 1, 1]} : vector<8x8x64xf32> to vector<1x8x64xf32>
    %345 = vector.shape_cast %344 : vector<1x8x64xf32> to vector<8x64xf32>
    %346 = vector.extract_strided_slice %287 {offsets = [0, 0, 0], sizes = [1, 8, 64], strides = [1, 1, 1]} : vector<8x8x64xf32> to vector<1x8x64xf32>
    %347 = vector.shape_cast %346 : vector<1x8x64xf32> to vector<8x64xf32>
    %348 = arith.select %26, %345, %347 : vector<8x64xi1>, vector<8x64xf32>
    %c7_127 = arith.constant 7 : index
    %c0_128 = arith.constant 0 : index
    %c0_129 = arith.constant 0 : index
    %349 = vector.load %arg11[%c7_127, %c0_128, %c0_129] : memref<8x8x64xf32, #tpu.memory_space<vmem>>, vector<1x8x64xf32>
    %350 = vector.shape_cast %349 : vector<1x8x64xf32> to vector<8x64xf32>
    %351 = vector.shape_cast %348 : vector<8x64xf32> to vector<1x8x64xf32>
    tpu.vector_store %arg11[%c7_127, %c0_128, %c0_129], %351 {strides = array<i32>} : memref<8x8x64xf32, #tpu.memory_space<vmem>>, vector<1x8x64xf32>,
    %c0_130 = arith.constant 0 : index
    %c0_131 = arith.constant 0 : index
    %c0_132 = arith.constant 0 : index
    %352 = vector.load %arg11[%c0_130, %c0_131, %c0_132] : memref<8x8x64xf32, #tpu.memory_space<vmem>>, vector<8x8x64xf32>
    %353 = vector.shape_cast %352 : vector<8x8x64xf32> to vector<64x64xf32>
    %354 = arith.truncf %353 : vector<64x64xf32> to vector<64x64xbf16>
    %c0_133 = arith.constant 0 : index
    %c0_134 = arith.constant 0 : index
    %355 = vector.load %arg4[%c0_133, %c0_134] : memref<64x256xbf16, #tpu.memory_space<vmem>>, vector<64x256xbf16>
    %cst_135 = arith.constant dense<0.000000e+00> : vector<64x256xf32>
    %356 = tpu.matmul %354, %355, %cst_135 {dimension_numbers = #tpu.dot_dimension_numbers<[1], [0], [0], [1], [0, 0, 1, 1], [], []>} : vector<64x64xbf16>, vector<64x256xbf16>, vector<64x256xf32> -> vector<64x256xf32>
    %c0_136 = arith.constant 0 : index
    %c0_137 = arith.constant 0 : index
    %357 = vector.load %arg6[%c0_136, %c0_137] : memref<1x256xf32, #tpu.memory_space<vmem>>, vector<1x256xf32>
    %358 = vector.broadcast %357 : vector<1x256xf32> to vector<64x256xf32>
    %359 = arith.addf %356, %358 : vector<64x256xf32>
    %360 = vector.shape_cast %359 : vector<64x256xf32> to vector<8x8x256xf32>
    %361 = vector.extract_strided_slice %360 {offsets = [0, 0, 0], sizes = [1, 8, 256], strides = [1, 1, 1]} : vector<8x8x256xf32> to vector<1x8x256xf32>
    %362 = vector.shape_cast %361 : vector<1x8x256xf32> to vector<8x256xf32>
    %363 = vector.extract_strided_slice %360 {offsets = [7, 0, 0], sizes = [1, 8, 256], strides = [1, 1, 1]} : vector<8x8x256xf32> to vector<1x8x256xf32>
    %364 = vector.shape_cast %363 : vector<1x8x256xf32> to vector<8x256xf32>
    %365 = arith.select %18, %362, %364 : vector<8x256xi1>, vector<8x256xf32>
    %c0_138 = arith.constant 0 : index
    %c0_139 = arith.constant 0 : index
    %c0_140 = arith.constant 0 : index
    %366 = vector.load %arg10[%c0_138, %c0_139, %c0_140] : memref<8x8x256xf32, #tpu.memory_space<vmem>>, vector<1x8x256xf32>
    %367 = vector.shape_cast %366 : vector<1x8x256xf32> to vector<8x256xf32>
    %368 = vector.shape_cast %365 : vector<8x256xf32> to vector<1x8x256xf32>
    tpu.vector_store %arg10[%c0_138, %c0_139, %c0_140], %368 {strides = array<i32>} : memref<8x8x256xf32, #tpu.memory_space<vmem>>, vector<1x8x256xf32>,
    %369 = vector.extract_strided_slice %360 {offsets = [1, 0, 0], sizes = [1, 8, 256], strides = [1, 1, 1]} : vector<8x8x256xf32> to vector<1x8x256xf32>
    %370 = vector.shape_cast %369 : vector<1x8x256xf32> to vector<8x256xf32>
    %371 = vector.extract_strided_slice %360 {offsets = [6, 0, 0], sizes = [1, 8, 256], strides = [1, 1, 1]} : vector<8x8x256xf32> to vector<1x8x256xf32>
    %372 = vector.shape_cast %371 : vector<1x8x256xf32> to vector<8x256xf32>
    %373 = arith.select %18, %370, %372 : vector<8x256xi1>, vector<8x256xf32>
    %c1_141 = arith.constant 1 : index
    %c0_142 = arith.constant 0 : index
    %c0_143 = arith.constant 0 : index
    %374 = vector.load %arg10[%c1_141, %c0_142, %c0_143] : memref<8x8x256xf32, #tpu.memory_space<vmem>>, vector<1x8x256xf32>
    %375 = vector.shape_cast %374 : vector<1x8x256xf32> to vector<8x256xf32>
    %376 = vector.shape_cast %373 : vector<8x256xf32> to vector<1x8x256xf32>
    tpu.vector_store %arg10[%c1_141, %c0_142, %c0_143], %376 {strides = array<i32>} : memref<8x8x256xf32, #tpu.memory_space<vmem>>, vector<1x8x256xf32>,
    %377 = vector.extract_strided_slice %360 {offsets = [2, 0, 0], sizes = [1, 8, 256], strides = [1, 1, 1]} : vector<8x8x256xf32> to vector<1x8x256xf32>
    %378 = vector.shape_cast %377 : vector<1x8x256xf32> to vector<8x256xf32>
    %379 = vector.extract_strided_slice %360 {offsets = [5, 0, 0], sizes = [1, 8, 256], strides = [1, 1, 1]} : vector<8x8x256xf32> to vector<1x8x256xf32>
    %380 = vector.shape_cast %379 : vector<1x8x256xf32> to vector<8x256xf32>
    %381 = arith.select %18, %378, %380 : vector<8x256xi1>, vector<8x256xf32>
    %c2_144 = arith.constant 2 : index
    %c0_145 = arith.constant 0 : index
    %c0_146 = arith.constant 0 : index
    %382 = vector.load %arg10[%c2_144, %c0_145, %c0_146] : memref<8x8x256xf32, #tpu.memory_space<vmem>>, vector<1x8x256xf32>
    %383 = vector.shape_cast %382 : vector<1x8x256xf32> to vector<8x256xf32>
    %384 = vector.shape_cast %381 : vector<8x256xf32> to vector<1x8x256xf32>
    tpu.vector_store %arg10[%c2_144, %c0_145, %c0_146], %384 {strides = array<i32>} : memref<8x8x256xf32, #tpu.memory_space<vmem>>, vector<1x8x256xf32>,
    %385 = vector.extract_strided_slice %360 {offsets = [3, 0, 0], sizes = [1, 8, 256], strides = [1, 1, 1]} : vector<8x8x256xf32> to vector<1x8x256xf32>
    %386 = vector.shape_cast %385 : vector<1x8x256xf32> to vector<8x256xf32>
    %387 = vector.extract_strided_slice %360 {offsets = [4, 0, 0], sizes = [1, 8, 256], strides = [1, 1, 1]} : vector<8x8x256xf32> to vector<1x8x256xf32>
    %388 = vector.shape_cast %387 : vector<1x8x256xf32> to vector<8x256xf32>
    %389 = arith.select %18, %386, %388 : vector<8x256xi1>, vector<8x256xf32>
    %c3_147 = arith.constant 3 : index
    %c0_148 = arith.constant 0 : index
    %c0_149 = arith.constant 0 : index
    %390 = vector.load %arg10[%c3_147, %c0_148, %c0_149] : memref<8x8x256xf32, #tpu.memory_space<vmem>>, vector<1x8x256xf32>
    %391 = vector.shape_cast %390 : vector<1x8x256xf32> to vector<8x256xf32>
    %392 = vector.shape_cast %389 : vector<8x256xf32> to vector<1x8x256xf32>
    tpu.vector_store %arg10[%c3_147, %c0_148, %c0_149], %392 {strides = array<i32>} : memref<8x8x256xf32, #tpu.memory_space<vmem>>, vector<1x8x256xf32>,
    %393 = vector.extract_strided_slice %360 {offsets = [4, 0, 0], sizes = [1, 8, 256], strides = [1, 1, 1]} : vector<8x8x256xf32> to vector<1x8x256xf32>
    %394 = vector.shape_cast %393 : vector<1x8x256xf32> to vector<8x256xf32>
    %395 = vector.extract_strided_slice %360 {offsets = [3, 0, 0], sizes = [1, 8, 256], strides = [1, 1, 1]} : vector<8x8x256xf32> to vector<1x8x256xf32>
    %396 = vector.shape_cast %395 : vector<1x8x256xf32> to vector<8x256xf32>
    %397 = arith.select %18, %394, %396 : vector<8x256xi1>, vector<8x256xf32>
    %c4_150 = arith.constant 4 : index
    %c0_151 = arith.constant 0 : index
    %c0_152 = arith.constant 0 : index
    %398 = vector.load %arg10[%c4_150, %c0_151, %c0_152] : memref<8x8x256xf32, #tpu.memory_space<vmem>>, vector<1x8x256xf32>
    %399 = vector.shape_cast %398 : vector<1x8x256xf32> to vector<8x256xf32>
    %400 = vector.shape_cast %397 : vector<8x256xf32> to vector<1x8x256xf32>
    tpu.vector_store %arg10[%c4_150, %c0_151, %c0_152], %400 {strides = array<i32>} : memref<8x8x256xf32, #tpu.memory_space<vmem>>, vector<1x8x256xf32>,
    %401 = vector.extract_strided_slice %360 {offsets = [5, 0, 0], sizes = [1, 8, 256], strides = [1, 1, 1]} : vector<8x8x256xf32> to vector<1x8x256xf32>
    %402 = vector.shape_cast %401 : vector<1x8x256xf32> to vector<8x256xf32>
    %403 = vector.extract_strided_slice %360 {offsets = [2, 0, 0], sizes = [1, 8, 256], strides = [1, 1, 1]} : vector<8x8x256xf32> to vector<1x8x256xf32>
    %404 = vector.shape_cast %403 : vector<1x8x256xf32> to vector<8x256xf32>
    %405 = arith.select %18, %402, %404 : vector<8x256xi1>, vector<8x256xf32>
    %c5_153 = arith.constant 5 : index
    %c0_154 = arith.constant 0 : index
    %c0_155 = arith.constant 0 : index
    %406 = vector.load %arg10[%c5_153, %c0_154, %c0_155] : memref<8x8x256xf32, #tpu.memory_space<vmem>>, vector<1x8x256xf32>
    %407 = vector.shape_cast %406 : vector<1x8x256xf32> to vector<8x256xf32>
    %408 = vector.shape_cast %405 : vector<8x256xf32> to vector<1x8x256xf32>
    tpu.vector_store %arg10[%c5_153, %c0_154, %c0_155], %408 {strides = array<i32>} : memref<8x8x256xf32, #tpu.memory_space<vmem>>, vector<1x8x256xf32>,
    %409 = vector.extract_strided_slice %360 {offsets = [6, 0, 0], sizes = [1, 8, 256], strides = [1, 1, 1]} : vector<8x8x256xf32> to vector<1x8x256xf32>
    %410 = vector.shape_cast %409 : vector<1x8x256xf32> to vector<8x256xf32>
    %411 = vector.extract_strided_slice %360 {offsets = [1, 0, 0], sizes = [1, 8, 256], strides = [1, 1, 1]} : vector<8x8x256xf32> to vector<1x8x256xf32>
    %412 = vector.shape_cast %411 : vector<1x8x256xf32> to vector<8x256xf32>
    %413 = arith.select %18, %410, %412 : vector<8x256xi1>, vector<8x256xf32>
    %c6_156 = arith.constant 6 : index
    %c0_157 = arith.constant 0 : index
    %c0_158 = arith.constant 0 : index
    %414 = vector.load %arg10[%c6_156, %c0_157, %c0_158] : memref<8x8x256xf32, #tpu.memory_space<vmem>>, vector<1x8x256xf32>
    %415 = vector.shape_cast %414 : vector<1x8x256xf32> to vector<8x256xf32>
    %416 = vector.shape_cast %413 : vector<8x256xf32> to vector<1x8x256xf32>
    tpu.vector_store %arg10[%c6_156, %c0_157, %c0_158], %416 {strides = array<i32>} : memref<8x8x256xf32, #tpu.memory_space<vmem>>, vector<1x8x256xf32>,
    %417 = vector.extract_strided_slice %360 {offsets = [7, 0, 0], sizes = [1, 8, 256], strides = [1, 1, 1]} : vector<8x8x256xf32> to vector<1x8x256xf32>
    %418 = vector.shape_cast %417 : vector<1x8x256xf32> to vector<8x256xf32>
    %419 = vector.extract_strided_slice %360 {offsets = [0, 0, 0], sizes = [1, 8, 256], strides = [1, 1, 1]} : vector<8x8x256xf32> to vector<1x8x256xf32>
    %420 = vector.shape_cast %419 : vector<1x8x256xf32> to vector<8x256xf32>
    %421 = arith.select %18, %418, %420 : vector<8x256xi1>, vector<8x256xf32>
    %c7_159 = arith.constant 7 : index
    %c0_160 = arith.constant 0 : index
    %c0_161 = arith.constant 0 : index
    %422 = vector.load %arg10[%c7_159, %c0_160, %c0_161] : memref<8x8x256xf32, #tpu.memory_space<vmem>>, vector<1x8x256xf32>
    %423 = vector.shape_cast %422 : vector<1x8x256xf32> to vector<8x256xf32>
    %424 = vector.shape_cast %421 : vector<8x256xf32> to vector<1x8x256xf32>
    tpu.vector_store %arg10[%c7_159, %c0_160, %c0_161], %424 {strides = array<i32>} : memref<8x8x256xf32, #tpu.memory_space<vmem>>, vector<1x8x256xf32>,
    %c0_162 = arith.constant 0 : index
    %c0_163 = arith.constant 0 : index
    %425 = vector.load %arg5[%c0_162, %c0_163] : memref<64x256xbf16, #tpu.memory_space<vmem>>, vector<64x256xbf16>
    %cst_164 = arith.constant 0.000000e+00 : f32
    %426 = vector.broadcast %cst_164 : f32 to vector<8x64xf32>
    %cst_165 = arith.constant 0.000000e+00 : f32
    %427 = vector.broadcast %cst_165 : f32 to vector<8x64xf32>
    %c0_166 = arith.constant 0 : index
    %c0_167 = arith.constant 0 : index
    %c0_168 = arith.constant 0 : index
    %428 = vector.load %arg10[%c0_166, %c0_167, %c0_168] : memref<8x8x256xf32, #tpu.memory_space<vmem>>, vector<1x8x256xf32>
    %429 = vector.shape_cast %428 : vector<1x8x256xf32> to vector<8x256xf32>
    %430 = arith.truncf %426 : vector<8x64xf32> to vector<8x64xbf16>
    %cst_169 = arith.constant dense<0.000000e+00> : vector<8x256xf32>
    %431 = tpu.matmul %430, %425, %cst_169 {dimension_numbers = #tpu.dot_dimension_numbers<[1], [0], [0], [1], [0, 0, 1, 1], [], []>} : vector<8x64xbf16>, vector<64x256xbf16>, vector<8x256xf32> -> vector<8x256xf32>
    %432 = arith.addf %429, %431 : vector<8x256xf32>
    %433 = math.tanh %432 : vector<8x256xf32>
    %cst_170 = arith.constant 5.000000e-01 : f32
    %434 = vector.broadcast %cst_170 : f32 to vector<8x256xf32>
    %435 = arith.mulf %434, %433 : vector<8x256xf32>
    %cst_171 = arith.constant 5.000000e-01 : f32
    %436 = vector.broadcast %cst_171 : f32 to vector<8x256xf32>
    %437 = arith.addf %435, %436 : vector<8x256xf32>
    %438 = arith.select %23, %433, %437 : vector<8x256xi1>, vector<8x256xf32>
    %439 = vector.extract_strided_slice %438 {offsets = [0, 0], sizes = [8, 64], strides = [1, 1]} : vector<8x256xf32> to vector<8x64xf32>
    %440 = vector.extract_strided_slice %438 {offsets = [0, 64], sizes = [8, 64], strides = [1, 1]} : vector<8x256xf32> to vector<8x64xf32>
    %441 = vector.extract_strided_slice %438 {offsets = [0, 128], sizes = [8, 64], strides = [1, 1]} : vector<8x256xf32> to vector<8x64xf32>
    %442 = vector.extract_strided_slice %438 {offsets = [0, 192], sizes = [8, 64], strides = [1, 1]} : vector<8x256xf32> to vector<8x64xf32>
    %443 = arith.mulf %440, %427 : vector<8x64xf32>
    %444 = arith.mulf %439, %441 : vector<8x64xf32>
    %445 = arith.addf %443, %444 : vector<8x64xf32>
    %446 = math.tanh %445 : vector<8x64xf32>
    %447 = arith.mulf %442, %446 : vector<8x64xf32>
    %c0_172 = arith.constant 0 : index
    %c0_173 = arith.constant 0 : index
    %c0_174 = arith.constant 0 : index
    %448 = vector.load %arg11[%c0_172, %c0_173, %c0_174] : memref<8x8x64xf32, #tpu.memory_space<vmem>>, vector<1x8x64xf32>
    %449 = vector.shape_cast %448 : vector<1x8x64xf32> to vector<8x64xf32>
    %450 = vector.shape_cast %447 : vector<8x64xf32> to vector<1x8x64xf32>
    tpu.vector_store %arg11[%c0_172, %c0_173, %c0_174], %450 {strides = array<i32>} : memref<8x8x64xf32, #tpu.memory_space<vmem>>, vector<1x8x64xf32>,
    %c1_175 = arith.constant 1 : index
    %c0_176 = arith.constant 0 : index
    %c0_177 = arith.constant 0 : index
    %451 = vector.load %arg10[%c1_175, %c0_176, %c0_177] : memref<8x8x256xf32, #tpu.memory_space<vmem>>, vector<1x8x256xf32>
    %452 = vector.shape_cast %451 : vector<1x8x256xf32> to vector<8x256xf32>
    %453 = arith.truncf %447 : vector<8x64xf32> to vector<8x64xbf16>
    %cst_178 = arith.constant dense<0.000000e+00> : vector<8x256xf32>
    %454 = tpu.matmul %453, %425, %cst_178 {dimension_numbers = #tpu.dot_dimension_numbers<[1], [0], [0], [1], [0, 0, 1, 1], [], []>} : vector<8x64xbf16>, vector<64x256xbf16>, vector<8x256xf32> -> vector<8x256xf32>
    %455 = arith.addf %452, %454 : vector<8x256xf32>
    %456 = math.tanh %455 : vector<8x256xf32>
    %cst_179 = arith.constant 5.000000e-01 : f32
    %457 = vector.broadcast %cst_179 : f32 to vector<8x256xf32>
    %458 = arith.mulf %457, %456 : vector<8x256xf32>
    %cst_180 = arith.constant 5.000000e-01 : f32
    %459 = vector.broadcast %cst_180 : f32 to vector<8x256xf32>
    %460 = arith.addf %458, %459 : vector<8x256xf32>
    %461 = arith.select %23, %456, %460 : vector<8x256xi1>, vector<8x256xf32>
    %462 = vector.extract_strided_slice %461 {offsets = [0, 0], sizes = [8, 64], strides = [1, 1]} : vector<8x256xf32> to vector<8x64xf32>
    %463 = vector.extract_strided_slice %461 {offsets = [0, 64], sizes = [8, 64], strides = [1, 1]} : vector<8x256xf32> to vector<8x64xf32>
    %464 = vector.extract_strided_slice %461 {offsets = [0, 128], sizes = [8, 64], strides = [1, 1]} : vector<8x256xf32> to vector<8x64xf32>
    %465 = vector.extract_strided_slice %461 {offsets = [0, 192], sizes = [8, 64], strides = [1, 1]} : vector<8x256xf32> to vector<8x64xf32>
    %466 = arith.mulf %463, %445 : vector<8x64xf32>
    %467 = arith.mulf %462, %464 : vector<8x64xf32>
    %468 = arith.addf %466, %467 : vector<8x64xf32>
    %469 = math.tanh %468 : vector<8x64xf32>
    %470 = arith.mulf %465, %469 : vector<8x64xf32>
    %c1_181 = arith.constant 1 : index
    %c0_182 = arith.constant 0 : index
    %c0_183 = arith.constant 0 : index
    %471 = vector.load %arg11[%c1_181, %c0_182, %c0_183] : memref<8x8x64xf32, #tpu.memory_space<vmem>>, vector<1x8x64xf32>
    %472 = vector.shape_cast %471 : vector<1x8x64xf32> to vector<8x64xf32>
    %473 = vector.shape_cast %470 : vector<8x64xf32> to vector<1x8x64xf32>
    tpu.vector_store %arg11[%c1_181, %c0_182, %c0_183], %473 {strides = array<i32>} : memref<8x8x64xf32, #tpu.memory_space<vmem>>, vector<1x8x64xf32>,
    %c2_184 = arith.constant 2 : index
    %c0_185 = arith.constant 0 : index
    %c0_186 = arith.constant 0 : index
    %474 = vector.load %arg10[%c2_184, %c0_185, %c0_186] : memref<8x8x256xf32, #tpu.memory_space<vmem>>, vector<1x8x256xf32>
    %475 = vector.shape_cast %474 : vector<1x8x256xf32> to vector<8x256xf32>
    %476 = arith.truncf %470 : vector<8x64xf32> to vector<8x64xbf16>
    %cst_187 = arith.constant dense<0.000000e+00> : vector<8x256xf32>
    %477 = tpu.matmul %476, %425, %cst_187 {dimension_numbers = #tpu.dot_dimension_numbers<[1], [0], [0], [1], [0, 0, 1, 1], [], []>} : vector<8x64xbf16>, vector<64x256xbf16>, vector<8x256xf32> -> vector<8x256xf32>
    %478 = arith.addf %475, %477 : vector<8x256xf32>
    %479 = math.tanh %478 : vector<8x256xf32>
    %cst_188 = arith.constant 5.000000e-01 : f32
    %480 = vector.broadcast %cst_188 : f32 to vector<8x256xf32>
    %481 = arith.mulf %480, %479 : vector<8x256xf32>
    %cst_189 = arith.constant 5.000000e-01 : f32
    %482 = vector.broadcast %cst_189 : f32 to vector<8x256xf32>
    %483 = arith.addf %481, %482 : vector<8x256xf32>
    %484 = arith.select %23, %479, %483 : vector<8x256xi1>, vector<8x256xf32>
    %485 = vector.extract_strided_slice %484 {offsets = [0, 0], sizes = [8, 64], strides = [1, 1]} : vector<8x256xf32> to vector<8x64xf32>
    %486 = vector.extract_strided_slice %484 {offsets = [0, 64], sizes = [8, 64], strides = [1, 1]} : vector<8x256xf32> to vector<8x64xf32>
    %487 = vector.extract_strided_slice %484 {offsets = [0, 128], sizes = [8, 64], strides = [1, 1]} : vector<8x256xf32> to vector<8x64xf32>
    %488 = vector.extract_strided_slice %484 {offsets = [0, 192], sizes = [8, 64], strides = [1, 1]} : vector<8x256xf32> to vector<8x64xf32>
    %489 = arith.mulf %486, %468 : vector<8x64xf32>
    %490 = arith.mulf %485, %487 : vector<8x64xf32>
    %491 = arith.addf %489, %490 : vector<8x64xf32>
    %492 = math.tanh %491 : vector<8x64xf32>
    %493 = arith.mulf %488, %492 : vector<8x64xf32>
    %c2_190 = arith.constant 2 : index
    %c0_191 = arith.constant 0 : index
    %c0_192 = arith.constant 0 : index
    %494 = vector.load %arg11[%c2_190, %c0_191, %c0_192] : memref<8x8x64xf32, #tpu.memory_space<vmem>>, vector<1x8x64xf32>
    %495 = vector.shape_cast %494 : vector<1x8x64xf32> to vector<8x64xf32>
    %496 = vector.shape_cast %493 : vector<8x64xf32> to vector<1x8x64xf32>
    tpu.vector_store %arg11[%c2_190, %c0_191, %c0_192], %496 {strides = array<i32>} : memref<8x8x64xf32, #tpu.memory_space<vmem>>, vector<1x8x64xf32>,
    %c3_193 = arith.constant 3 : index
    %c0_194 = arith.constant 0 : index
    %c0_195 = arith.constant 0 : index
    %497 = vector.load %arg10[%c3_193, %c0_194, %c0_195] : memref<8x8x256xf32, #tpu.memory_space<vmem>>, vector<1x8x256xf32>
    %498 = vector.shape_cast %497 : vector<1x8x256xf32> to vector<8x256xf32>
    %499 = arith.truncf %493 : vector<8x64xf32> to vector<8x64xbf16>
    %cst_196 = arith.constant dense<0.000000e+00> : vector<8x256xf32>
    %500 = tpu.matmul %499, %425, %cst_196 {dimension_numbers = #tpu.dot_dimension_numbers<[1], [0], [0], [1], [0, 0, 1, 1], [], []>} : vector<8x64xbf16>, vector<64x256xbf16>, vector<8x256xf32> -> vector<8x256xf32>
    %501 = arith.addf %498, %500 : vector<8x256xf32>
    %502 = math.tanh %501 : vector<8x256xf32>
    %cst_197 = arith.constant 5.000000e-01 : f32
    %503 = vector.broadcast %cst_197 : f32 to vector<8x256xf32>
    %504 = arith.mulf %503, %502 : vector<8x256xf32>
    %cst_198 = arith.constant 5.000000e-01 : f32
    %505 = vector.broadcast %cst_198 : f32 to vector<8x256xf32>
    %506 = arith.addf %504, %505 : vector<8x256xf32>
    %507 = arith.select %23, %502, %506 : vector<8x256xi1>, vector<8x256xf32>
    %508 = vector.extract_strided_slice %507 {offsets = [0, 0], sizes = [8, 64], strides = [1, 1]} : vector<8x256xf32> to vector<8x64xf32>
    %509 = vector.extract_strided_slice %507 {offsets = [0, 64], sizes = [8, 64], strides = [1, 1]} : vector<8x256xf32> to vector<8x64xf32>
    %510 = vector.extract_strided_slice %507 {offsets = [0, 128], sizes = [8, 64], strides = [1, 1]} : vector<8x256xf32> to vector<8x64xf32>
    %511 = vector.extract_strided_slice %507 {offsets = [0, 192], sizes = [8, 64], strides = [1, 1]} : vector<8x256xf32> to vector<8x64xf32>
    %512 = arith.mulf %509, %491 : vector<8x64xf32>
    %513 = arith.mulf %508, %510 : vector<8x64xf32>
    %514 = arith.addf %512, %513 : vector<8x64xf32>
    %515 = math.tanh %514 : vector<8x64xf32>
    %516 = arith.mulf %511, %515 : vector<8x64xf32>
    %c3_199 = arith.constant 3 : index
    %c0_200 = arith.constant 0 : index
    %c0_201 = arith.constant 0 : index
    %517 = vector.load %arg11[%c3_199, %c0_200, %c0_201] : memref<8x8x64xf32, #tpu.memory_space<vmem>>, vector<1x8x64xf32>
    %518 = vector.shape_cast %517 : vector<1x8x64xf32> to vector<8x64xf32>
    %519 = vector.shape_cast %516 : vector<8x64xf32> to vector<1x8x64xf32>
    tpu.vector_store %arg11[%c3_199, %c0_200, %c0_201], %519 {strides = array<i32>} : memref<8x8x64xf32, #tpu.memory_space<vmem>>, vector<1x8x64xf32>,
    %c4_202 = arith.constant 4 : index
    %c0_203 = arith.constant 0 : index
    %c0_204 = arith.constant 0 : index
    %520 = vector.load %arg10[%c4_202, %c0_203, %c0_204] : memref<8x8x256xf32, #tpu.memory_space<vmem>>, vector<1x8x256xf32>
    %521 = vector.shape_cast %520 : vector<1x8x256xf32> to vector<8x256xf32>
    %522 = arith.truncf %516 : vector<8x64xf32> to vector<8x64xbf16>
    %cst_205 = arith.constant dense<0.000000e+00> : vector<8x256xf32>
    %523 = tpu.matmul %522, %425, %cst_205 {dimension_numbers = #tpu.dot_dimension_numbers<[1], [0], [0], [1], [0, 0, 1, 1], [], []>} : vector<8x64xbf16>, vector<64x256xbf16>, vector<8x256xf32> -> vector<8x256xf32>
    %524 = arith.addf %521, %523 : vector<8x256xf32>
    %525 = math.tanh %524 : vector<8x256xf32>
    %cst_206 = arith.constant 5.000000e-01 : f32
    %526 = vector.broadcast %cst_206 : f32 to vector<8x256xf32>
    %527 = arith.mulf %526, %525 : vector<8x256xf32>
    %cst_207 = arith.constant 5.000000e-01 : f32
    %528 = vector.broadcast %cst_207 : f32 to vector<8x256xf32>
    %529 = arith.addf %527, %528 : vector<8x256xf32>
    %530 = arith.select %23, %525, %529 : vector<8x256xi1>, vector<8x256xf32>
    %531 = vector.extract_strided_slice %530 {offsets = [0, 0], sizes = [8, 64], strides = [1, 1]} : vector<8x256xf32> to vector<8x64xf32>
    %532 = vector.extract_strided_slice %530 {offsets = [0, 64], sizes = [8, 64], strides = [1, 1]} : vector<8x256xf32> to vector<8x64xf32>
    %533 = vector.extract_strided_slice %530 {offsets = [0, 128], sizes = [8, 64], strides = [1, 1]} : vector<8x256xf32> to vector<8x64xf32>
    %534 = vector.extract_strided_slice %530 {offsets = [0, 192], sizes = [8, 64], strides = [1, 1]} : vector<8x256xf32> to vector<8x64xf32>
    %535 = arith.mulf %532, %514 : vector<8x64xf32>
    %536 = arith.mulf %531, %533 : vector<8x64xf32>
    %537 = arith.addf %535, %536 : vector<8x64xf32>
    %538 = math.tanh %537 : vector<8x64xf32>
    %539 = arith.mulf %534, %538 : vector<8x64xf32>
    %c4_208 = arith.constant 4 : index
    %c0_209 = arith.constant 0 : index
    %c0_210 = arith.constant 0 : index
    %540 = vector.load %arg11[%c4_208, %c0_209, %c0_210] : memref<8x8x64xf32, #tpu.memory_space<vmem>>, vector<1x8x64xf32>
    %541 = vector.shape_cast %540 : vector<1x8x64xf32> to vector<8x64xf32>
    %542 = vector.shape_cast %539 : vector<8x64xf32> to vector<1x8x64xf32>
    tpu.vector_store %arg11[%c4_208, %c0_209, %c0_210], %542 {strides = array<i32>} : memref<8x8x64xf32, #tpu.memory_space<vmem>>, vector<1x8x64xf32>,
    %c5_211 = arith.constant 5 : index
    %c0_212 = arith.constant 0 : index
    %c0_213 = arith.constant 0 : index
    %543 = vector.load %arg10[%c5_211, %c0_212, %c0_213] : memref<8x8x256xf32, #tpu.memory_space<vmem>>, vector<1x8x256xf32>
    %544 = vector.shape_cast %543 : vector<1x8x256xf32> to vector<8x256xf32>
    %545 = arith.truncf %539 : vector<8x64xf32> to vector<8x64xbf16>
    %cst_214 = arith.constant dense<0.000000e+00> : vector<8x256xf32>
    %546 = tpu.matmul %545, %425, %cst_214 {dimension_numbers = #tpu.dot_dimension_numbers<[1], [0], [0], [1], [0, 0, 1, 1], [], []>} : vector<8x64xbf16>, vector<64x256xbf16>, vector<8x256xf32> -> vector<8x256xf32>
    %547 = arith.addf %544, %546 : vector<8x256xf32>
    %548 = math.tanh %547 : vector<8x256xf32>
    %cst_215 = arith.constant 5.000000e-01 : f32
    %549 = vector.broadcast %cst_215 : f32 to vector<8x256xf32>
    %550 = arith.mulf %549, %548 : vector<8x256xf32>
    %cst_216 = arith.constant 5.000000e-01 : f32
    %551 = vector.broadcast %cst_216 : f32 to vector<8x256xf32>
    %552 = arith.addf %550, %551 : vector<8x256xf32>
    %553 = arith.select %23, %548, %552 : vector<8x256xi1>, vector<8x256xf32>
    %554 = vector.extract_strided_slice %553 {offsets = [0, 0], sizes = [8, 64], strides = [1, 1]} : vector<8x256xf32> to vector<8x64xf32>
    %555 = vector.extract_strided_slice %553 {offsets = [0, 64], sizes = [8, 64], strides = [1, 1]} : vector<8x256xf32> to vector<8x64xf32>
    %556 = vector.extract_strided_slice %553 {offsets = [0, 128], sizes = [8, 64], strides = [1, 1]} : vector<8x256xf32> to vector<8x64xf32>
    %557 = vector.extract_strided_slice %553 {offsets = [0, 192], sizes = [8, 64], strides = [1, 1]} : vector<8x256xf32> to vector<8x64xf32>
    %558 = arith.mulf %555, %537 : vector<8x64xf32>
    %559 = arith.mulf %554, %556 : vector<8x64xf32>
    %560 = arith.addf %558, %559 : vector<8x64xf32>
    %561 = math.tanh %560 : vector<8x64xf32>
    %562 = arith.mulf %557, %561 : vector<8x64xf32>
    %c5_217 = arith.constant 5 : index
    %c0_218 = arith.constant 0 : index
    %c0_219 = arith.constant 0 : index
    %563 = vector.load %arg11[%c5_217, %c0_218, %c0_219] : memref<8x8x64xf32, #tpu.memory_space<vmem>>, vector<1x8x64xf32>
    %564 = vector.shape_cast %563 : vector<1x8x64xf32> to vector<8x64xf32>
    %565 = vector.shape_cast %562 : vector<8x64xf32> to vector<1x8x64xf32>
    tpu.vector_store %arg11[%c5_217, %c0_218, %c0_219], %565 {strides = array<i32>} : memref<8x8x64xf32, #tpu.memory_space<vmem>>, vector<1x8x64xf32>,
    %c6_220 = arith.constant 6 : index
    %c0_221 = arith.constant 0 : index
    %c0_222 = arith.constant 0 : index
    %566 = vector.load %arg10[%c6_220, %c0_221, %c0_222] : memref<8x8x256xf32, #tpu.memory_space<vmem>>, vector<1x8x256xf32>
    %567 = vector.shape_cast %566 : vector<1x8x256xf32> to vector<8x256xf32>
    %568 = arith.truncf %562 : vector<8x64xf32> to vector<8x64xbf16>
    %cst_223 = arith.constant dense<0.000000e+00> : vector<8x256xf32>
    %569 = tpu.matmul %568, %425, %cst_223 {dimension_numbers = #tpu.dot_dimension_numbers<[1], [0], [0], [1], [0, 0, 1, 1], [], []>} : vector<8x64xbf16>, vector<64x256xbf16>, vector<8x256xf32> -> vector<8x256xf32>
    %570 = arith.addf %567, %569 : vector<8x256xf32>
    %571 = math.tanh %570 : vector<8x256xf32>
    %cst_224 = arith.constant 5.000000e-01 : f32
    %572 = vector.broadcast %cst_224 : f32 to vector<8x256xf32>
    %573 = arith.mulf %572, %571 : vector<8x256xf32>
    %cst_225 = arith.constant 5.000000e-01 : f32
    %574 = vector.broadcast %cst_225 : f32 to vector<8x256xf32>
    %575 = arith.addf %573, %574 : vector<8x256xf32>
    %576 = arith.select %23, %571, %575 : vector<8x256xi1>, vector<8x256xf32>
    %577 = vector.extract_strided_slice %576 {offsets = [0, 0], sizes = [8, 64], strides = [1, 1]} : vector<8x256xf32> to vector<8x64xf32>
    %578 = vector.extract_strided_slice %576 {offsets = [0, 64], sizes = [8, 64], strides = [1, 1]} : vector<8x256xf32> to vector<8x64xf32>
    %579 = vector.extract_strided_slice %576 {offsets = [0, 128], sizes = [8, 64], strides = [1, 1]} : vector<8x256xf32> to vector<8x64xf32>
    %580 = vector.extract_strided_slice %576 {offsets = [0, 192], sizes = [8, 64], strides = [1, 1]} : vector<8x256xf32> to vector<8x64xf32>
    %581 = arith.mulf %578, %560 : vector<8x64xf32>
    %582 = arith.mulf %577, %579 : vector<8x64xf32>
    %583 = arith.addf %581, %582 : vector<8x64xf32>
    %584 = math.tanh %583 : vector<8x64xf32>
    %585 = arith.mulf %580, %584 : vector<8x64xf32>
    %c6_226 = arith.constant 6 : index
    %c0_227 = arith.constant 0 : index
    %c0_228 = arith.constant 0 : index
    %586 = vector.load %arg11[%c6_226, %c0_227, %c0_228] : memref<8x8x64xf32, #tpu.memory_space<vmem>>, vector<1x8x64xf32>
    %587 = vector.shape_cast %586 : vector<1x8x64xf32> to vector<8x64xf32>
    %588 = vector.shape_cast %585 : vector<8x64xf32> to vector<1x8x64xf32>
    tpu.vector_store %arg11[%c6_226, %c0_227, %c0_228], %588 {strides = array<i32>} : memref<8x8x64xf32, #tpu.memory_space<vmem>>, vector<1x8x64xf32>,
    %c7_229 = arith.constant 7 : index
    %c0_230 = arith.constant 0 : index
    %c0_231 = arith.constant 0 : index
    %589 = vector.load %arg10[%c7_229, %c0_230, %c0_231] : memref<8x8x256xf32, #tpu.memory_space<vmem>>, vector<1x8x256xf32>
    %590 = vector.shape_cast %589 : vector<1x8x256xf32> to vector<8x256xf32>
    %591 = arith.truncf %585 : vector<8x64xf32> to vector<8x64xbf16>
    %cst_232 = arith.constant dense<0.000000e+00> : vector<8x256xf32>
    %592 = tpu.matmul %591, %425, %cst_232 {dimension_numbers = #tpu.dot_dimension_numbers<[1], [0], [0], [1], [0, 0, 1, 1], [], []>} : vector<8x64xbf16>, vector<64x256xbf16>, vector<8x256xf32> -> vector<8x256xf32>
    %593 = arith.addf %590, %592 : vector<8x256xf32>
    %594 = math.tanh %593 : vector<8x256xf32>
    %cst_233 = arith.constant 5.000000e-01 : f32
    %595 = vector.broadcast %cst_233 : f32 to vector<8x256xf32>
    %596 = arith.mulf %595, %594 : vector<8x256xf32>
    %cst_234 = arith.constant 5.000000e-01 : f32
    %597 = vector.broadcast %cst_234 : f32 to vector<8x256xf32>
    %598 = arith.addf %596, %597 : vector<8x256xf32>
    %599 = arith.select %23, %594, %598 : vector<8x256xi1>, vector<8x256xf32>
    %600 = vector.extract_strided_slice %599 {offsets = [0, 0], sizes = [8, 64], strides = [1, 1]} : vector<8x256xf32> to vector<8x64xf32>
    %601 = vector.extract_strided_slice %599 {offsets = [0, 64], sizes = [8, 64], strides = [1, 1]} : vector<8x256xf32> to vector<8x64xf32>
    %602 = vector.extract_strided_slice %599 {offsets = [0, 128], sizes = [8, 64], strides = [1, 1]} : vector<8x256xf32> to vector<8x64xf32>
    %603 = vector.extract_strided_slice %599 {offsets = [0, 192], sizes = [8, 64], strides = [1, 1]} : vector<8x256xf32> to vector<8x64xf32>
    %604 = arith.mulf %601, %583 : vector<8x64xf32>
    %605 = arith.mulf %600, %602 : vector<8x64xf32>
    %606 = arith.addf %604, %605 : vector<8x64xf32>
    %607 = math.tanh %606 : vector<8x64xf32>
    %608 = arith.mulf %603, %607 : vector<8x64xf32>
    %c7_235 = arith.constant 7 : index
    %c0_236 = arith.constant 0 : index
    %c0_237 = arith.constant 0 : index
    %609 = vector.load %arg11[%c7_235, %c0_236, %c0_237] : memref<8x8x64xf32, #tpu.memory_space<vmem>>, vector<1x8x64xf32>
    %610 = vector.shape_cast %609 : vector<1x8x64xf32> to vector<8x64xf32>
    %611 = vector.shape_cast %608 : vector<8x64xf32> to vector<1x8x64xf32>
    tpu.vector_store %arg11[%c7_235, %c0_236, %c0_237], %611 {strides = array<i32>} : memref<8x8x64xf32, #tpu.memory_space<vmem>>, vector<1x8x64xf32>,
    %c0_238 = arith.constant 0 : index
    %c0_239 = arith.constant 0 : index
    %c0_240 = arith.constant 0 : index
    %612 = vector.load %arg11[%c0_238, %c0_239, %c0_240] : memref<8x8x64xf32, #tpu.memory_space<vmem>>, vector<8x8x64xf32>
    %613 = vector.extract_strided_slice %612 {offsets = [0, 0, 0], sizes = [1, 8, 64], strides = [1, 1, 1]} : vector<8x8x64xf32> to vector<1x8x64xf32>
    %614 = vector.shape_cast %613 : vector<1x8x64xf32> to vector<8x64xf32>
    %615 = vector.extract_strided_slice %612 {offsets = [7, 0, 0], sizes = [1, 8, 64], strides = [1, 1, 1]} : vector<8x8x64xf32> to vector<1x8x64xf32>
    %616 = vector.shape_cast %615 : vector<1x8x64xf32> to vector<8x64xf32>
    %617 = arith.select %26, %614, %616 : vector<8x64xi1>, vector<8x64xf32>
    %c0_241 = arith.constant 0 : index
    %c0_242 = arith.constant 0 : index
    %c0_243 = arith.constant 0 : index
    %618 = vector.load %arg11[%c0_241, %c0_242, %c0_243] : memref<8x8x64xf32, #tpu.memory_space<vmem>>, vector<1x8x64xf32>
    %619 = vector.shape_cast %618 : vector<1x8x64xf32> to vector<8x64xf32>
    %620 = vector.shape_cast %617 : vector<8x64xf32> to vector<1x8x64xf32>
    tpu.vector_store %arg11[%c0_241, %c0_242, %c0_243], %620 {strides = array<i32>} : memref<8x8x64xf32, #tpu.memory_space<vmem>>, vector<1x8x64xf32>,
    %621 = vector.extract_strided_slice %612 {offsets = [1, 0, 0], sizes = [1, 8, 64], strides = [1, 1, 1]} : vector<8x8x64xf32> to vector<1x8x64xf32>
    %622 = vector.shape_cast %621 : vector<1x8x64xf32> to vector<8x64xf32>
    %623 = vector.extract_strided_slice %612 {offsets = [6, 0, 0], sizes = [1, 8, 64], strides = [1, 1, 1]} : vector<8x8x64xf32> to vector<1x8x64xf32>
    %624 = vector.shape_cast %623 : vector<1x8x64xf32> to vector<8x64xf32>
    %625 = arith.select %26, %622, %624 : vector<8x64xi1>, vector<8x64xf32>
    %c1_244 = arith.constant 1 : index
    %c0_245 = arith.constant 0 : index
    %c0_246 = arith.constant 0 : index
    %626 = vector.load %arg11[%c1_244, %c0_245, %c0_246] : memref<8x8x64xf32, #tpu.memory_space<vmem>>, vector<1x8x64xf32>
    %627 = vector.shape_cast %626 : vector<1x8x64xf32> to vector<8x64xf32>
    %628 = vector.shape_cast %625 : vector<8x64xf32> to vector<1x8x64xf32>
    tpu.vector_store %arg11[%c1_244, %c0_245, %c0_246], %628 {strides = array<i32>} : memref<8x8x64xf32, #tpu.memory_space<vmem>>, vector<1x8x64xf32>,
    %629 = vector.extract_strided_slice %612 {offsets = [2, 0, 0], sizes = [1, 8, 64], strides = [1, 1, 1]} : vector<8x8x64xf32> to vector<1x8x64xf32>
    %630 = vector.shape_cast %629 : vector<1x8x64xf32> to vector<8x64xf32>
    %631 = vector.extract_strided_slice %612 {offsets = [5, 0, 0], sizes = [1, 8, 64], strides = [1, 1, 1]} : vector<8x8x64xf32> to vector<1x8x64xf32>
    %632 = vector.shape_cast %631 : vector<1x8x64xf32> to vector<8x64xf32>
    %633 = arith.select %26, %630, %632 : vector<8x64xi1>, vector<8x64xf32>
    %c2_247 = arith.constant 2 : index
    %c0_248 = arith.constant 0 : index
    %c0_249 = arith.constant 0 : index
    %634 = vector.load %arg11[%c2_247, %c0_248, %c0_249] : memref<8x8x64xf32, #tpu.memory_space<vmem>>, vector<1x8x64xf32>
    %635 = vector.shape_cast %634 : vector<1x8x64xf32> to vector<8x64xf32>
    %636 = vector.shape_cast %633 : vector<8x64xf32> to vector<1x8x64xf32>
    tpu.vector_store %arg11[%c2_247, %c0_248, %c0_249], %636 {strides = array<i32>} : memref<8x8x64xf32, #tpu.memory_space<vmem>>, vector<1x8x64xf32>,
    %637 = vector.extract_strided_slice %612 {offsets = [3, 0, 0], sizes = [1, 8, 64], strides = [1, 1, 1]} : vector<8x8x64xf32> to vector<1x8x64xf32>
    %638 = vector.shape_cast %637 : vector<1x8x64xf32> to vector<8x64xf32>
    %639 = vector.extract_strided_slice %612 {offsets = [4, 0, 0], sizes = [1, 8, 64], strides = [1, 1, 1]} : vector<8x8x64xf32> to vector<1x8x64xf32>
    %640 = vector.shape_cast %639 : vector<1x8x64xf32> to vector<8x64xf32>
    %641 = arith.select %26, %638, %640 : vector<8x64xi1>, vector<8x64xf32>
    %c3_250 = arith.constant 3 : index
    %c0_251 = arith.constant 0 : index
    %c0_252 = arith.constant 0 : index
    %642 = vector.load %arg11[%c3_250, %c0_251, %c0_252] : memref<8x8x64xf32, #tpu.memory_space<vmem>>, vector<1x8x64xf32>
    %643 = vector.shape_cast %642 : vector<1x8x64xf32> to vector<8x64xf32>
    %644 = vector.shape_cast %641 : vector<8x64xf32> to vector<1x8x64xf32>
    tpu.vector_store %arg11[%c3_250, %c0_251, %c0_252], %644 {strides = array<i32>} : memref<8x8x64xf32, #tpu.memory_space<vmem>>, vector<1x8x64xf32>,
    %645 = vector.extract_strided_slice %612 {offsets = [4, 0, 0], sizes = [1, 8, 64], strides = [1, 1, 1]} : vector<8x8x64xf32> to vector<1x8x64xf32>
    %646 = vector.shape_cast %645 : vector<1x8x64xf32> to vector<8x64xf32>
    %647 = vector.extract_strided_slice %612 {offsets = [3, 0, 0], sizes = [1, 8, 64], strides = [1, 1, 1]} : vector<8x8x64xf32> to vector<1x8x64xf32>
    %648 = vector.shape_cast %647 : vector<1x8x64xf32> to vector<8x64xf32>
    %649 = arith.select %26, %646, %648 : vector<8x64xi1>, vector<8x64xf32>
    %c4_253 = arith.constant 4 : index
    %c0_254 = arith.constant 0 : index
    %c0_255 = arith.constant 0 : index
    %650 = vector.load %arg11[%c4_253, %c0_254, %c0_255] : memref<8x8x64xf32, #tpu.memory_space<vmem>>, vector<1x8x64xf32>
    %651 = vector.shape_cast %650 : vector<1x8x64xf32> to vector<8x64xf32>
    %652 = vector.shape_cast %649 : vector<8x64xf32> to vector<1x8x64xf32>
    tpu.vector_store %arg11[%c4_253, %c0_254, %c0_255], %652 {strides = array<i32>} : memref<8x8x64xf32, #tpu.memory_space<vmem>>, vector<1x8x64xf32>,
    %653 = vector.extract_strided_slice %612 {offsets = [5, 0, 0], sizes = [1, 8, 64], strides = [1, 1, 1]} : vector<8x8x64xf32> to vector<1x8x64xf32>
    %654 = vector.shape_cast %653 : vector<1x8x64xf32> to vector<8x64xf32>
    %655 = vector.extract_strided_slice %612 {offsets = [2, 0, 0], sizes = [1, 8, 64], strides = [1, 1, 1]} : vector<8x8x64xf32> to vector<1x8x64xf32>
    %656 = vector.shape_cast %655 : vector<1x8x64xf32> to vector<8x64xf32>
    %657 = arith.select %26, %654, %656 : vector<8x64xi1>, vector<8x64xf32>
    %c5_256 = arith.constant 5 : index
    %c0_257 = arith.constant 0 : index
    %c0_258 = arith.constant 0 : index
    %658 = vector.load %arg11[%c5_256, %c0_257, %c0_258] : memref<8x8x64xf32, #tpu.memory_space<vmem>>, vector<1x8x64xf32>
    %659 = vector.shape_cast %658 : vector<1x8x64xf32> to vector<8x64xf32>
    %660 = vector.shape_cast %657 : vector<8x64xf32> to vector<1x8x64xf32>
    tpu.vector_store %arg11[%c5_256, %c0_257, %c0_258], %660 {strides = array<i32>} : memref<8x8x64xf32, #tpu.memory_space<vmem>>, vector<1x8x64xf32>,
    %661 = vector.extract_strided_slice %612 {offsets = [6, 0, 0], sizes = [1, 8, 64], strides = [1, 1, 1]} : vector<8x8x64xf32> to vector<1x8x64xf32>
    %662 = vector.shape_cast %661 : vector<1x8x64xf32> to vector<8x64xf32>
    %663 = vector.extract_strided_slice %612 {offsets = [1, 0, 0], sizes = [1, 8, 64], strides = [1, 1, 1]} : vector<8x8x64xf32> to vector<1x8x64xf32>
    %664 = vector.shape_cast %663 : vector<1x8x64xf32> to vector<8x64xf32>
    %665 = arith.select %26, %662, %664 : vector<8x64xi1>, vector<8x64xf32>
    %c6_259 = arith.constant 6 : index
    %c0_260 = arith.constant 0 : index
    %c0_261 = arith.constant 0 : index
    %666 = vector.load %arg11[%c6_259, %c0_260, %c0_261] : memref<8x8x64xf32, #tpu.memory_space<vmem>>, vector<1x8x64xf32>
    %667 = vector.shape_cast %666 : vector<1x8x64xf32> to vector<8x64xf32>
    %668 = vector.shape_cast %665 : vector<8x64xf32> to vector<1x8x64xf32>
    tpu.vector_store %arg11[%c6_259, %c0_260, %c0_261], %668 {strides = array<i32>} : memref<8x8x64xf32, #tpu.memory_space<vmem>>, vector<1x8x64xf32>,
    %669 = vector.extract_strided_slice %612 {offsets = [7, 0, 0], sizes = [1, 8, 64], strides = [1, 1, 1]} : vector<8x8x64xf32> to vector<1x8x64xf32>
    %670 = vector.shape_cast %669 : vector<1x8x64xf32> to vector<8x64xf32>
    %671 = vector.extract_strided_slice %612 {offsets = [0, 0, 0], sizes = [1, 8, 64], strides = [1, 1, 1]} : vector<8x8x64xf32> to vector<1x8x64xf32>
    %672 = vector.shape_cast %671 : vector<1x8x64xf32> to vector<8x64xf32>
    %673 = arith.select %26, %670, %672 : vector<8x64xi1>, vector<8x64xf32>
    %c7_262 = arith.constant 7 : index
    %c0_263 = arith.constant 0 : index
    %c0_264 = arith.constant 0 : index
    %674 = vector.load %arg11[%c7_262, %c0_263, %c0_264] : memref<8x8x64xf32, #tpu.memory_space<vmem>>, vector<1x8x64xf32>
    %675 = vector.shape_cast %674 : vector<1x8x64xf32> to vector<8x64xf32>
    %676 = vector.shape_cast %673 : vector<8x64xf32> to vector<1x8x64xf32>
    tpu.vector_store %arg11[%c7_262, %c0_263, %c0_264], %676 {strides = array<i32>} : memref<8x8x64xf32, #tpu.memory_space<vmem>>, vector<1x8x64xf32>,
    %c0_265 = arith.constant 0 : index
    %c0_266 = arith.constant 0 : index
    %c0_267 = arith.constant 0 : index
    %677 = vector.load %arg11[%c0_265, %c0_266, %c0_267] : memref<8x8x64xf32, #tpu.memory_space<vmem>>, vector<8x8x64xf32>
    %678 = vector.shape_cast %677 : vector<8x8x64xf32> to vector<64x64xf32>
    %679 = arith.truncf %678 : vector<64x64xf32> to vector<64x64xbf16>
    %c0_268 = arith.constant 0 : index
    %c0_269 = arith.constant 0 : index
    %680 = vector.load %arg7[%c0_268, %c0_269] : memref<64x128xbf16, #tpu.memory_space<vmem>>, vector<64x128xbf16>
    %cst_270 = arith.constant dense<0.000000e+00> : vector<64x128xf32>
    %681 = tpu.matmul %679, %680, %cst_270 {dimension_numbers = #tpu.dot_dimension_numbers<[1], [0], [0], [1], [0, 0, 1, 1], [], []>} : vector<64x64xbf16>, vector<64x128xbf16>, vector<64x128xf32> -> vector<64x128xf32>
    %c0_271 = arith.constant 0 : index
    %c0_272 = arith.constant 0 : index
    %682 = vector.load %arg8[%c0_271, %c0_272] : memref<1x128xf32, #tpu.memory_space<vmem>>, vector<1x128xf32>
    %683 = vector.broadcast %682 : vector<1x128xf32> to vector<64x128xf32>
    %684 = arith.addf %681, %683 : vector<64x128xf32>
    %685 = vector.shape_cast %684 : vector<64x128xf32> to vector<8x8x128xf32>
    %c0_273 = arith.constant 0 : index
    %c0_274 = arith.constant 0 : index
    %c0_275 = arith.constant 0 : index
    %686 = vector.load %arg9[%c0_273, %c0_274, %c0_275] : memref<8x8x128xf32, #tpu.memory_space<vmem>>, vector<8x8x128xf32>
    tpu.vector_store %arg9[%c0_273, %c0_274, %c0_275], %685 {strides = array<i32>} : memref<8x8x128xf32, #tpu.memory_space<vmem>>, vector<8x8x128xf32>,
    return
  }
}

</mosaic_0001>

<bundles_post_ra>
// kernel: bilstm_crf_forward.1
= control target key start
LH: loop header
LB: loop body
LE: loop exit
PB: predicated region body
PF: predicated region fallthrough
CT: control target
= control target key end

     0   :  { %v2127_v1 = vmov 0   ;;  %vm117_vm0 = vcmask 261120   ;;  %v33_v25 = vlaneseq  ;;  %vm292_vm4 = vcmask 523264   ;;  %s3092_s1 = inlined_call_operand.vmem [shape: bf16[32,256], index: 1, kind: input, shape index: {}]   ;;  %s3093_s0 = inlined_call_operand.vmem [shape: f32[8,8,32], index: 0, kind: input, shape index: {}]   ;;  %s3094_s2 = inlined_call_operand.vmem [shape: bf16[64,256], index: 2, kind: input, shape index: {}]   ;;  %s3095_s3 = inlined_call_operand.vmem [shape: f32[1,256], index: 3, kind: input, shape index: {}]   ;;  %s3096_s4 = inlined_call_operand.vmem [shape: bf16[64,256], index: 4, kind: input, shape index: {}]   ;;  %s3097_s5 = inlined_call_operand.vmem [shape: bf16[64,256], index: 5, kind: input, shape index: {}]   ;;  %s3098_s6 = inlined_call_operand.vmem [shape: f32[1,256], index: 6, kind: input, shape index: {}]   ;;  %s3099_s7 = inlined_call_operand.vmem [shape: bf16[64,128], index: 7, kind: input, shape index: {}]   ;;  %s3100_s8 = inlined_call_operand.vmem [shape: f32[1,128], index: 8, kind: input, shape index: {}]   ;;  %s3101_s9 = inlined_call_operand.vmem [shape: f32[8,8,128], index: 9, kind: output, shape index: {}]  }
   0x1   :  { %v1985_v0 = vld [vmem:[%s3092_s1 + $0x14] ss:$8 sps:$4 sm:$0xff]   ;;  %162 = vmatprep.mubr.bf16.mxu0 %v2127_v1  ;;  %182 = vmatprep.mubr.bf16.mxu1 %v2127_v1  ;;  %v1987_v2 = vld [vmem:[%s3092_s1 + $0x10] ss:$8 sps:$4 sm:$0xff]   ;;  %v1988_v3 = vld [vmem:[%s3092_s1 + $0x4] ss:$8 sps:$4 sm:$0xff]  }
   0x2   :  { %142 = vmatprep.subr.bf16.mxu0 %v1985_v0  ;;  %1979 = vmatprep.subr.bf16.mxu1 %v1985_v0  ;;  %v1990_v4 = vld [vmem:[%s3092_s1] ss:$8 sps:$4 sm:$0xff]   ;;  %v2208_v9 = vld [vmem:[%s3094_s2 + $0x34] ss:$8 sps:$4 sm:$0xff]   ;;  %v2213_v12 = vld [vmem:[%s3094_s2 + $0x30] ss:$8 sps:$4 sm:$0xff]  }
   0x3   :  { %v69_v5 = vld [vmem:[%s3093_s0] sm:$0xff]  ;;  %143 = vmatpush1.bf16.msra.mxu0 %v1987_v2  ;;  %1981 = vmatpush1.bf16.msra.mxu1 %v1987_v2  ;;  %v70_v6 = vld [vmem:[%s3093_s0 + $0x8] sm:$0xff]  ;;  %v71_v15 = vld [vmem:[%s3093_s0 + $0x10] sm:$0xff]  ;;  %v2293_v26 = vshrl.u32 %v33_v25, 7  ;;  %v2302_v31 = vand.u32 127, %v33_v25 }
   0x4   :  { %v73_v7 = vld [vmem:[%s3093_s0 + $0x20] sm:$0xff]  ;;  %v74_v8 = vld [vmem:[%s3093_s0 + $0x28] sm:$0xff]  ;;  %144 = vmatprep.subr.bf16.mxu0 %v1988_v3  ;;  %1980 = vmatprep.subr.bf16.mxu1 %v1988_v3  ;;  %v77_v10 = vpack.c.bf16 %v70_v6, %v69_v5  ;;  %v72_v16 = vld [vmem:[%s3093_s0 + $0x18] sm:$0xff] }
   0x5   :  { %v79_v11 = vpack.c.bf16 %v74_v8, %v73_v7  ;;  %v2219_v13 = vld [vmem:[%s3094_s2 + $0x24] ss:$8 sps:$4 sm:$0xff]   ;;  %v2227_v14 = vld [vmem:[%s3094_s2 + $0x20] ss:$8 sps:$4 sm:$0xff]   ;;  %v75_v17 = vld [vmem:[%s3093_s0 + $0x30] sm:$0xff]  ;;  %v78_v20 = vpack.c.bf16 %v72_v16, %v71_v15  ;;  %v89_v27 = vsub.s32 0, %v2293_v26 }
   0x6   :  { %v76_v18 = vld [vmem:[%s3093_s0 + $0x38] sm:$0xff]  ;;  %v2262_v23 = vld [vmem:[%s3094_s2 + $0x4] ss:$8 sps:$4 sm:$0xff]   ;;  %v2271_v24 = vld [vmem:[%s3094_s2] ss:$8 sps:$4 sm:$0xff]   ;;  %v93_v29 = vsub.s32 1, %v2293_v26 }
   0x7   :  { %145 = vmatpush1.bf16.msra.mxu0 %v1990_v4  ;;  %1982 = vmatpush1.bf16.msra.mxu1 %v1990_v4  ;;  %v2248_v19 = vld [vmem:[%s3094_s2 + $0x14] ss:$8 sps:$4 sm:$0xff]   ;;  %v80_v21 = vpack.c.bf16 %v76_v18, %v75_v17  ;;  %v2256_v22 = vld [vmem:[%s3094_s2 + $0x10] ss:$8 sps:$4 sm:$0xff]   ;;  %v85_v28 = vld [vmem:[%s3095_s3] sm:$0x3] }
   0x8   :  { %304 = vmatprep.subr.bf16.mxu1 %v2208_v9  ;;  %453 = vmatprep.subr.bf16.mxu0 %v2208_v9  ;;  %v90_v30 = vrot.slane %v85_v28, %v89_v27  ;;  %v94_v32 = vrot.slane %v85_v28, %v93_v29  ;;  %v2309_v36 = vadd.s32 128, %v2302_v31  ;;  %v40_v40 = vand.u32 63, %v2302_v31  ;;  %s2128_s3 = smov 64  }
   0x9   :  { %vm68_vm5 = vcmp.lt.s32.totalorder %v2302_v31, 32 }
   0xa   :  { %1900 = vmatmul.mubr.msk.bf16.vlgmr.msra.gmra.mxu0 %vm117_vm0, %v77_v10  ;;  %1902 = vmatmul.mubr.msk.bf16.vlgmr.msra.gmra.mxu1 %vm117_vm0, %v79_v11  ;;  %v47_v44 = vand.u32 63, %v2309_v36  ;;  %vm2321_vm1 = vcmp.lt.s32.totalorder %v40_v40, 32  ;;  %vm65_vm3 = vcmp.lt.s32.totalorder %v2309_v36, 192 }
   0xb   :  { %305 = vmatpush1.bf16.msra.mxu1 %v2213_v12  ;;  %172 = vmatprep.mubr.bf16.mxu0 %v2127_v1 }
   0xc   :  { %306 = vmatprep.subr.bf16.mxu1 %v2219_v13  ;;  %192 = vmatprep.mubr.bf16.mxu1 %v2127_v1  ;;  %vm2331_vm2 = vcmp.lt.s32.totalorder %v47_v44, 32 }
   0xd   :  { %454 = vmatpush1.bf16.msra.mxu0 %v2213_v12 }
   0xe   :  { %455 = vmatprep.subr.bf16.mxu0 %v2219_v13 }
   0xf   :  { %307 = vmatpush1.bf16.msra.mxu1 %v2227_v14 }
  0x10   :  { %308 = vmatprep.subr.bf16.mxu1 %v2248_v19 }
  0x11   :  { %456 = vmatpush1.bf16.msra.mxu0 %v2227_v14 }
  0x12   :  { %1901 = vmatmul.mubr.msk.bf16.gmra.mxu0 %vm117_vm0, %v78_v20  ;;  %1903 = vmatmul.mubr.msk.bf16.gmra.mxu1 %vm117_vm0, %v80_v21 }
  0x13   :  { %309 = vmatpush1.bf16.msra.mxu1 %v2256_v22  ;;  %328 = vmatprep.mubr.bf16.mxu1 %v2127_v1 }
  0x14   :  { %310 = vmatprep.subr.bf16.mxu1 %v2262_v23  ;;  %457 = vmatprep.subr.bf16.mxu0 %v2248_v19 }
  0x15   :  { %458 = vmatpush1.bf16.msra.mxu0 %v2256_v22  ;;  %477 = vmatprep.mubr.bf16.mxu0 %v2127_v1 }
  0x16   :  { %459 = vmatprep.subr.bf16.mxu0 %v2262_v23 }
  0x17   :  { %311 = vmatpush1.bf16.msra.mxu1 %v2271_v24 }
  0x18   :  { %378 = vmatprep.subr.bf16.mxu1 %v2208_v9 }
  0x19   :  { %460 = vmatpush1.bf16.msra.mxu0 %v2271_v24 }
  0x1a   :  { %329 = vmatmul.mubr.bf16.vlgmr.msra.gmra.mxu1 %v2127_v1  ;;  %603 = vmatprep.subr.bf16.mxu0 %v2208_v9 }
  0x1b   :  { %379 = vmatpush1.bf16.msra.mxu1 %v2213_v12  ;;  %402 = vmatprep.mubr.bf16.mxu1 %v2127_v1 }
  0x1c   :  { %380 = vmatprep.subr.bf16.mxu1 %v2219_v13 }
  0x1f   :  { %381 = vmatpush1.bf16.msra.mxu1 %v2227_v14 }
  0x20   :  { %382 = vmatprep.subr.bf16.mxu1 %v2248_v19 }
  0x23   :  { %383 = vmatpush1.bf16.msra.mxu1 %v2256_v22 }
  0x24   :  { %384 = vmatprep.subr.bf16.mxu1 %v2262_v23 }
  0x27   :  { %385 = vmatpush1.bf16.msra.mxu1 %v2271_v24 }
  0x28   :  { %528 = vmatprep.subr.bf16.mxu1 %v2208_v9 }
  0xca   :  { %v164_v33 = vpop.f32.mrf.mxu0  ;;  %v184_v34 = vpop.f32.mrf.mxu1 }
  0xcb   :  { %v2306_v35 = vadd.f32 %v184_v34, %v90_v30  ;;  %v2335_v56 = vadd.f32 %v164_v33, %v90_v30 }
  0xcc   :  { %v166_v37 = vpop.f32.mrf.mxu0  ;;  %v186_v38 = vpop.f32.mrf.mxu1 }
  0xcd   :  { %v2311_v39 = vadd.f32 %v186_v38, %v94_v32  ;;  %v2349_v63 = vadd.f32 %v166_v37, %v94_v32 }
  0xce   :  { %v168_v41 = vpop.f32.mrf.mxu0  ;;  %v188_v42 = vpop.f32.mrf.mxu1 }
  0xcf   :  { %v2314_v43 = vadd.f32 %v188_v42, %v90_v30  ;;  %v2317_v47 = vadd.f32 %v168_v41, %v90_v30 }
  0xd0   :  { %v170_v45 = vpop.f32.mrf.mxu0  ;;  %v190_v46 = vpop.f32.mrf.mxu1 }
  0xd1   :  { %v2319_v48 = vadd.f32 %v190_v46, %v94_v32  ;;  %v2325_v52 = vadd.f32 %v170_v45, %v94_v32 }
  0xd2   :  { %v174_v50 = vpop.f32.mrf.mxu0  ;;  %v194_v51 = vpop.f32.mrf.mxu1 }
  0xd3   :  { %v2327_v53 = vadd.f32 %v174_v50, %v90_v30  ;;  %v2329_v54 = vadd.f32 %v194_v51, %v90_v30 }
  0xd4   :  { %v176_v57 = vpop.f32.mrf.mxu0  ;;  %v196_v58 = vpop.f32.mrf.mxu1 }
  0xd5   :  { %v2337_v59 = vadd.f32 %v176_v57, %v94_v32  ;;  %v2339_v60 = vadd.f32 %v196_v58, %v94_v32  ;;  %v207_v61 = vsel %vm2321_vm1, %v2317_v47, %v2329_v54  ;;  %v212_v62 = vsel %vm2321_vm1, %v2327_v53, %v2314_v43 }
  0xd6   :  { %v178_v0 = vpop.f32.mrf.mxu0  ;;  %v198_v2 = vpop.f32.mrf.mxu1  ;;  %v227_v3 = vsel %vm2321_vm1, %v2314_v43, %v2327_v53  ;;  %v232_v4 = vsel %vm2321_vm1, %v2329_v54, %v2317_v47 }
  0xd7   :  { %v2359_v5 = vadd.f32 %v178_v0, %v90_v30  ;;  %v2361_v6 = vadd.f32 %v198_v2, %v90_v30  ;;  %v208_v7 = vsel %vm2331_vm2, %v2325_v52, %v2339_v60  ;;  %v213_v8 = vsel %vm2331_vm2, %v2337_v59, %v2319_v48 }
  0xd8   :  { %v180_v10 = vpop.f32.mrf.mxu0  ;;  %v200_v11 = vpop.f32.mrf.mxu1  ;;  %v228_v15 = vsel %vm2331_vm2, %v2319_v48, %v2337_v59  ;;  %v233_v16 = vsel %vm2331_vm2, %v2339_v60, %v2325_v52 }
  0xd9   :  { %v2379_v17 = vadd.f32 %v180_v10, %v94_v32  ;;  %v2381_v18 = vadd.f32 %v200_v11, %v94_v32  ;;  %v203_v20 = vsel %vm2321_vm1, %v2335_v56, %v2361_v6  ;;  %v217_v21 = vsel %vm2321_vm1, %v2359_v5, %v2306_v35 }
  0xda   :  { %v330_v25 = vpop.f32.mrf.mxu1  ;;  %v222_v28 = vsel %vm2321_vm1, %v2306_v35, %v2359_v5  ;;  %v237_v30 = vsel %vm2321_vm1, %v2361_v6, %v2335_v56 }
  0xdb   :  { %v337_v32 = vadd.f32 %v330_v25, %v203_v20  ;;  %v204_v33 = vsel %vm2331_vm2, %v2349_v63, %v2381_v18  ;;  %v218_v34 = vsel %vm2331_vm2, %v2379_v17, %v2311_v39  ;;  %v223_v37 = vsel %vm2331_vm2, %v2311_v39, %v2379_v17 }
  0xdc   :  { %v332_v38 = vpop.f32.mrf.mxu1  ;;  %v238_v40 = vsel %vm2331_vm2, %v2381_v18, %v2349_v63 }
  0xdd   :  { %2031 = vtanh.f32 %v337_v32  ;;  %v338_v41 = vadd.f32 %v332_v38, %v204_v33 }
  0xde   :  { %v334_v42 = vpop.f32.mrf.mxu1 }
  0xdf   :  { %2033 = vtanh.f32 %v338_v41 }
  0xe0   :  { %v335_v44 = vpop.f32.mrf.mxu1 }
  0xea   :  { %v2032_v45 = vpop.eup %2031 }
  0xeb   :  { %v341_v50 = vmul.f32 0.5, %v2032_v45 }
  0xec   :  { %v2034_v46 = vpop.eup %2033 }
  0xed   :  { %v342_v51 = vmul.f32 0.5, %v2034_v46  ;;  %v343_v58 = vadd.f32 0.5, %v341_v50 }
  0xef   :  { %v344_v57 = vadd.f32 0.5, %v342_v51  ;;  %v347_v10 = vmul.f32 0.0, %v343_v58 }
  0xf1   :  { %v346_v0 = vsel %vm65_vm3, %v2034_v46, %v344_v57 }
  0xf2   :  { %v348_v2 = vmul.f32 %v346_v0, %v343_v58 }
  0xf4   :  { %350 = vrot.lane.b32.xlu0 %v348_v2, %s2128_s3 }
 0x166   :  { %v351_v11 = vpop.permute.xlu0 %350 }
 0x167   :  { %v353_v20 = vadd.f32 %v351_v11, %v347_v10 }
 0x169   :  { %2035 = vtanh.f32 %v353_v20 }
 0x176   :  { %v2036_v25 = vpop.eup %2035 }
 0x177   :  { %v2419_v32 = vmul.f32 %v2036_v25, %v346_v0 }
 0x179   :  { %v363_v33 = vpack.c.bf16 %v2419_v32, %v2419_v32 }
 0x17b   :  { %365 = vrot.lane.b32.xlu0 %v363_v33, %s2128_s3 }
 0x1ed   :  { %v366_v38 = vpop.permute.xlu0 %365 }
 0x1ee   :  { %1912 = vmatmul.mubr.msk.bf16.vlgmr.msra.gmra.mxu1 %vm292_vm4, %v366_v38 }
 0x1ef   :  { %529 = vmatpush1.bf16.msra.mxu1 %v2213_v12  ;;  %552 = vmatprep.mubr.bf16.mxu1 %v2127_v1 }
 0x1f0   :  { %530 = vmatprep.subr.bf16.mxu1 %v2219_v13 }
 0x1f3   :  { %531 = vmatpush1.bf16.msra.mxu1 %v2227_v14 }
 0x1f4   :  { %532 = vmatprep.subr.bf16.mxu1 %v2248_v19 }
 0x1f7   :  { %533 = vmatpush1.bf16.msra.mxu1 %v2256_v22 }
 0x1f8   :  { %534 = vmatprep.subr.bf16.mxu1 %v2262_v23 }
 0x1fb   :  { %535 = vmatpush1.bf16.msra.mxu1 %v2271_v24 }
 0x1fc   :  { %678 = vmatprep.subr.bf16.mxu1 %v2208_v9 }
 0x2ae   :  { %v404_v41 = vpop.f32.mrf.mxu1 }
 0x2af   :  { %v411_v42 = vadd.f32 %v404_v41, %v207_v61 }
 0x2b0   :  { %v406_v44 = vpop.f32.mrf.mxu1 }
 0x2b1   :  { %2037 = vtanh.f32 %v411_v42  ;;  %v412_v45 = vadd.f32 %v406_v44, %v208_v7 }
 0x2b2   :  { %v408_v46 = vpop.f32.mrf.mxu1 }
 0x2b3   :  { %2039 = vtanh.f32 %v412_v45 }
 0x2b4   :  { %v409_v50 = vpop.f32.mrf.mxu1 }
 0x2be   :  { %v2038_v51 = vpop.eup %2037 }
 0x2bf   :  { %v415_v58 = vmul.f32 0.5, %v2038_v51 }
 0x2c0   :  { %v2040_v57 = vpop.eup %2039 }
 0x2c1   :  { %v416_v0 = vmul.f32 0.5, %v2040_v57  ;;  %v417_v10 = vadd.f32 0.5, %v415_v58 }
 0x2c3   :  { %v418_v2 = vadd.f32 0.5, %v416_v0  ;;  %v421_v33 = vmul.f32 %v417_v10, %v353_v20 }
 0x2c5   :  { %v420_v11 = vsel %vm65_vm3, %v2040_v57, %v418_v2 }
 0x2c6   :  { %v422_v25 = vmul.f32 %v420_v11, %v417_v10 }
 0x2c8   :  { %424 = vrot.lane.b32.xlu1 %v422_v25, %s2128_s3 }
 0x33a   :  { %v425_v61 = vpop.permute.xlu1 %424 }
 0x33b   :  { %v427_v38 = vadd.f32 %v425_v61, %v421_v33 }
 0x33d   :  { %2041 = vtanh.f32 %v427_v38 }
 0x34a   :  { %v2042_v7 = vpop.eup %2041 }
 0x34b   :  { %v2442_v41 = vmul.f32 %v2042_v7, %v420_v11 }
 0x34d   :  { %v438_v42 = vpack.c.bf16 %v2442_v41, %v2442_v41 }
 0x34f   :  { %440 = vrot.lane.b32.xlu1 %v438_v42, %s2128_s3 }
 0x3c1   :  { %v441_v44 = vpop.permute.xlu1 %440 }
 0x3c2   :  { %1913 = vmatmul.mubr.msk.bf16.vlgmr.msra.gmra.mxu0 %vm292_vm4, %v441_v44 }
 0x3c3   :  { %604 = vmatpush1.bf16.msra.mxu0 %v2213_v12  ;;  %627 = vmatprep.mubr.bf16.mxu0 %v2127_v1 }
 0x3c4   :  { %605 = vmatprep.subr.bf16.mxu0 %v2219_v13 }
 0x3c7   :  { %606 = vmatpush1.bf16.msra.mxu0 %v2227_v14 }
 0x3c8   :  { %607 = vmatprep.subr.bf16.mxu0 %v2248_v19 }
 0x3cb   :  { %608 = vmatpush1.bf16.msra.mxu0 %v2256_v22 }
 0x3cc   :  { %609 = vmatprep.subr.bf16.mxu0 %v2262_v23 }
 0x3cf   :  { %610 = vmatpush1.bf16.msra.mxu0 %v2271_v24 }
 0x3d0   :  { %753 = vmatprep.subr.bf16.mxu0 %v2208_v9 }
 0x482   :  { %v479_v20 = vpop.f32.mrf.mxu0 }
 0x483   :  { %v486_v45 = vadd.f32 %v479_v20, %v212_v62 }
 0x484   :  { %v481_v46 = vpop.f32.mrf.mxu0 }
 0x485   :  { %2043 = vtanh.f32 %v486_v45  ;;  %v487_v50 = vadd.f32 %v481_v46, %v213_v8 }
 0x486   :  { %v483_v51 = vpop.f32.mrf.mxu0 }
 0x487   :  { %2045 = vtanh.f32 %v487_v50 }
 0x488   :  { %v484_v57 = vpop.f32.mrf.mxu0 }
 0x492   :  { %v2044_v58 = vpop.eup %2043 }
 0x493   :  { %v490_v2 = vmul.f32 0.5, %v2044_v58 }
 0x494   :  { %v2046_v0 = vpop.eup %2045 }
 0x495   :  { %v491_v10 = vmul.f32 0.5, %v2046_v0  ;;  %v492_v25 = vadd.f32 0.5, %v490_v2 }
 0x497   :  { %v493_v11 = vadd.f32 0.5, %v491_v10  ;;  %v496_v61 = vmul.f32 %v492_v25, %v427_v38 }
 0x499   :  { %v495_v62 = vsel %vm65_vm3, %v2046_v0, %v493_v11 }
 0x49a   :  { %v497_v33 = vmul.f32 %v495_v62, %v492_v25 }
 0x49c   :  { %499 = vrot.lane.b32.xlu0 %v497_v33, %s2128_s3 }
 0x50e   :  { %v500_v7 = vpop.permute.xlu0 %499 }
 0x50f   :  { %v502_v42 = vadd.f32 %v500_v7, %v496_v61 }
 0x511   :  { %2047 = vtanh.f32 %v502_v42 }
 0x51e   :  { %v2048_v8 = vpop.eup %2047 }
 0x51f   :  { %v2470_v44 = vmul.f32 %v2048_v8, %v495_v62 }
 0x521   :  { %v513_v20 = vpack.c.bf16 %v2470_v44, %v2470_v44 }
 0x523   :  { %515 = vrot.lane.b32.xlu1 %v513_v20, %s2128_s3 }
 0x595   :  { %v516_v45 = vpop.permute.xlu1 %515 }
 0x596   :  { %1914 = vmatmul.mubr.msk.bf16.vlgmr.msra.gmra.mxu1 %vm292_vm4, %v516_v45 }
 0x597   :  { %679 = vmatpush1.bf16.msra.mxu1 %v2213_v12  ;;  %702 = vmatprep.mubr.bf16.mxu1 %v2127_v1 }
 0x598   :  { %680 = vmatprep.subr.bf16.mxu1 %v2219_v13 }
 0x59b   :  { %681 = vmatpush1.bf16.msra.mxu1 %v2227_v14 }
 0x59c   :  { %682 = vmatprep.subr.bf16.mxu1 %v2248_v19 }
 0x59f   :  { %683 = vmatpush1.bf16.msra.mxu1 %v2256_v22 }
 0x5a0   :  { %684 = vmatprep.subr.bf16.mxu1 %v2262_v23 }
 0x5a3   :  { %685 = vmatpush1.bf16.msra.mxu1 %v2271_v24 }
 0x5a4   :  { %828 = vmatprep.subr.bf16.mxu1 %v2208_v9 }
 0x656   :  { %v554_v38 = vpop.f32.mrf.mxu1 }
 0x657   :  { %v561_v46 = vadd.f32 %v554_v38, %v217_v21 }
 0x658   :  { %v556_v50 = vpop.f32.mrf.mxu1 }
 0x659   :  { %2049 = vtanh.f32 %v561_v46  ;;  %v562_v51 = vadd.f32 %v556_v50, %v218_v34 }
 0x65a   :  { %v558_v57 = vpop.f32.mrf.mxu1 }
 0x65b   :  { %2051 = vtanh.f32 %v562_v51 }
 0x65c   :  { %v559_v58 = vpop.f32.mrf.mxu1 }
 0x666   :  { %v2050_v0 = vpop.eup %2049 }
 0x667   :  { %v565_v2 = vmul.f32 0.5, %v2050_v0 }
 0x668   :  { %v2052_v9 = vpop.eup %2051 }
 0x669   :  { %v566_v10 = vmul.f32 0.5, %v2052_v9  ;;  %v567_v25 = vadd.f32 0.5, %v565_v2 }
 0x66b   :  { %v568_v11 = vadd.f32 0.5, %v566_v10  ;;  %v571_v33 = vmul.f32 %v567_v25, %v502_v42 }
 0x66d   :  { %v570_v21 = vsel %vm65_vm3, %v2052_v9, %v568_v11 }
 0x66e   :  { %v572_v62 = vmul.f32 %v570_v21, %v567_v25 }
 0x670   :  { %574 = vrot.lane.b32.xlu0 %v572_v62, %s2128_s3 }
 0x6e2   :  { %v575_v61 = vpop.permute.xlu0 %574 }
 0x6e3   :  { %v577_v7 = vadd.f32 %v575_v61, %v571_v33 }
 0x6e5   :  { %2053 = vtanh.f32 %v577_v7 }
 0x6f2   :  { %v2054_v34 = vpop.eup %2053 }
 0x6f3   :  { %v2498_v8 = vmul.f32 %v2054_v34, %v570_v21 }
 0x6f5   :  { %v588_v20 = vpack.c.bf16 %v2498_v8, %v2498_v8 }
 0x6f7   :  { %590 = vrot.lane.b32.xlu1 %v588_v20, %s2128_s3 }
 0x769   :  { %v591_v45 = vpop.permute.xlu1 %590 }
 0x76a   :  { %1915 = vmatmul.mubr.msk.bf16.vlgmr.msra.gmra.mxu0 %vm292_vm4, %v591_v45 }
 0x76b   :  { %754 = vmatpush1.bf16.msra.mxu0 %v2213_v12  ;;  %777 = vmatprep.mubr.bf16.mxu0 %v2127_v1 }
 0x76c   :  { %755 = vmatprep.subr.bf16.mxu0 %v2219_v13 }
 0x76f   :  { %756 = vmatpush1.bf16.msra.mxu0 %v2227_v14 }
 0x770   :  { %757 = vmatprep.subr.bf16.mxu0 %v2248_v19 }
 0x773   :  { %758 = vmatpush1.bf16.msra.mxu0 %v2256_v22 }
 0x774   :  { %759 = vmatprep.subr.bf16.mxu0 %v2262_v23 }
 0x777   :  { %760 = vmatpush1.bf16.msra.mxu0 %v2271_v24 }
 0x82a   :  { %v629_v42 = vpop.f32.mrf.mxu0 }
 0x82b   :  { %v636_v38 = vadd.f32 %v629_v42, %v222_v28 }
 0x82c   :  { %v631_v46 = vpop.f32.mrf.mxu0 }
 0x82d   :  { %2055 = vtanh.f32 %v636_v38  ;;  %v637_v50 = vadd.f32 %v631_v46, %v223_v37 }
 0x82e   :  { %v633_v51 = vpop.f32.mrf.mxu0 }
 0x82f   :  { %2057 = vtanh.f32 %v637_v50 }
 0x830   :  { %v634_v57 = vpop.f32.mrf.mxu0 }
 0x83a   :  { %v2056_v58 = vpop.eup %2055 }
 0x83b   :  { %v640_v9 = vmul.f32 0.5, %v2056_v58 }
 0x83c   :  { %v2058_v0 = vpop.eup %2057 }
 0x83d   :  { %v641_v2 = vmul.f32 0.5, %v2058_v0  ;;  %v642_v11 = vadd.f32 0.5, %v640_v9 }
 0x83f   :  { %v643_v10 = vadd.f32 0.5, %v641_v2  ;;  %v646_v28 = vmul.f32 %v642_v11, %v577_v7 }
 0x841   :  { %v645_v35 = vsel %vm65_vm3, %v2058_v0, %v643_v10 }
 0x842   :  { %v647_v5 = vmul.f32 %v645_v35, %v642_v11 }
 0x844   :  { %649 = vrot.lane.b32.xlu0 %v647_v5, %s2128_s3 }
 0x8b6   :  { %v650_v25 = vpop.permute.xlu0 %649 }
 0x8b7   :  { %v652_v21 = vadd.f32 %v650_v25, %v646_v28 }
 0x8b9   :  { %2059 = vtanh.f32 %v652_v21 }
 0x8c6   :  { %v2060_v39 = vpop.eup %2059 }
 0x8c7   :  { %v2525_v17 = vmul.f32 %v2060_v39, %v645_v35 }
 0x8c9   :  { %v663_v37 = vpack.c.bf16 %v2525_v17, %v2525_v17 }
 0x8cb   :  { %665 = vrot.lane.b32.xlu1 %v663_v37, %s2128_s3 }
 0x93d   :  { %v666_v62 = vpop.permute.xlu1 %665 }
 0x93e   :  { %1916 = vmatmul.mubr.msk.bf16.vlgmr.msra.gmra.mxu1 %vm292_vm4, %v666_v62 }
 0x93f   :  { %829 = vmatpush1.bf16.msra.mxu1 %v2213_v12  ;;  %852 = vmatprep.mubr.bf16.mxu1 %v2127_v1 }
 0x940   :  { %830 = vmatprep.subr.bf16.mxu1 %v2219_v13 }
 0x943   :  { %831 = vmatpush1.bf16.msra.mxu1 %v2227_v14 }
 0x944   :  { %832 = vmatprep.subr.bf16.mxu1 %v2248_v19 }
 0x947   :  { %833 = vmatpush1.bf16.msra.mxu1 %v2256_v22 }
 0x948   :  { %834 = vmatprep.subr.bf16.mxu1 %v2262_v23 }
 0x94b   :  { %835 = vmatpush1.bf16.msra.mxu1 %v2271_v24 }
 0x9fe   :  { %v704_v33 = vpop.f32.mrf.mxu1 }
 0x9ff   :  { %v711_v12 = vadd.f32 %v704_v33, %v227_v3 }
 0xa00   :  { %v706_v61 = vpop.f32.mrf.mxu1 }
 0xa01   :  { %2061 = vtanh.f32 %v711_v12  ;;  %v712_v13 = vadd.f32 %v706_v61, %v228_v15 }
 0xa02   :  { %v708_v14 = vpop.f32.mrf.mxu1 }
 0xa03   :  { %2063 = vtanh.f32 %v712_v13 }
 0xa04   :  { %v709_v19 = vpop.f32.mrf.mxu1 }
 0xa0e   :  { %v2062_v22 = vpop.eup %2061 }
 0xa0f   :  { %v715_v24 = vmul.f32 0.5, %v2062_v22 }
 0xa10   :  { %v2064_v23 = vpop.eup %2063 }
 0xa11   :  { %v716_v7 = vmul.f32 0.5, %v2064_v23  ;;  %v717_v20 = vadd.f32 0.5, %v715_v24 }
 0xa13   :  { %v718_v34 = vadd.f32 0.5, %v716_v7  ;;  %v721_v3 = vmul.f32 %v717_v20, %v652_v21 }
 0xa15   :  { %v720_v43 = vsel %vm65_vm3, %v2064_v23, %v718_v34  ;;  %v2005_v34 = vld [vmem:[%s3096_s4 + $0x34] ss:$8 sps:$4 sm:$0xff]  }
 0xa16   :  { %v722_v53 = vmul.f32 %v720_v43, %v717_v20  ;;  %v2003_v20 = vld [vmem:[%s3096_s4 + $0x30] ss:$8 sps:$4 sm:$0xff]   ;;  %1002 = vmatprep.subr.bf16.mxu0 %v2005_v34 }
 0xa18   :  { %724 = vrot.lane.b32.xlu0 %v722_v53, %s2128_s3  ;;  %v2008_v53 = vld [vmem:[%s3096_s4 + $0x24] ss:$8 sps:$4 sm:$0xff]  }
 0xa8a   :  { %v725_v45 = vpop.permute.xlu0 %724 }
 0xa8b   :  { %v727_v42 = vadd.f32 %v725_v45, %v721_v3 }
 0xa8d   :  { %2065 = vtanh.f32 %v727_v42 }
 0xa9a   :  { %v2066_v48 = vpop.eup %2065 }
 0xa9b   :  { %v2552_v59 = vmul.f32 %v2066_v48, %v720_v43 }
 0xa9d   :  { %v738_v15 = vpack.c.bf16 %v2552_v59, %v2552_v59 }
 0xa9f   :  { %740 = vrot.lane.b32.xlu1 %v738_v15, %s2128_s3  ;;  %v2011_v15 = vld [vmem:[%s3096_s4 + $0x14] ss:$8 sps:$4 sm:$0xff]  }
 0xb11   :  { %v741_v38 = vpop.permute.xlu1 %740 }
 0xb12   :  { %1917 = vmatmul.mubr.msk.bf16.vlgmr.msra.gmra.mxu0 %vm292_vm4, %v741_v38 }
 0xb13   :  { %1026 = vmatprep.mubr.bf16.mxu0 %v2127_v1  ;;  %1003 = vmatpush1.bf16.msra.mxu0 %v2003_v20 }
 0xb14   :  { %1004 = vmatprep.subr.bf16.mxu0 %v2008_v53 }
 0xbd2   :  { %v779_v46 = vpop.f32.mrf.mxu0 }
 0xbd3   :  { %v786_v50 = vadd.f32 %v779_v46, %v232_v4  ;;  %v2009_v46 = vld [vmem:[%s3096_s4 + $0x10] ss:$8 sps:$4 sm:$0xff]  }
 0xbd4   :  { %v781_v51 = vpop.f32.mrf.mxu0 }
 0xbd5   :  { %2067 = vtanh.f32 %v786_v50  ;;  %v787_v57 = vadd.f32 %v781_v51, %v233_v16  ;;  %v2014_v50 = vld [vmem:[%s3096_s4 + $0x4] ss:$8 sps:$4 sm:$0xff]   ;;  %v2012_v51 = vld [vmem:[%s3096_s4] ss:$8 sps:$4 sm:$0xff]  }
 0xbd6   :  { %v783_v58 = vpop.f32.mrf.mxu0 }
 0xbd7   :  { %2069 = vtanh.f32 %v787_v57  ;;  %v2641_v57 = vld [vmem:[%s3097_s5 + $0x34] ss:$8 sps:$4 sm:$0xff]   ;;  %v2646_v58 = vld [vmem:[%s3097_s5 + $0x30] ss:$8 sps:$4 sm:$0xff]  }
 0xbd8   :  { %v784_v0 = vpop.f32.mrf.mxu0  ;;  %1157 = vmatprep.subr.bf16.mxu1 %v2641_v57 }
 0xbd9   :  { %v2666_v0 = vld [vmem:[%s3097_s5 + $0x14] ss:$8 sps:$4 sm:$0xff]  }
 0xbe2   :  { %v2068_v9 = vpop.eup %2067 }
 0xbe3   :  { %v790_v10 = vmul.f32 0.5, %v2068_v9  ;;  %v2671_v9 = vld [vmem:[%s3097_s5 + $0x10] ss:$8 sps:$4 sm:$0xff]  }
 0xbe4   :  { %v2070_v2 = vpop.eup %2069 }
 0xbe5   :  { %v791_v11 = vmul.f32 0.5, %v2070_v2  ;;  %v792_v5 = vadd.f32 0.5, %v790_v10  ;;  %v2683_v10 = vld [vmem:[%s3097_s5] ss:$8 sps:$4 sm:$0xff]  }
 0xbe7   :  { %v793_v35 = vadd.f32 0.5, %v791_v11  ;;  %v796_v4 = vmul.f32 %v792_v5, %v727_v42  ;;  %v2006_v42 = vld [vmem:[%s3096_s4 + $0x20] ss:$8 sps:$4 sm:$0xff]  }
 0xbe8   :  { %1005 = vmatpush1.bf16.msra.mxu0 %v2006_v42 }
 0xbe9   :  { %v795_v47 = vsel %vm65_vm3, %v2070_v2, %v793_v35  ;;  %1006 = vmatprep.subr.bf16.mxu0 %v2011_v15  ;;  %v2676_v2 = vld [vmem:[%s3097_s5 + $0x4] ss:$8 sps:$4 sm:$0xff]  }
 0xbea   :  { %v797_v54 = vmul.f32 %v795_v47, %v792_v5 }
 0xbec   :  { %799 = vrot.lane.b32.xlu0 %v797_v54, %s2128_s3  ;;  %1007 = vmatpush1.bf16.msra.mxu0 %v2009_v46 }
 0xbed   :  { %1008 = vmatprep.subr.bf16.mxu0 %v2014_v50 }
 0xbf0   :  { %1009 = vmatpush1.bf16.msra.mxu0 %v2012_v51 }
 0xbf1   :  { %1305 = vmatprep.subr.bf16.mxu0 %v2641_v57 }
 0xc5e   :  { %v800_v28 = vpop.permute.xlu0 %799 }
 0xc5f   :  { %v802_v25 = vadd.f32 %v800_v28, %v796_v4 }
 0xc61   :  { %2071 = vtanh.f32 %v802_v25 }
 0xc6e   :  { %v2072_v52 = vpop.eup %2071 }
 0xc6f   :  { %v804_v60 = vmul.f32 %v2072_v52, %v795_v47 }
 0xc71   :  { %v813_v16 = vpack.c.bf16 %v804_v60, %v804_v60 }
 0xc73   :  { %815 = vrot.lane.b32.xlu1 %v813_v16, %s2128_s3 }
 0xc77   :  { %357 = vrot.lane.b32.xlu1 %v2419_v32, %s2128_s3 }
 0xc7b   :  { %806 = vrot.lane.b32.xlu1 %v804_v60, %s2128_s3 }
 0xc7f   :  { %506 = vrot.lane.b32.xlu1 %v2470_v44, %s2128_s3 }
 0xc83   :  { %656 = vrot.lane.b32.xlu1 %v2525_v17, %s2128_s3 }
 0xce5   :  { %v816_v21 = vpop.permute.xlu1 %815 }
 0xce6   :  { %1918 = vmatmul.mubr.msk.bf16.vlgmr.msra.gmra.mxu1 %vm292_vm4, %v816_v21 }
 0xce7   :  { %1181 = vmatprep.mubr.bf16.mxu1 %v2127_v1  ;;  %1158 = vmatpush1.bf16.msra.mxu1 %v2646_v58 }
 0xce9   :  { %v358_v39 = vpop.permute.xlu1 %357 }
 0xcea   :  { %360 = vst.msk [vmem:[#allocation3] sm:$0xff] %vm292_vm4, %v358_v39 }
 0xced   :  { %v807_v37 = vpop.permute.xlu1 %806 }
 0xcee   :  { %810 = vst.msk [vmem:[#allocation3 + $0x30] sm:$0xff] %vm292_vm4, %v807_v37 }
 0xcf1   :  { %v507_v32 = vpop.permute.xlu1 %506  ;;  %v886_v5 = vld [vmem:[#allocation3] sm:$0xff] }
 0xcf2   :  { %510 = vst.msk [vmem:[#allocation3 + $0x10] sm:$0xff] %vm292_vm4, %v507_v32 }
 0xcf5   :  { %v657_v62 = vpop.permute.xlu1 %656 }
 0xcf6   :  { %660 = vst.msk [vmem:[#allocation3 + $0x20] sm:$0xff] %vm292_vm4, %v657_v62 }
 0xcf9   :  { %v888_v21 = vld [vmem:[#allocation3 + $0x10] sm:$0xff] }
 0xda6   :  { %v854_v44 = vpop.f32.mrf.mxu1 }
 0xda7   :  { %v861_v17 = vadd.f32 %v854_v44, %v237_v30 }
 0xda8   :  { %v856_v33 = vpop.f32.mrf.mxu1 }
 0xda9   :  { %2073 = vtanh.f32 %v861_v17  ;;  %v862_v12 = vadd.f32 %v856_v33, %v238_v40 }
 0xdaa   :  { %v858_v61 = vpop.f32.mrf.mxu1 }
 0xdab   :  { %2075 = vtanh.f32 %v862_v12 }
 0xdac   :  { %v859_v13 = vpop.f32.mrf.mxu1 }
 0xdb6   :  { %v2074_v14 = vpop.eup %2073 }
 0xdb7   :  { %v865_v22 = vmul.f32 0.5, %v2074_v14 }
 0xdb8   :  { %v2076_v19 = vpop.eup %2075 }
 0xdb9   :  { %v866_v23 = vmul.f32 0.5, %v2076_v19  ;;  %v867_v7 = vadd.f32 0.5, %v865_v22 }
 0xdbb   :  { %v868_v24 = vadd.f32 0.5, %v866_v23  ;;  %v871_v63 = vmul.f32 %v867_v7, %v802_v25  ;;  %v890_v25 = vld [vmem:[#allocation3 + $0x20] sm:$0xff] }
 0xdbd   :  { %v870_v56 = vsel %vm65_vm3, %v2076_v19, %v868_v24 }
 0xdbe   :  { %v872_v6 = vmul.f32 %v870_v56, %v867_v7 }
 0xdc0   :  { %874 = vrot.lane.b32.xlu0 %v872_v6, %s2128_s3 }
 0xdc4   :  { %431 = vrot.lane.b32.xlu0 %v2442_v41, %s2128_s3  ;;  %v892_v41 = vld [vmem:[#allocation3 + $0x30] sm:$0xff] }
 0xe32   :  { %v875_v18 = vpop.permute.xlu0 %874 }
 0xe33   :  { %v877_v30 = vadd.f32 %v875_v18, %v871_v63  ;;  %v930_v18 = vld [vmem:[%s3098_s6] sm:$0x3] }
 0xe34   :  { %v935_v34 = vrot.slane %v930_v18, %v89_v27 }
 0xe35   :  { %2077 = vtanh.f32 %v877_v30 }
 0xe36   :  { %v432_v40 = vpop.permute.xlu0 %431 }
 0xe37   :  { %435 = vst.msk [vmem:[#allocation3 + $0x8] sm:$0xff] %vm292_vm4, %v432_v40 }
 0xe3e   :  { %v887_v43 = vld [vmem:[#allocation3 + $0x8] sm:$0xff] }
 0xe3f   :  { %v896_v3 = vsel %vm68_vm5, %v887_v43, %v892_v41  ;;  %v906_v45 = vsel %vm68_vm5, %v892_v41, %v887_v43  ;;  %v939_v41 = vrot.slane %v930_v18, %v93_v29 }
 0xe40   :  { %897 = vst.msk [vmem:[#allocation3 + $0x8] sm:$0xff] %vm292_vm4, %v896_v3  ;;  %907 = vst.msk [vmem:[#allocation3 + $0x30] sm:$0xff] %vm292_vm4, %v906_v45 }
 0xe42   :  { %v2078_v48 = vpop.eup %2077 }
 0xe43   :  { %v879_v38 = vmul.f32 %v2078_v48, %v870_v56 }
 0xe45   :  { %881 = vrot.lane.b32.xlu0 %v879_v38, %s2128_s3 }
 0xe47   :  { %v911_v44 = vld [vmem:[#allocation3 + $0x8] sm:$0xff]  ;;  %v916_v23 = vld [vmem:[#allocation3 + $0x30] sm:$0xff] }
 0xe49   :  { %581 = vrot.lane.b32.xlu0 %v2498_v8, %s2128_s3  ;;  %v2652_v8 = vld [vmem:[%s3097_s5 + $0x24] ss:$8 sps:$4 sm:$0xff]  }
 0xe4a   :  { %1159 = vmatprep.subr.bf16.mxu1 %v2652_v8 }
 0xe4d   :  { %731 = vrot.lane.b32.xlu0 %v2552_v59, %s2128_s3  ;;  %v2657_v59 = vld [vmem:[%s3097_s5 + $0x20] ss:$8 sps:$4 sm:$0xff]  }
 0xe4e   :  { %1160 = vmatpush1.bf16.msra.mxu1 %v2657_v59 }
 0xe4f   :  { %1161 = vmatprep.subr.bf16.mxu1 %v2666_v0 }
 0xe52   :  { %1162 = vmatpush1.bf16.msra.mxu1 %v2671_v9 }
 0xe53   :  { %1163 = vmatprep.subr.bf16.mxu1 %v2676_v2 }
 0xe56   :  { %1164 = vmatpush1.bf16.msra.mxu1 %v2683_v10 }
 0xe57   :  { %1231 = vmatprep.subr.bf16.mxu1 %v2641_v57 }
 0xe59   :  { %1182 = vmatmul.mubr.bf16.vlgmr.msra.gmra.mxu1 %v2127_v1 }
 0xe5a   :  { %1232 = vmatpush1.bf16.msra.mxu1 %v2646_v58  ;;  %1255 = vmatprep.mubr.bf16.mxu1 %v2127_v1 }
 0xe5b   :  { %1233 = vmatprep.subr.bf16.mxu1 %v2652_v8 }
 0xe5e   :  { %1234 = vmatpush1.bf16.msra.mxu1 %v2657_v59 }
 0xe5f   :  { %1235 = vmatprep.subr.bf16.mxu1 %v2666_v0 }
 0xe62   :  { %1236 = vmatpush1.bf16.msra.mxu1 %v2671_v9 }
 0xe63   :  { %1237 = vmatprep.subr.bf16.mxu1 %v2676_v2 }
 0xe66   :  { %1238 = vmatpush1.bf16.msra.mxu1 %v2683_v10 }
 0xe67   :  { %1379 = vmatprep.subr.bf16.mxu1 %v2641_v57 }
 0xeb7   :  { %v882_v11 = vpop.permute.xlu0 %881 }
 0xeb8   :  { %885 = vst.msk [vmem:[#allocation3 + $0x38] sm:$0xff] %vm292_vm4, %v882_v11 }
 0xebb   :  { %v582_v35 = vpop.permute.xlu0 %581 }
 0xebc   :  { %585 = vst.msk [vmem:[#allocation3 + $0x18] sm:$0xff] %vm292_vm4, %v582_v35 }
 0xebf   :  { %v893_v47 = vld [vmem:[#allocation3 + $0x38] sm:$0xff]  ;;  %v732_v54 = vpop.permute.xlu0 %731 }
 0xec0   :  { %v894_v4 = vsel %vm68_vm5, %v886_v5, %v893_v47  ;;  %v908_v28 = vsel %vm68_vm5, %v893_v47, %v886_v5  ;;  %735 = vst.msk [vmem:[#allocation3 + $0x28] sm:$0xff] %vm292_vm4, %v732_v54 }
 0xec1   :  { %895 = vst.msk [vmem:[#allocation3] sm:$0xff] %vm292_vm4, %v894_v4  ;;  %909 = vst.msk [vmem:[#allocation3 + $0x38] sm:$0xff] %vm292_vm4, %v908_v28 }
 0xec3   :  { %v889_v52 = vld [vmem:[#allocation3 + $0x18] sm:$0xff] }
 0xec4   :  { %v900_v60 = vsel %vm68_vm5, %v889_v52, %v890_v25  ;;  %v902_v16 = vsel %vm68_vm5, %v890_v25, %v889_v52 }
 0xec5   :  { %901 = vst.msk [vmem:[#allocation3 + $0x18] sm:$0xff] %vm292_vm4, %v900_v60  ;;  %903 = vst.msk [vmem:[#allocation3 + $0x20] sm:$0xff] %vm292_vm4, %v902_v16 }
 0xec7   :  { %v891_v39 = vld [vmem:[#allocation3 + $0x28] sm:$0xff] }
 0xec8   :  { %v898_v37 = vsel %vm68_vm5, %v888_v21, %v891_v39  ;;  %v904_v32 = vsel %vm68_vm5, %v891_v39, %v888_v21  ;;  %v910_v62 = vld [vmem:[#allocation3] sm:$0xff]  ;;  %v917_v22 = vld [vmem:[#allocation3 + $0x38] sm:$0xff] }
 0xec9   :  { %899 = vst.msk [vmem:[#allocation3 + $0x10] sm:$0xff] %vm292_vm4, %v898_v37  ;;  %905 = vst.msk [vmem:[#allocation3 + $0x28] sm:$0xff] %vm292_vm4, %v904_v32  ;;  %v918_v17 = vpack.c.bf16 %v911_v44, %v910_v62  ;;  %v921_v24 = vpack.c.bf16 %v917_v22, %v916_v23 }
 0xecb   :  { %1927 = vmatmul.mubr.msk.bf16.vlgmr.msra.gmra.mxu0 %vm292_vm4, %v918_v17 }
 0xecc   :  { %1036 = vmatprep.mubr.bf16.mxu0 %v2127_v1  ;;  %1306 = vmatpush1.bf16.msra.mxu0 %v2646_v58  ;;  %v913_v12 = vld [vmem:[#allocation3 + $0x18] sm:$0xff]  ;;  %v914_v14 = vld [vmem:[#allocation3 + $0x20] sm:$0xff] }
 0xecd   :  { %1307 = vmatprep.subr.bf16.mxu0 %v2652_v8 }
 0xed0   :  { %v912_v33 = vld [vmem:[#allocation3 + $0x10] sm:$0xff]  ;;  %1308 = vmatpush1.bf16.msra.mxu0 %v2657_v59  ;;  %v915_v13 = vld [vmem:[#allocation3 + $0x28] sm:$0xff] }
 0xed1   :  { %v919_v61 = vpack.c.bf16 %v913_v12, %v912_v33  ;;  %1309 = vmatprep.subr.bf16.mxu0 %v2666_v0  ;;  %v920_v19 = vpack.c.bf16 %v915_v13, %v914_v14 }
 0xed3   :  { %1928 = vmatmul.mubr.msk.bf16.gmra.mxu0 %vm292_vm4, %v919_v61 }
 0xed4   :  { %1046 = vmatprep.mubr.bf16.mxu0 %v2127_v1  ;;  %1310 = vmatpush1.bf16.msra.mxu0 %v2671_v9 }
 0xed5   :  { %1311 = vmatprep.subr.bf16.mxu0 %v2676_v2 }
 0xed8   :  { %1312 = vmatpush1.bf16.msra.mxu0 %v2683_v10 }
 0xed9   :  { %1453 = vmatprep.subr.bf16.mxu0 %v2641_v57 }
 0xedb   :  { %1929 = vmatmul.mubr.msk.bf16.gmra.mxu0 %vm292_vm4, %v920_v19 }
 0xedc   :  { %1056 = vmatprep.mubr.bf16.mxu0 %v2127_v1 }
 0xee3   :  { %1930 = vmatmul.mubr.msk.bf16.gmra.mxu0 %vm292_vm4, %v921_v24 }
 0xee4   :  { %1329 = vmatprep.mubr.bf16.mxu0 %v2127_v1 }
 0xf19   :  { %v1183_v7 = vpop.f32.mrf.mxu1 }
 0xf1b   :  { %v1185_v56 = vpop.f32.mrf.mxu1 }
 0xf1d   :  { %v1187_v6 = vpop.f32.mrf.mxu1 }
 0xf1f   :  { %v1188_v63 = vpop.f32.mrf.mxu1 }
 0xf8b   :  { %v1028_v30 = vpop.f32.mrf.mxu0 }
 0xf8c   :  { %v2806_v61 = vadd.f32 %v1028_v30, %v935_v34 }
 0xf8d   :  { %v1030_v40 = vpop.f32.mrf.mxu0 }
 0xf8e   :  { %v2818_v23 = vadd.f32 %v1030_v40, %v939_v41 }
 0xf8f   :  { %v1032_v20 = vpop.f32.mrf.mxu0 }
 0xf90   :  { %v2742_v43 = vadd.f32 %v1032_v20, %v935_v34 }
 0xf91   :  { %v1034_v53 = vpop.f32.mrf.mxu0 }
 0xf92   :  { %v2744_v3 = vadd.f32 %v1034_v53, %v939_v41 }
 0xf93   :  { %v1038_v45 = vpop.f32.mrf.mxu0 }
 0xf94   :  { %v2746_v42 = vadd.f32 %v1038_v45, %v935_v34 }
 0xf95   :  { %v1040_v48 = vpop.f32.mrf.mxu0 }
 0xf96   :  { %v2748_v15 = vadd.f32 %v1040_v48, %v939_v41 }
 0xf97   :  { %v1042_v38 = vpop.f32.mrf.mxu0 }
 0xf98   :  { %v2750_v46 = vadd.f32 %v1042_v38, %v935_v34 }
 0xf99   :  { %v1044_v50 = vpop.f32.mrf.mxu0 }
 0xf9a   :  { %v2752_v27 = vadd.f32 %v1044_v50, %v939_v41 }
 0xf9b   :  { %v1048_v51 = vpop.f32.mrf.mxu0 }
 0xf9c   :  { %v2754_v26 = vadd.f32 %v1048_v51, %v935_v34 }
 0xf9d   :  { %v1050_v29 = vpop.f32.mrf.mxu0 }
 0xf9e   :  { %v2756_v11 = vadd.f32 %v1050_v29, %v939_v41  ;;  %v1079_v35 = vsel %vm2321_vm1, %v2750_v46, %v2754_v26  ;;  %v1083_v5 = vsel %vm2321_vm1, %v2754_v26, %v2750_v46 }
 0xf9f   :  { %v1052_v47 = vpop.f32.mrf.mxu0 }
 0xfa0   :  { %v2766_v54 = vadd.f32 %v1052_v47, %v935_v34  ;;  %v1080_v4 = vsel %vm2331_vm2, %v2752_v27, %v2756_v11  ;;  %v1084_v28 = vsel %vm2331_vm2, %v2756_v11, %v2752_v27 }
 0xfa1   :  { %v1054_v25 = vpop.f32.mrf.mxu0 }
 0xfa2   :  { %v2776_v52 = vadd.f32 %v1054_v25, %v939_v41  ;;  %v1075_v60 = vsel %vm2321_vm1, %v2746_v42, %v2766_v54  ;;  %v1087_v16 = vsel %vm2321_vm1, %v2766_v54, %v2746_v42 }
 0xfa3   :  { %v1058_v21 = vpop.f32.mrf.mxu0 }
 0xfa4   :  { %v2786_v39 = vadd.f32 %v1058_v21, %v935_v34  ;;  %v1076_v37 = vsel %vm2331_vm2, %v2748_v15, %v2776_v52  ;;  %v1088_v32 = vsel %vm2331_vm2, %v2776_v52, %v2748_v15 }
 0xfa5   :  { %v1060_v62 = vpop.f32.mrf.mxu0 }
 0xfa6   :  { %v2796_v44 = vadd.f32 %v1060_v62, %v939_v41  ;;  %v1071_v17 = vsel %vm2321_vm1, %v2742_v43, %v2786_v39  ;;  %v1091_v33 = vsel %vm2321_vm1, %v2786_v39, %v2742_v43 }
 0xfa7   :  { %v1062_v12 = vpop.f32.mrf.mxu0 }
 0xfa8   :  { %v2808_v13 = vadd.f32 %v1062_v12, %v935_v34  ;;  %v1072_v14 = vsel %vm2331_vm2, %v2744_v3, %v2796_v44  ;;  %v1092_v19 = vsel %vm2331_vm2, %v2796_v44, %v2744_v3 }
 0xfa9   :  { %v1064_v22 = vpop.f32.mrf.mxu0 }
 0xfaa   :  { %v1067_v24 = vsel %vm2321_vm1, %v2806_v61, %v2808_v13  ;;  %v2824_v6 = vadd.f32 %v1064_v22, %v939_v41  ;;  %v1095_v63 = vsel %vm2321_vm1, %v2808_v13, %v2806_v61 }
 0xfab   :  { %v1190_v18 = vadd.f32 %v1183_v7, %v1067_v24 }
 0xfac   :  { %v1068_v30 = vsel %vm2331_vm2, %v2818_v23, %v2824_v6  ;;  %v1096_v40 = vsel %vm2331_vm2, %v2824_v6, %v2818_v23 }
 0xfad   :  { %2079 = vtanh.f32 %v1190_v18  ;;  %v1191_v34 = vadd.f32 %v1185_v56, %v1068_v30 }
 0xfaf   :  { %2081 = vtanh.f32 %v1191_v34 }
 0xfba   :  { %v2080_v20 = vpop.eup %2079 }
 0xfbb   :  { %v1194_v53 = vmul.f32 0.5, %v2080_v20 }
 0xfbc   :  { %v2082_v41 = vpop.eup %2081 }
 0xfbd   :  { %v1195_v45 = vmul.f32 0.5, %v2082_v41  ;;  %v1196_v38 = vadd.f32 0.5, %v1194_v53 }
 0xfbf   :  { %v1197_v48 = vadd.f32 0.5, %v1195_v45  ;;  %v1200_v51 = vmul.f32 0.0, %v1196_v38 }
 0xfc1   :  { %v1199_v7 = vsel %vm65_vm3, %v2082_v41, %v1197_v48 }
 0xfc2   :  { %v1201_v50 = vmul.f32 %v1199_v7, %v1196_v38 }
 0xfc4   :  { %1203 = vrot.lane.b32.xlu1 %v1201_v50, %s2128_s3 }
0x1036   :  { %v1204_v29 = vpop.permute.xlu1 %1203 }
0x1037   :  { %v1206_v47 = vadd.f32 %v1204_v29, %v1200_v51 }
0x1039   :  { %2083 = vtanh.f32 %v1206_v47 }
0x1046   :  { %v2084_v25 = vpop.eup %2083 }
0x1047   :  { %v2841_v21 = vmul.f32 %v2084_v25, %v1199_v7 }
0x1049   :  { %v1216_v56 = vpack.c.bf16 %v2841_v21, %v2841_v21 }
0x104b   :  { %1218 = vrot.lane.b32.xlu0 %v1216_v56, %s2128_s3 }
0x10bd   :  { %v1219_v62 = vpop.permute.xlu0 %1218 }
0x10be   :  { %1939 = vmatmul.mubr.msk.bf16.vlgmr.msra.gmra.mxu1 %vm292_vm4, %v1219_v62 }
0x10bf   :  { %1380 = vmatpush1.bf16.msra.mxu1 %v2646_v58  ;;  %1403 = vmatprep.mubr.bf16.mxu1 %v2127_v1 }
0x10c0   :  { %1381 = vmatprep.subr.bf16.mxu1 %v2652_v8 }
0x10c3   :  { %1382 = vmatpush1.bf16.msra.mxu1 %v2657_v59 }
0x10c4   :  { %1383 = vmatprep.subr.bf16.mxu1 %v2666_v0 }
0x10c7   :  { %1384 = vmatpush1.bf16.msra.mxu1 %v2671_v9 }
0x10c8   :  { %1385 = vmatprep.subr.bf16.mxu1 %v2676_v2 }
0x10cb   :  { %1386 = vmatpush1.bf16.msra.mxu1 %v2683_v10 }
0x10cc   :  { %1527 = vmatprep.subr.bf16.mxu1 %v2641_v57 }
0x117e   :  { %v1257_v12 = vpop.f32.mrf.mxu1 }
0x117f   :  { %v1264_v22 = vadd.f32 %v1257_v12, %v1071_v17 }
0x1180   :  { %v1259_v24 = vpop.f32.mrf.mxu1 }
0x1181   :  { %2085 = vtanh.f32 %v1264_v22  ;;  %v1265_v18 = vadd.f32 %v1259_v24, %v1072_v14 }
0x1182   :  { %v1261_v30 = vpop.f32.mrf.mxu1 }
0x1183   :  { %2087 = vtanh.f32 %v1265_v18 }
0x1184   :  { %v1262_v34 = vpop.f32.mrf.mxu1 }
0x118e   :  { %v2086_v20 = vpop.eup %2085 }
0x118f   :  { %v1268_v53 = vmul.f32 0.5, %v2086_v20 }
0x1190   :  { %v2088_v41 = vpop.eup %2087 }
0x1191   :  { %v1269_v45 = vmul.f32 0.5, %v2088_v41  ;;  %v1270_v38 = vadd.f32 0.5, %v1268_v53 }
0x1193   :  { %v1271_v48 = vadd.f32 0.5, %v1269_v45  ;;  %v1274_v51 = vmul.f32 %v1270_v38, %v1206_v47 }
0x1195   :  { %v1273_v7 = vsel %vm65_vm3, %v2088_v41, %v1271_v48 }
0x1196   :  { %v1275_v50 = vmul.f32 %v1273_v7, %v1270_v38 }
0x1198   :  { %1277 = vrot.lane.b32.xlu1 %v1275_v50, %s2128_s3 }
0x120a   :  { %v1278_v17 = vpop.permute.xlu1 %1277 }
0x120b   :  { %v1280_v29 = vadd.f32 %v1278_v17, %v1274_v51 }
0x120d   :  { %2089 = vtanh.f32 %v1280_v29 }
0x121a   :  { %v2090_v14 = vpop.eup %2089 }
0x121b   :  { %v2859_v25 = vmul.f32 %v2090_v14, %v1273_v7 }
0x121d   :  { %v1290_v56 = vpack.c.bf16 %v2859_v25, %v2859_v25 }
0x121f   :  { %1292 = vrot.lane.b32.xlu0 %v1290_v56, %s2128_s3 }
0x1291   :  { %v1293_v62 = vpop.permute.xlu0 %1292 }
0x1292   :  { %1940 = vmatmul.mubr.msk.bf16.vlgmr.msra.gmra.mxu0 %vm292_vm4, %v1293_v62 }
0x1293   :  { %1454 = vmatpush1.bf16.msra.mxu0 %v2646_v58  ;;  %1477 = vmatprep.mubr.bf16.mxu0 %v2127_v1 }
0x1294   :  { %1455 = vmatprep.subr.bf16.mxu0 %v2652_v8 }
0x1297   :  { %1456 = vmatpush1.bf16.msra.mxu0 %v2657_v59 }
0x1298   :  { %1457 = vmatprep.subr.bf16.mxu0 %v2666_v0 }
0x129b   :  { %1458 = vmatpush1.bf16.msra.mxu0 %v2671_v9 }
0x129c   :  { %1459 = vmatprep.subr.bf16.mxu0 %v2676_v2 }
0x129f   :  { %1460 = vmatpush1.bf16.msra.mxu0 %v2683_v10 }
0x12a0   :  { %1601 = vmatprep.subr.bf16.mxu0 %v2641_v57 }
0x1352   :  { %v1331_v47 = vpop.f32.mrf.mxu0 }
0x1353   :  { %v1338_v12 = vadd.f32 %v1331_v47, %v1075_v60 }
0x1354   :  { %v1333_v22 = vpop.f32.mrf.mxu0 }
0x1355   :  { %2091 = vtanh.f32 %v1338_v12  ;;  %v1339_v24 = vadd.f32 %v1333_v22, %v1076_v37 }
0x1356   :  { %v1335_v18 = vpop.f32.mrf.mxu0 }
0x1357   :  { %2093 = vtanh.f32 %v1339_v24 }
0x1358   :  { %v1336_v30 = vpop.f32.mrf.mxu0 }
0x1362   :  { %v2092_v34 = vpop.eup %2091 }
0x1363   :  { %v1342_v41 = vmul.f32 0.5, %v2092_v34 }
0x1364   :  { %v2094_v20 = vpop.eup %2093 }
0x1365   :  { %v1343_v53 = vmul.f32 0.5, %v2094_v20  ;;  %v1344_v48 = vadd.f32 0.5, %v1342_v41 }
0x1367   :  { %v1345_v45 = vadd.f32 0.5, %v1343_v53  ;;  %v1348_v7 = vmul.f32 %v1344_v48, %v1280_v29 }
0x1369   :  { %v1347_v60 = vsel %vm65_vm3, %v2094_v20, %v1345_v45 }
0x136a   :  { %v1349_v38 = vmul.f32 %v1347_v60, %v1344_v48 }
0x136c   :  { %1351 = vrot.lane.b32.xlu1 %v1349_v38, %s2128_s3 }
0x13de   :  { %v1352_v50 = vpop.permute.xlu1 %1351 }
0x13df   :  { %v1354_v51 = vadd.f32 %v1352_v50, %v1348_v7 }
0x13e1   :  { %2095 = vtanh.f32 %v1354_v51 }
0x13ee   :  { %v2096_v37 = vpop.eup %2095 }
0x13ef   :  { %v2887_v17 = vmul.f32 %v2096_v37, %v1347_v60 }
0x13f1   :  { %v1364_v14 = vpack.c.bf16 %v2887_v17, %v2887_v17 }
0x13f3   :  { %1366 = vrot.lane.b32.xlu0 %v1364_v14, %s2128_s3 }
0x1465   :  { %v1367_v56 = vpop.permute.xlu0 %1366 }
0x1466   :  { %1941 = vmatmul.mubr.msk.bf16.vlgmr.msra.gmra.mxu1 %vm292_vm4, %v1367_v56 }
0x1467   :  { %1528 = vmatpush1.bf16.msra.mxu1 %v2646_v58  ;;  %1551 = vmatprep.mubr.bf16.mxu1 %v2127_v1 }
0x1468   :  { %1529 = vmatprep.subr.bf16.mxu1 %v2652_v8 }
0x146b   :  { %1530 = vmatpush1.bf16.msra.mxu1 %v2657_v59 }
0x146c   :  { %1531 = vmatprep.subr.bf16.mxu1 %v2666_v0 }
0x146f   :  { %1532 = vmatpush1.bf16.msra.mxu1 %v2671_v9 }
0x1470   :  { %1533 = vmatprep.subr.bf16.mxu1 %v2676_v2 }
0x1473   :  { %1534 = vmatpush1.bf16.msra.mxu1 %v2683_v10 }
0x1474   :  { %1675 = vmatprep.subr.bf16.mxu1 %v2641_v57 }
0x1526   :  { %v1405_v29 = vpop.f32.mrf.mxu1 }
0x1527   :  { %v1412_v62 = vadd.f32 %v1405_v29, %v1079_v35 }
0x1528   :  { %v1407_v47 = vpop.f32.mrf.mxu1 }
0x1529   :  { %2097 = vtanh.f32 %v1412_v62  ;;  %v1413_v12 = vadd.f32 %v1407_v47, %v1080_v4 }
0x152a   :  { %v1409_v22 = vpop.f32.mrf.mxu1 }
0x152b   :  { %2099 = vtanh.f32 %v1413_v12 }
0x152c   :  { %v1410_v24 = vpop.f32.mrf.mxu1 }
0x1536   :  { %v2098_v18 = vpop.eup %2097 }
0x1537   :  { %v1416_v30 = vmul.f32 0.5, %v2098_v18 }
0x1538   :  { %v2100_v57 = vpop.eup %2099 }
0x1539   :  { %v1417_v34 = vmul.f32 0.5, %v2100_v57  ;;  %v1418_v41 = vadd.f32 0.5, %v1416_v30 }
0x153b   :  { %v1419_v20 = vadd.f32 0.5, %v1417_v34  ;;  %v1422_v45 = vmul.f32 %v1418_v41, %v1354_v51 }
0x153d   :  { %v1421_v35 = vsel %vm65_vm3, %v2100_v57, %v1419_v20 }
0x153e   :  { %v1423_v53 = vmul.f32 %v1421_v35, %v1418_v41 }
0x1540   :  { %1425 = vrot.lane.b32.xlu1 %v1423_v53, %s2128_s3 }
0x15b2   :  { %v1426_v48 = vpop.permute.xlu1 %1425 }
0x15b3   :  { %v1428_v60 = vadd.f32 %v1426_v48, %v1422_v45 }
0x15b5   :  { %2101 = vtanh.f32 %v1428_v60 }
0x15c2   :  { %v2102_v4 = vpop.eup %2101 }
0x15c3   :  { %v2915_v38 = vmul.f32 %v2102_v4, %v1421_v35 }
0x15c5   :  { %v1438_v7 = vpack.c.bf16 %v2915_v38, %v2915_v38 }
0x15c7   :  { %1440 = vrot.lane.b32.xlu0 %v1438_v7, %s2128_s3 }
0x1639   :  { %v1441_v50 = vpop.permute.xlu0 %1440 }
0x163a   :  { %1942 = vmatmul.mubr.msk.bf16.vlgmr.msra.gmra.mxu0 %vm292_vm4, %v1441_v50 }
0x163b   :  { %1602 = vmatpush1.bf16.msra.mxu0 %v2646_v58  ;;  %1625 = vmatprep.mubr.bf16.mxu0 %v2127_v1 }
0x163c   :  { %1603 = vmatprep.subr.bf16.mxu0 %v2652_v8 }
0x163f   :  { %1604 = vmatpush1.bf16.msra.mxu0 %v2657_v59 }
0x1640   :  { %1605 = vmatprep.subr.bf16.mxu0 %v2666_v0 }
0x1643   :  { %1606 = vmatpush1.bf16.msra.mxu0 %v2671_v9 }
0x1644   :  { %1607 = vmatprep.subr.bf16.mxu0 %v2676_v2 }
0x1647   :  { %1608 = vmatpush1.bf16.msra.mxu0 %v2683_v10 }
0x16fa   :  { %v1479_v51 = vpop.f32.mrf.mxu0 }
0x16fb   :  { %v1486_v37 = vadd.f32 %v1479_v51, %v1083_v5 }
0x16fc   :  { %v1481_v14 = vpop.f32.mrf.mxu0 }
0x16fd   :  { %2103 = vtanh.f32 %v1486_v37  ;;  %v1487_v56 = vadd.f32 %v1481_v14, %v1084_v28 }
0x16fe   :  { %v1483_v29 = vpop.f32.mrf.mxu0 }
0x16ff   :  { %2105 = vtanh.f32 %v1487_v56 }
0x1700   :  { %v1484_v62 = vpop.f32.mrf.mxu0 }
0x170a   :  { %v2104_v47 = vpop.eup %2103 }
0x170b   :  { %v1490_v22 = vmul.f32 0.5, %v2104_v47 }
0x170c   :  { %v2106_v12 = vpop.eup %2105 }
0x170d   :  { %v1491_v24 = vmul.f32 0.5, %v2106_v12  ;;  %v1492_v57 = vadd.f32 0.5, %v1490_v22 }
0x170f   :  { %v1493_v18 = vadd.f32 0.5, %v1491_v24  ;;  %v1496_v5 = vmul.f32 %v1492_v57, %v1428_v60 }
0x1711   :  { %v1495_v46 = vsel %vm65_vm3, %v2106_v12, %v1493_v18 }
0x1712   :  { %v1497_v26 = vmul.f32 %v1495_v46, %v1492_v57 }
0x1714   :  { %1499 = vrot.lane.b32.xlu1 %v1497_v26, %s2128_s3 }
0x1786   :  { %v1500_v30 = vpop.permute.xlu1 %1499 }
0x1787   :  { %v1502_v34 = vadd.f32 %v1500_v30, %v1496_v5 }
0x1789   :  { %2107 = vtanh.f32 %v1502_v34 }
0x1796   :  { %v2108_v27 = vpop.eup %2107 }
0x1797   :  { %v2942_v11 = vmul.f32 %v2108_v27, %v1495_v46 }
0x1799   :  { %v1512_v28 = vpack.c.bf16 %v2942_v11, %v2942_v11 }
0x179b   :  { %1514 = vrot.lane.b32.xlu0 %v1512_v28, %s2128_s3 }
0x180d   :  { %v1515_v20 = vpop.permute.xlu0 %1514 }
0x180e   :  { %1943 = vmatmul.mubr.msk.bf16.vlgmr.msra.gmra.mxu1 %vm292_vm4, %v1515_v20 }
0x180f   :  { %1676 = vmatpush1.bf16.msra.mxu1 %v2646_v58  ;;  %1699 = vmatprep.mubr.bf16.mxu1 %v2127_v1 }
0x1810   :  { %1677 = vmatprep.subr.bf16.mxu1 %v2652_v8 }
0x1813   :  { %1678 = vmatpush1.bf16.msra.mxu1 %v2657_v59 }
0x1814   :  { %1679 = vmatprep.subr.bf16.mxu1 %v2666_v0 }
0x1817   :  { %1680 = vmatpush1.bf16.msra.mxu1 %v2671_v9 }
0x1818   :  { %1681 = vmatprep.subr.bf16.mxu1 %v2676_v2 }
0x181b   :  { %1682 = vmatpush1.bf16.msra.mxu1 %v2683_v10 }
0x18ce   :  { %v1553_v41 = vpop.f32.mrf.mxu1 }
0x18cf   :  { %v1560_v58 = vadd.f32 %v1553_v41, %v1087_v16 }
0x18d0   :  { %v1555_v1 = vpop.f32.mrf.mxu1 }
0x18d1   :  { %2109 = vtanh.f32 %v1560_v58  ;;  %v1561_v8 = vadd.f32 %v1555_v1, %v1088_v32 }
0x18d2   :  { %v1557_v59 = vpop.f32.mrf.mxu1 }
0x18d3   :  { %2111 = vtanh.f32 %v1561_v8 }
0x18d4   :  { %v1558_v0 = vpop.f32.mrf.mxu1 }
0x18de   :  { %v2110_v9 = vpop.eup %2109 }
0x18df   :  { %v1564_v10 = vmul.f32 0.5, %v2110_v9 }
0x18e0   :  { %v2112_v2 = vpop.eup %2111 }
0x18e1   :  { %v1565_v35 = vmul.f32 0.5, %v2112_v2  ;;  %v1566_v45 = vadd.f32 0.5, %v1564_v10 }
0x18e3   :  { %v1567_v53 = vadd.f32 0.5, %v1565_v35  ;;  %v1570_v16 = vmul.f32 %v1566_v45, %v1502_v34 }
0x18e5   :  { %v1569_v42 = vsel %vm65_vm3, %v2112_v2, %v1567_v53  ;;  %v2028_v53 = vld [vmem:[%s3099_s7 + $0x10] sm:$0xff]  }
0x18e6   :  { %v1571_v54 = vmul.f32 %v1569_v42, %v1566_v45 }
0x18e8   :  { %1573 = vrot.lane.b32.xlu1 %v1571_v54, %s2128_s3 }
0x195a   :  { %v1574_v48 = vpop.permute.xlu1 %1573 }
0x195b   :  { %v1576_v60 = vadd.f32 %v1574_v48, %v1570_v16  ;;  %v2029_v16 = vld [vmem:[%s3099_s7 + $0x8] sm:$0xff]   ;;  %v2030_v48 = vld [vmem:[%s3099_s7] sm:$0xff]  }
0x195d   :  { %2113 = vtanh.f32 %v1576_v60 }
0x196a   :  { %v2114_v15 = vpop.eup %2113 }
0x196b   :  { %v2969_v52 = vmul.f32 %v2114_v15, %v1569_v42 }
0x196d   :  { %v1586_v32 = vpack.c.bf16 %v2969_v52, %v2969_v52 }
0x196f   :  { %1588 = vrot.lane.b32.xlu0 %v1586_v32, %s2128_s3 }
0x19e1   :  { %v1589_v4 = vpop.permute.xlu0 %1588 }
0x19e2   :  { %1944 = vmatmul.mubr.msk.bf16.vlgmr.msra.gmra.mxu0 %vm292_vm4, %v1589_v4 }
0x1aa2   :  { %v1627_v7 = vpop.f32.mrf.mxu0 }
0x1aa3   :  { %v1634_v50 = vadd.f32 %v1627_v7, %v1091_v33 }
0x1aa4   :  { %v1629_v51 = vpop.f32.mrf.mxu0 }
0x1aa5   :  { %2115 = vtanh.f32 %v1634_v50  ;;  %v1635_v37 = vadd.f32 %v1629_v51, %v1092_v19 }
0x1aa6   :  { %v1631_v14 = vpop.f32.mrf.mxu0 }
0x1aa7   :  { %2117 = vtanh.f32 %v1635_v37 }
0x1aa8   :  { %v1632_v56 = vpop.f32.mrf.mxu0 }
0x1ab2   :  { %v2116_v29 = vpop.eup %2115 }
0x1ab3   :  { %v1638_v47 = vmul.f32 0.5, %v2116_v29 }
0x1ab4   :  { %v2118_v62 = vpop.eup %2117 }
0x1ab5   :  { %v1639_v12 = vmul.f32 0.5, %v2118_v62  ;;  %v1640_v24 = vadd.f32 0.5, %v1638_v47 }
0x1ab7   :  { %v1641_v22 = vadd.f32 0.5, %v1639_v12  ;;  %v1644_v33 = vmul.f32 %v1640_v24, %v1576_v60 }
0x1ab9   :  { %v1643_v43 = vsel %vm65_vm3, %v2118_v62, %v1641_v22 }
0x1aba   :  { %v1645_v39 = vmul.f32 %v1643_v43, %v1640_v24 }
0x1abc   :  { %1647 = vrot.lane.b32.xlu1 %v1645_v39, %s2128_s3 }
0x1b2e   :  { %v1648_v18 = vpop.permute.xlu1 %1647 }
0x1b2f   :  { %v1650_v57 = vadd.f32 %v1648_v18, %v1644_v33 }
0x1b31   :  { %2119 = vtanh.f32 %v1650_v57 }
0x1b3e   :  { %v2120_v3 = vpop.eup %2119 }
0x1b3f   :  { %v1652_v44 = vmul.f32 %v2120_v3, %v1643_v43 }
0x1b41   :  { %v1660_v19 = vpack.c.bf16 %v1652_v44, %v1652_v44 }
0x1b43   :  { %1662 = vrot.lane.b32.xlu0 %v1660_v19, %s2128_s3 }
0x1b47   :  { %1210 = vrot.lane.b32.xlu0 %v2841_v21, %s2128_s3 }
0x1b4b   :  { %1654 = vrot.lane.b32.xlu0 %v1652_v44, %s2128_s3 }
0x1b4f   :  { %1358 = vrot.lane.b32.xlu0 %v2887_v17, %s2128_s3 }
0x1b53   :  { %1506 = vrot.lane.b32.xlu0 %v2942_v11, %s2128_s3 }
0x1bb5   :  { %v1663_v46 = vpop.permute.xlu0 %1662 }
0x1bb6   :  { %1945 = vmatmul.mubr.msk.bf16.vlgmr.msra.gmra.mxu1 %vm292_vm4, %v1663_v46 }
0x1bb9   :  { %v1211_v26 = vpop.permute.xlu0 %1210 }
0x1bba   :  { %1213 = vst.msk [vmem:[#allocation3] sm:$0xff] %vm292_vm4, %v1211_v26 }
0x1bbd   :  { %v1655_v5 = vpop.permute.xlu0 %1654 }
0x1bbe   :  { %1657 = vst.msk [vmem:[#allocation3 + $0x30] sm:$0xff] %vm292_vm4, %v1655_v5 }
0x1bc1   :  { %v1359_v30 = vpop.permute.xlu0 %1358  ;;  %v1732_v32 = vld [vmem:[#allocation3] sm:$0xff] }
0x1bc2   :  { %1361 = vst.msk [vmem:[#allocation3 + $0x10] sm:$0xff] %vm292_vm4, %v1359_v30 }
0x1bc5   :  { %v1507_v21 = vpop.permute.xlu0 %1506  ;;  %v1738_v36 = vld [vmem:[#allocation3 + $0x30] sm:$0xff] }
0x1bc6   :  { %1509 = vst.msk [vmem:[#allocation3 + $0x20] sm:$0xff] %vm292_vm4, %v1507_v21 }
0x1bcd   :  { %v1736_v10 = vld [vmem:[#allocation3 + $0x20] sm:$0xff] }
0x1c76   :  { %v1701_v34 = vpop.f32.mrf.mxu1 }
0x1c77   :  { %v1708_v17 = vadd.f32 %v1701_v34, %v1095_v63 }
0x1c78   :  { %v1703_v27 = vpop.f32.mrf.mxu1 }
0x1c79   :  { %2121 = vtanh.f32 %v1708_v17  ;;  %v1709_v11 = vadd.f32 %v1703_v27, %v1096_v40 }
0x1c7a   :  { %v1705_v28 = vpop.f32.mrf.mxu1 }
0x1c7b   :  { %2123 = vtanh.f32 %v1709_v11 }
0x1c7c   :  { %v1706_v20 = vpop.f32.mrf.mxu1 }
0x1c86   :  { %v2122_v41 = vpop.eup %2121 }
0x1c87   :  { %v1712_v1 = vmul.f32 0.5, %v2122_v41 }
0x1c88   :  { %v2124_v58 = vpop.eup %2123 }
0x1c89   :  { %v1713_v8 = vmul.f32 0.5, %v2124_v58  ;;  %v1714_v59 = vadd.f32 0.5, %v1712_v1 }
0x1c8b   :  { %v1715_v49 = vadd.f32 0.5, %v1713_v8  ;;  %v1718_v55 = vmul.f32 %v1714_v59, %v1650_v57  ;;  %v1946_v57 = vld [vmem:[%s3100_s8] ss:$0 sm:$0xff] }
0x1c8d   :  { %v1717_v61 = vsel %vm65_vm3, %v2124_v58, %v1715_v49 }
0x1c8e   :  { %v1719_v13 = vmul.f32 %v1717_v61, %v1714_v59 }
0x1c90   :  { %1721 = vrot.lane.b32.xlu1 %v1719_v13, %s2128_s3 }
0x1c94   :  { %1284 = vrot.lane.b32.xlu1 %v2859_v25, %s2128_s3 }
0x1c98   :  { %1432 = vrot.lane.b32.xlu1 %v2915_v38, %s2128_s3  ;;  %v2027_v38 = vld [vmem:[%s3099_s7 + $0x18] sm:$0xff]  }
0x1c99   :  { %1963 = vmatprep.subr.bf16.mxu0 %v2027_v38 }
0x1c9a   :  { %1964 = vmatpush3.bf16.msra.mxu0 %v2027_v38 }
0x1c9b   :  { %1965 = vmatprep.subr.bf16.mxu0 %v2028_v53 }
0x1c9e   :  { %1966 = vmatpush3.bf16.msra.mxu0 %v2028_v53 }
0x1c9f   :  { %1967 = vmatprep.subr.bf16.mxu0 %v2029_v16 }
0x1ca2   :  { %1968 = vmatpush3.bf16.msra.mxu0 %v2029_v16 }
0x1ca3   :  { %1969 = vmatprep.subr.bf16.mxu0 %v2030_v48 }
0x1ca6   :  { %1970 = vmatpush3.bf16.msra.mxu0 %v2030_v48 }
0x1d02   :  { %v1722_v23 = vpop.permute.xlu1 %1721 }
0x1d03   :  { %v1724_v6 = vadd.f32 %v1722_v23, %v1718_v55 }
0x1d05   :  { %2125 = vtanh.f32 %v1724_v6 }
0x1d06   :  { %v1285_v63 = vpop.permute.xlu1 %1284 }
0x1d07   :  { %1287 = vst.msk [vmem:[#allocation3 + $0x8] sm:$0xff] %vm292_vm4, %v1285_v63 }
0x1d0a   :  { %v1433_v40 = vpop.permute.xlu1 %1432 }
0x1d0b   :  { %1435 = vst.msk [vmem:[#allocation3 + $0x18] sm:$0xff] %vm292_vm4, %v1433_v40 }
0x1d0e   :  { %v1733_v0 = vld [vmem:[#allocation3 + $0x8] sm:$0xff] }
0x1d0f   :  { %v1742_v9 = vsel %vm68_vm5, %v1733_v0, %v1738_v36  ;;  %v1752_v25 = vsel %vm68_vm5, %v1738_v36, %v1733_v0 }
0x1d10   :  { %1743 = vst.msk [vmem:[#allocation3 + $0x8] sm:$0xff] %vm292_vm4, %v1742_v9  ;;  %1753 = vst.msk [vmem:[#allocation3 + $0x30] sm:$0xff] %vm292_vm4, %v1752_v25 }
0x1d12   :  { %v2126_v2 = vpop.eup %2125  ;;  %v1735_v35 = vld [vmem:[#allocation3 + $0x18] sm:$0xff] }
0x1d13   :  { %v1746_v45 = vsel %vm68_vm5, %v1735_v35, %v1736_v10  ;;  %v1748_v42 = vsel %vm68_vm5, %v1736_v10, %v1735_v35  ;;  %v1726_v54 = vmul.f32 %v2126_v2, %v1717_v61 }
0x1d14   :  { %1747 = vst.msk [vmem:[#allocation3 + $0x18] sm:$0xff] %vm292_vm4, %v1746_v45  ;;  %1749 = vst.msk [vmem:[#allocation3 + $0x20] sm:$0xff] %vm292_vm4, %v1748_v42 }
0x1d15   :  { %1728 = vrot.lane.b32.xlu1 %v1726_v54, %s2128_s3 }
0x1d17   :  { %v1757_v29 = vld [vmem:[#allocation3 + $0x8] sm:$0xff]  ;;  %v1762_v33 = vld [vmem:[#allocation3 + $0x30] sm:$0xff] }
0x1d19   :  { %1580 = vrot.lane.b32.xlu1 %v2969_v52, %s2128_s3  ;;  %v1734_v52 = vld [vmem:[#allocation3 + $0x10] sm:$0xff] }
0x1d1b   :  { %v1759_v47 = vld [vmem:[#allocation3 + $0x18] sm:$0xff]  ;;  %v1760_v22 = vld [vmem:[#allocation3 + $0x20] sm:$0xff] }
0x1d87   :  { %v1729_v60 = vpop.permute.xlu1 %1728 }
0x1d88   :  { %1731 = vst.msk [vmem:[#allocation3 + $0x38] sm:$0xff] %vm292_vm4, %v1729_v60 }
0x1d8b   :  { %v1581_v15 = vpop.permute.xlu1 %1580 }
0x1d8c   :  { %1583 = vst.msk [vmem:[#allocation3 + $0x28] sm:$0xff] %vm292_vm4, %v1581_v15 }
0x1d8f   :  { %v1739_v4 = vld [vmem:[#allocation3 + $0x38] sm:$0xff] }
0x1d90   :  { %v1740_v7 = vsel %vm68_vm5, %v1732_v32, %v1739_v4  ;;  %v1754_v50 = vsel %vm68_vm5, %v1739_v4, %v1732_v32 }
0x1d91   :  { %1741 = vst.msk [vmem:[#allocation3] sm:$0xff] %vm292_vm4, %v1740_v7  ;;  %1755 = vst.msk [vmem:[#allocation3 + $0x38] sm:$0xff] %vm292_vm4, %v1754_v50 }
0x1d93   :  { %v1737_v51 = vld [vmem:[#allocation3 + $0x28] sm:$0xff] }
0x1d94   :  { %v1744_v37 = vsel %vm68_vm5, %v1734_v52, %v1737_v51  ;;  %v1750_v14 = vsel %vm68_vm5, %v1737_v51, %v1734_v52 }
0x1d95   :  { %1745 = vst.msk [vmem:[#allocation3 + $0x10] sm:$0xff] %vm292_vm4, %v1744_v37  ;;  %1751 = vst.msk [vmem:[#allocation3 + $0x28] sm:$0xff] %vm292_vm4, %v1750_v14 }
0x1d98   :  { %v1756_v56 = vld [vmem:[#allocation3] sm:$0xff]  ;;  %v1763_v31 = vld [vmem:[#allocation3 + $0x38] sm:$0xff] }
0x1d99   :  { %v1764_v62 = vpack.c.bf16 %v1757_v29, %v1756_v56  ;;  %v1767_v18 = vpack.c.bf16 %v1763_v31, %v1762_v33 }
0x1d9b   :  { %1971 = vmatprep.mubr.msk.bf16.mxu0 %vm292_vm4, %v1764_v62 }
0x1d9c   :  { %v1758_v12 = vld [vmem:[#allocation3 + $0x10] sm:$0xff]  ;;  %v1761_v24 = vld [vmem:[#allocation3 + $0x28] sm:$0xff] }
0x1d9d   :  { %v1765_v43 = vpack.c.bf16 %v1759_v47, %v1758_v12  ;;  %v1766_v39 = vpack.c.bf16 %v1761_v24, %v1760_v22 }
0x1d9f   :  { %1972 = vmatmul.mubr.msk.bf16.vlgmr.msra.gmra.mxu0 %vm292_vm4, %v1765_v43 }
0x1da0   :  { %1975 = vmatprep.mubr.msk.bf16.mxu0 %vm292_vm4, %v1766_v39 }
0x1da7   :  { %1976 = vmatmul.mubr.msk.bf16.gmra.mxu0 %vm292_vm4, %v1767_v18 }
0x1e5f   :  { %v1973_v3 = vpop.f32.mrf.mxu0 }
0x1e60   :  { %v1862_v44 = vadd.f32 %v1973_v3, %v1946_v57 }
0x1e61   :  { %v1853_v19 = vpop.f32.mrf.mxu0 }
0x1e62   :  { %1886 = vst [vmem:[%s3101_s9 + $0x10] sm:$0xff] %v1862_v44  ;;  %v1854_v46 = vadd.f32 %v1946_v57, %v1853_v19 }
0x1e63   :  { %v1974_v26 = vpop.f32.mrf.mxu0 }
0x1e64   :  { %1884 = vst [vmem:[%s3101_s9] sm:$0xff] %v1854_v46  ;;  %v1865_v5 = vadd.f32 %v1974_v26, %v1946_v57 }
0x1e65   :  { %v1856_v30 = vpop.f32.mrf.mxu0 }
0x1e66   :  { %1887 = vst [vmem:[%s3101_s9 + $0x18] sm:$0xff] %v1865_v5  ;;  %v1857_v21 = vadd.f32 %v1946_v57, %v1856_v30 }
0x1e67   :  { %v1977_v34 = vpop.f32.mrf.mxu0 }
0x1e68   :  { %1885 = vst [vmem:[%s3101_s9 + $0x8] sm:$0xff] %v1857_v21  ;;  %v1878_v17 = vadd.f32 %v1977_v34, %v1946_v57 }
0x1e69   :  { %v1869_v27 = vpop.f32.mrf.mxu0 }
0x1e6a   :  { %1890 = vst [vmem:[%s3101_s9 + $0x30] sm:$0xff] %v1878_v17  ;;  %v1870_v11 = vadd.f32 %v1946_v57, %v1869_v27 }
0x1e6b   :  { %v1978_v28 = vpop.f32.mrf.mxu0 }
0x1e6c   :  { %1888 = vst [vmem:[%s3101_s9 + $0x20] sm:$0xff] %v1870_v11  ;;  %v1881_v20 = vadd.f32 %v1978_v28, %v1946_v57 }
0x1e6d   :  { %v1872_v41 = vpop.f32.mrf.mxu0 }
0x1e6e   :  { %1891 = vst [vmem:[%s3101_s9 + $0x38] sm:$0xff] %v1881_v20  ;;  %v1873_v58 = vadd.f32 %v1946_v57, %v1872_v41 }
0x1e70   :  { %1889 = vst [vmem:[%s3101_s9 + $0x28] sm:$0xff] %v1873_v58 }

</bundles_post_ra>
